<compile_context>
chip_gen: v5e
topology: v5e:2x2
jax: 0.10.0
libtpu: 0.0.40
codegen_flags: <defaults>
</compile_context>

<pallas_src>
import functools

import jax
import jax.numpy as jnp
from jax import lax
from jax.experimental import pallas as pl
from jax.experimental.pallas import tpu as pltpu

BN_EPS = 1e-5
C1, C2, C3, F1, F2 = 64, 128, 1024, 512, 256


def _vmem_limit_bytes():
    """Generation-aware scoped-VMEM request."""
    try:
        kind = jax.devices()[0].device_kind.lower()
    except Exception:
        kind = ""
    if "v7" in kind:
        return 40 << 20          # 64 MiB physical per TC on v7x: leave headroom
    return 64 << 20              # v5e/v6e have 128 MiB physical VMEM


def _row_tile(M, N, vmem_limit):
    """Row-tile height TM: divides M, 8-sublane aligned, and either a multiple
    of N (tile covers whole point clouds) or a divisor of N (tile inside one
    cloud), so the max-pool update maps cleanly onto batch rows."""
    # Dominant per-tile live buffers: the (TM, 1024) f32 conv3 slab, its square
    # temp and reshape copies -> ~3 * TM * C3 * 4 bytes; keep well under budget.
    target = (vmem_limit // 4) // (C3 * 4 * 3)
    target = max(256, min(2048, (target // 256) * 256))
    if M <= target:
        return M
    if N <= target:
        for k in range(target // N, 0, -1):
            tm = k * N
            if M % tm == 0 and tm % 8 == 0:
                return tm
    else:
        tm = (target // 8) * 8
        while tm >= 8:
            if N % tm == 0:
                return tm
            tm -= 8
    # TODO(synk): ragged N (e.g. 2500) at huge B*N needs masked row tiles;
    # fall back to a single tile.
    return M


def _bn_relu_rows(h, gamma, beta):
    """Train-mode BatchNorm over rows (biased variance) fused with ReLU."""
    inv_m = 1.0 / h.shape[0]
    mu = jnp.sum(h, axis=0, keepdims=True) * inv_m
    var = jnp.maximum(jnp.sum(h * h, axis=0, keepdims=True) * inv_m - mu * mu, 0.0)
    scale = gamma * lax.rsqrt(var + BN_EPS)
    shift = beta - mu * scale
    return jnp.maximum(h * scale + shift, 0.0)


# ---------------------------------------------------------------------------
# Kernel 1: BN1/BN2 scale & shift via a 2-pass streaming stats grid.
#   pass p=0: stats of conv1 output (x @ w1)
#   pass p=1: stats of conv2 output (relu(bn1(x @ w1)) @ w2)
# ---------------------------------------------------------------------------
def stem_stats_kernel(x_ref, w1_ref, g1_ref, be1_ref, w2_ref, g2_ref, be2_ref,
                      s1_ref, t1_ref, s2_ref, t2_ref,
                      sum1, sq1, sum2, sq2, sc1, sh1, *, M):
    p = pl.program_id(0)
    r = pl.program_id(1)
    last = pl.num_programs(1) - 1
    inv_m = 1.0 / M

    @pl.when((p == 0) & (r == 0))
    def _init():
        sum1[...] = jnp.zeros_like(sum1)
        sq1[...] = jnp.zeros_like(sq1)
        sum2[...] = jnp.zeros_like(sum2)
        sq2[...] = jnp.zeros_like(sq2)

    h1 = jnp.dot(x_ref[...], w1_ref[...], preferred_element_type=jnp.float32)

    @pl.when(p == 0)
    def _bn1_pass():
        sum1[...] += jnp.sum(h1, axis=0, keepdims=True)
        sq1[...] += jnp.sum(h1 * h1, axis=0, keepdims=True)

        @pl.when(r == last)
        def _fin1():
            mu = sum1[...] * inv_m
            var = jnp.maximum(sq1[...] * inv_m - mu * mu, 0.0)
            scale = g1_ref[...] * lax.rsqrt(var + BN_EPS)
            shift = be1_ref[...] - mu * scale
            sc1[...] = scale
            sh1[...] = shift
            s1_ref[...] = scale
            t1_ref[...] = shift

    @pl.when(p == 1)
    def _bn2_pass():
        a1 = jnp.maximum(h1 * sc1[...] + sh1[...], 0.0).astype(jnp.bfloat16)
        h2 = jnp.dot(a1, w2_ref[...], preferred_element_type=jnp.float32)
        sum2[...] += jnp.sum(h2, axis=0, keepdims=True)
        sq2[...] += jnp.sum(h2 * h2, axis=0, keepdims=True)

        @pl.when(r == last)
        def _fin2():
            mu = sum2[...] * inv_m
            var = jnp.maximum(sq2[...] * inv_m - mu * mu, 0.0)
            scale = g2_ref[...] * lax.rsqrt(var + BN_EPS)
            s2_ref[...] = scale
            t2_ref[...] = be2_ref[...] - mu * scale


# ---------------------------------------------------------------------------
# Kernel 2: fused row-tiled conv1->bn1->relu->conv2->bn2->relu->conv3 with
# streaming BN3 stats + per-cloud running max/min, finalized into
# bn3->relu->maxpool and the whole FC head on the last row tile.
# ---------------------------------------------------------------------------
def fused_kernel(x_ref, w1_ref, s1_ref, t1_ref, w2_ref, s2_ref, t2_ref,
                 w3_ref, g3_ref, be3_ref,
                 wf1_ref, g4_ref, be4_ref, wf2_ref, g5_ref, be5_ref,
                 wf3_ref, bf3_ref, o_ref,
                 sum3, sq3, hmax, hmin, *, N, M, TM):
    r = pl.program_id(0)
    last = pl.num_programs(0) - 1

    @pl.when(r == 0)
    def _init():
        sum3[...] = jnp.zeros_like(sum3)
        sq3[...] = jnp.zeros_like(sq3)
        hmax[...] = jnp.full_like(hmax, -jnp.inf)
        hmin[...] = jnp.full_like(hmin, jnp.inf)

    # ---- stem on this row tile (recomputed; <10% of conv3's FLOPs) ----------
    h1 = jnp.dot(x_ref[...], w1_ref[...], preferred_element_type=jnp.float32)
    h1 = jnp.maximum(h1 * s1_ref[...] + t1_ref[...], 0.0).astype(jnp.bfloat16)
    h2 = jnp.dot(h1, w2_ref[...], preferred_element_type=jnp.float32)
    h2 = jnp.maximum(h2 * s2_ref[...] + t2_ref[...], 0.0).astype(jnp.bfloat16)

    # ---- conv3 (pre-BN) on this row tile: (TM, 1024) lane-dense slab --------
    h3 = jnp.dot(h2, w3_ref[...], preferred_element_type=jnp.float32)

    # streaming BN3 statistics (per channel, over all M rows)
    sum3[...] += jnp.sum(h3, axis=0, keepdims=True)
    sq3[...] += jnp.sum(h3 * h3, axis=0, keepdims=True)

    # streaming per-point-cloud max / min of the pre-BN conv3 activation
    if TM % N == 0:                       # tile covers kb whole point clouds
        kb = TM // N
        b0 = r * kb
        h3b = h3.reshape(kb, N, h3.shape[-1])
        hmax[pl.ds(b0, kb), :] = jnp.max(h3b, axis=1)
        hmin[pl.ds(b0, kb), :] = jnp.min(h3b, axis=1)
    else:                                 # N % TM == 0: tile inside one cloud
        b0 = (r * TM) // N
        hmax[pl.ds(b0, 1), :] = jnp.maximum(hmax[pl.ds(b0, 1), :],
                                            jnp.max(h3, axis=0, keepdims=True))
        hmin[pl.ds(b0, 1), :] = jnp.minimum(hmin[pl.ds(b0, 1), :],
                                            jnp.min(h3, axis=0, keepdims=True))

    # ---- last row tile: finalize bn3+relu+maxpool, then run the FC head -----
    @pl.when(r == last)
    def _finalize():
        inv_m = 1.0 / M
        mu = sum3[...] * inv_m
        var = jnp.maximum(sq3[...] * inv_m - mu * mu, 0.0)
        scale = g3_ref[...] * lax.rsqrt(var + BN_EPS)
        shift = be3_ref[...] - mu * scale
        # bn3+relu is a monotone per-channel map of h3, so max over points is
        # the map applied to max(h3) when scale>=0, or to min(h3) when scale<0.
        hsel = jnp.where(scale >= 0.0, hmax[...], hmin[...])
        pooled = jnp.maximum(hsel * scale + shift, 0.0)           # (B, 1024)

        f = jnp.dot(pooled.astype(jnp.bfloat16), wf1_ref[...],
                    preferred_element_type=jnp.float32)
        f = _bn_relu_rows(f, g4_ref[...], be4_ref[...])
        f = jnp.dot(f.astype(jnp.bfloat16), wf2_ref[...],
                    preferred_element_type=jnp.float32)
        f = _bn_relu_rows(f, g5_ref[...], be5_ref[...])
        f = jnp.dot(f.astype(jnp.bfloat16), wf3_ref[...],
                    preferred_element_type=jnp.float32) + bf3_ref[...]
        o_ref[...] = f.astype(o_ref.dtype)


# ---------------------------------------------------------------------------
# Parameters & wrapper
# ---------------------------------------------------------------------------
def init_params(num_features, seed=0):
    """Deterministic synthetic parameters matching TNet.__init__ shapes.

    Weights are stored pre-transposed as (C_in, C_out).  Biases of conv1/2/3
    and fc1/fc2 are not generated: each feeds a train-mode BatchNorm which
    subtracts the batch mean, so a per-channel bias cancels exactly.
    """
    keys = jax.random.split(jax.random.PRNGKey(seed), 24)
    ki = iter(range(24))

    def w(shape, scale=0.1):
        return (scale * jax.random.normal(keys[next(ki)], shape)).astype(jnp.float32)

    def bn(c):
        gamma = (1.0 + 0.1 * jax.random.normal(keys[next(ki)], (1, c))).astype(jnp.float32)
        beta = (0.1 * jax.random.normal(keys[next(ki)], (1, c))).astype(jnp.float32)
        return gamma, beta

    nf2 = num_features * num_features
    p = {}
    p['w1'] = w((num_features, C1)); p['g1'], p['be1'] = bn(C1)
    p['w2'] = w((C1, C2));           p['g2'], p['be2'] = bn(C2)
    p['w3'] = w((C2, C3));           p['g3'], p['be3'] = bn(C3)
    p['wf1'] = w((C3, F1));          p['g4'], p['be4'] = bn(F1)
    p['wf2'] = w((F1, F2));          p['g5'], p['be5'] = bn(F2)
    p['wf3'] = w((F2, nf2));         p['bf3'] = w((1, nf2))
    return p


def tnet_forward(x, params, num_features):
    """x: (B, num_features, num_points) float32, PyTorch NCW layout."""
    B, C, N = x.shape
    assert C == num_features
    M = B * N
    nf2 = num_features * num_features
    vmem_limit = _vmem_limit_bytes()
    TM = _row_tile(M, N, vmem_limit)
    assert M % TM == 0 and (TM % N == 0 or N % TM == 0)
    nrt = M // TM

    def bf16(a):
        return a.astype(jnp.bfloat16)

    # Flatten the 1x1 convs to (M, C_in) x (C_in, C_out) matmuls; the NCW
    # relayout touches only the tiny input tensor.
    x_flat = bf16(jnp.transpose(x, (0, 2, 1)).reshape(M, C))
    # Fold the identity matrix into fc3's bias (the only bias not killed by BN).
    bf3_iden = params['bf3'] + jnp.eye(num_features, dtype=jnp.float32).reshape(1, nf2)

    w1, w2, w3 = bf16(params['w1']), bf16(params['w2']), bf16(params['w3'])
    wf1, wf2, wf3 = bf16(params['wf1']), bf16(params['wf2']), bf16(params['wf3'])

    # ---- BN1/BN2 scale & shift (2-pass streaming stats over x) --------------
    def const2(shape):
        return pl.BlockSpec(shape, lambda p, r: (0, 0))

    stats_flops = 2 * M * (2 * C * C1 + C1 * C2)
    stats_bytes = 2 * M * C * 2 + (C * C1 + C1 * C2) * 2 + (C1 + C2) * 6 * 4
    s1, t1, s2, t2 = pl.pallas_call(
        functools.partial(stem_stats_kernel, M=M),
        out_shape=(jax.ShapeDtypeStruct((1, C1), jnp.float32),
                   jax.ShapeDtypeStruct((1, C1), jnp.float32),
                   jax.ShapeDtypeStruct((1, C2), jnp.float32),
                   jax.ShapeDtypeStruct((1, C2), jnp.float32)),
        grid=(2, nrt),
        in_specs=[pl.BlockSpec((TM, C), lambda p, r: (r, 0)),
                  const2((C, C1)), const2((1, C1)), const2((1, C1)),
                  const2((C1, C2)), const2((1, C2)), const2((1, C2))],
        out_specs=(const2((1, C1)), const2((1, C1)),
                   const2((1, C2)), const2((1, C2))),
        scratch_shapes=[pltpu.VMEM((1, C1), jnp.float32),
                        pltpu.VMEM((1, C1), jnp.float32),
                        pltpu.VMEM((1, C2), jnp.float32),
                        pltpu.VMEM((1, C2), jnp.float32),
                        pltpu.VMEM((1, C1), jnp.float32),
                        pltpu.VMEM((1, C1), jnp.float32)],
        compiler_params=pltpu.CompilerParams(
            dimension_semantics=("arbitrary", "arbitrary"),
            vmem_limit_bytes=vmem_limit),
        cost_estimate=pl.CostEstimate(flops=stats_flops,
                                      transcendentals=C1 + C2,
                                      bytes_accessed=stats_bytes),
    )(x_flat, w1, params['g1'], params['be1'], w2, params['g2'], params['be2'])

    # ---- fused stem + conv3 + bn3/relu/maxpool + FC head --------------------
    def const1(shape):
        return pl.BlockSpec(shape, lambda r: (0, 0))

    fused_flops = (2 * M * (C * C1 + C1 * C2 + C2 * C3)
                   + 2 * B * (C3 * F1 + F1 * F2 + F2 * nf2))
    fused_bytes = (M * C * 2
                   + (C * C1 + C1 * C2 + C2 * C3 + C3 * F1 + F1 * F2 + F2 * nf2) * 2
                   + (C1 + C2 + C3 + F1 + F2) * 2 * 4 + nf2 * 4 + B * nf2 * 4)
    out = pl.pallas_call(
        functools.partial(fused_kernel, N=N, M=M, TM=TM),
        out_shape=jax.ShapeDtypeStruct((B, nf2), jnp.float32),
        grid=(nrt,),
        in_specs=[pl.BlockSpec((TM, C), lambda r: (r, 0)),
                  const1((C, C1)), const1((1, C1)), const1((1, C1)),
                  const1((C1, C2)), const1((1, C2)), const1((1, C2)),
                  const1((C2, C3)), const1((1, C3)), const1((1, C3)),
                  const1((C3, F1)), const1((1, F1)), const1((1, F1)),
                  const1((F1, F2)), const1((1, F2)), const1((1, F2)),
                  const1((F2, nf2)), const1((1, nf2))],
        out_specs=const1((B, nf2)),
        scratch_shapes=[pltpu.VMEM((1, C3), jnp.float32),
                        pltpu.VMEM((1, C3), jnp.float32),
                        pltpu.VMEM((B, C3), jnp.float32),
                        pltpu.VMEM((B, C3), jnp.float32)],
        compiler_params=pltpu.CompilerParams(
            dimension_semantics=("arbitrary",),
            vmem_limit_bytes=vmem_limit),
        cost_estimate=pl.CostEstimate(flops=fused_flops,
                                      transcendentals=C3 + F1 + F2,
                                      bytes_accessed=fused_bytes),
    )(x_flat, w1, s1, t1, w2, s2, t2, w3, params['g3'], params['be3'],
      wf1, params['g4'], params['be4'], wf2, params['g5'], params['be5'],
      wf3, bf3_iden)

    return out.reshape(B, num_features, num_features)


def tnet_reference(x, params, num_features):
    """Pure-JAX reference with matching bf16-operand / f32-accumulate precision."""
    B, C, N = x.shape
    M = B * N
    nf2 = num_features * num_features

    def mm(a, b):
        return jnp.dot(a.astype(jnp.bfloat16), b.astype(jnp.bfloat16),
                       preferred_element_type=jnp.float32)

    def bn_relu(h, gamma, beta):
        mu = jnp.mean(h, axis=0, keepdims=True)
        var = jnp.mean((h - mu) ** 2, axis=0, keepdims=True)
        return jnp.maximum((h - mu) * lax.rsqrt(var + BN_EPS) * gamma + beta, 0.0)

    xf = jnp.transpose(x, (0, 2, 1)).reshape(M, C)
    h = bn_relu(mm(xf, params['w1']), params['g1'], params['be1'])
    h = bn_relu(mm(h, params['w2']), params['g2'], params['be2'])
    h = bn_relu(mm(h, params['w3']), params['g3'], params['be3'])
    pooled = jnp.max(h.reshape(B, N, C3), axis=1)
    f = bn_relu(mm(pooled, params['wf1']), params['g4'], params['be4'])
    f = bn_relu(mm(f, params['wf2']), params['g5'], params['be5'])
    f = mm(f, params['wf3']) + params['bf3'] \
        + jnp.eye(num_features, dtype=jnp.float32).reshape(1, nf2)
    return f.reshape(B, num_features, num_features)


if __name__ == "__main__":
    # Small shapes: batch=2, num_features=4 channels, num_points=16.
    BATCH, NUM_FEATURES, NUM_POINTS = 2, 4, 16

    key = jax.random.PRNGKey(0)
    x = jax.random.normal(key, (BATCH, NUM_FEATURES, NUM_POINTS), dtype=jnp.float32)

    params = init_params(NUM_FEATURES, seed=0)

    fwd = jax.jit(functools.partial(tnet_forward, num_features=NUM_FEATURES))
    out = jax.block_until_ready(fwd(x, params))

    assert out.shape == (BATCH, NUM_FEATURES, NUM_FEATURES)
    assert out.dtype == jnp.float32

    ref = tnet_reference(x, params, NUM_FEATURES)
    assert bool(jnp.all(jnp.isfinite(out)))
    assert bool(jnp.allclose(out, ref, rtol=5e-2, atol=5e-2)), (
        f"max abs diff {float(jnp.max(jnp.abs(out - ref)))}")
    print("KERNEL_OK")
</pallas_src>

<mosaic_0001>
module attributes {stable_mosaic.version = 11 : i64} {
  func.func @stem_stats_kernel(%arg0: i32, %arg1: i32, %arg2: memref<32x4xbf16, #tpu.memory_space<vmem>>, %arg3: memref<4x64xbf16, #tpu.memory_space<vmem>>, %arg4: memref<1x64xf32, #tpu.memory_space<vmem>>, %arg5: memref<1x64xf32, #tpu.memory_space<vmem>>, %arg6: memref<64x128xbf16, #tpu.memory_space<vmem>>, %arg7: memref<1x128xf32, #tpu.memory_space<vmem>>, %arg8: memref<1x128xf32, #tpu.memory_space<vmem>>, %arg9: memref<1x64xf32, #tpu.memory_space<vmem>>, %arg10: memref<1x64xf32, #tpu.memory_space<vmem>>, %arg11: memref<1x128xf32, #tpu.memory_space<vmem>>, %arg12: memref<1x128xf32, #tpu.memory_space<vmem>>, %arg13: memref<1x64xf32, #tpu.memory_space<vmem>>, %arg14: memref<1x64xf32, #tpu.memory_space<vmem>>, %arg15: memref<1x128xf32, #tpu.memory_space<vmem>>, %arg16: memref<1x128xf32, #tpu.memory_space<vmem>>, %arg17: memref<1x64xf32, #tpu.memory_space<vmem>>, %arg18: memref<1x64xf32, #tpu.memory_space<vmem>>) attributes {dimension_semantics = [#tpu.dimension_semantics<arbitrary>, #tpu.dimension_semantics<arbitrary>], iteration_bounds = array<i64: 2, 1>, scalar_prefetch = 0 : i64, scratch_operands = 6 : i64, tpu.core_type = #tpu.core_type<tc>, window_params = [{transform_indices = @transform_0, window_bounds = array<i64: 32, 4>}, {pipeline_mode = #tpu.pipeline_mode<synchronous>, transform_indices = @transform_1, window_bounds = array<i64: 4, 64>}, {pipeline_mode = #tpu.pipeline_mode<synchronous>, transform_indices = @transform_2, window_bounds = array<i64: 1, 64>}, {pipeline_mode = #tpu.pipeline_mode<synchronous>, transform_indices = @transform_3, window_bounds = array<i64: 1, 64>}, {pipeline_mode = #tpu.pipeline_mode<synchronous>, transform_indices = @transform_4, window_bounds = array<i64: 64, 128>}, {pipeline_mode = #tpu.pipeline_mode<synchronous>, transform_indices = @transform_5, window_bounds = array<i64: 1, 128>}, {pipeline_mode = #tpu.pipeline_mode<synchronous>, transform_indices = @transform_6, window_bounds = array<i64: 1, 128>}, {pipeline_mode = #tpu.pipeline_mode<synchronous>, transform_indices = @transform_7, window_bounds = array<i64: 1, 64>}, {pipeline_mode = #tpu.pipeline_mode<synchronous>, transform_indices = @transform_8, window_bounds = array<i64: 1, 64>}, {pipeline_mode = #tpu.pipeline_mode<synchronous>, transform_indices = @transform_9, window_bounds = array<i64: 1, 128>}, {pipeline_mode = #tpu.pipeline_mode<synchronous>, transform_indices = @transform_10, window_bounds = array<i64: 1, 128>}]} {
    %c0_i32 = arith.constant 0 : i32
    %0 = arith.cmpi eq, %arg0, %c0_i32 : i32
    %c0_i32_0 = arith.constant 0 : i32
    %1 = arith.cmpi eq, %arg1, %c0_i32_0 : i32
    %2 = arith.andi %0, %1 : i1
    %3 = arith.extui %2 : i1 to i32
    %c0_i32_1 = arith.constant 0 : i32
    %4 = arith.cmpi ne, %3, %c0_i32_1 : i32
    scf.if %4 {
      %cst_8 = arith.constant 0.000000e+00 : f32
      %14 = vector.broadcast %cst_8 : f32 to vector<1x64xf32>
      %c0_9 = arith.constant 0 : index
      %c0_10 = arith.constant 0 : index
      %15 = vector.load %arg13[%c0_9, %c0_10] : memref<1x64xf32, #tpu.memory_space<vmem>>, vector<1x64xf32>
      tpu.vector_store %arg13[%c0_9, %c0_10], %14 {strides = array<i32>} : memref<1x64xf32, #tpu.memory_space<vmem>>, vector<1x64xf32>,
      %cst_11 = arith.constant 0.000000e+00 : f32
      %16 = vector.broadcast %cst_11 : f32 to vector<1x64xf32>
      %c0_12 = arith.constant 0 : index
      %c0_13 = arith.constant 0 : index
      %17 = vector.load %arg14[%c0_12, %c0_13] : memref<1x64xf32, #tpu.memory_space<vmem>>, vector<1x64xf32>
      tpu.vector_store %arg14[%c0_12, %c0_13], %16 {strides = array<i32>} : memref<1x64xf32, #tpu.memory_space<vmem>>, vector<1x64xf32>,
      %cst_14 = arith.constant 0.000000e+00 : f32
      %18 = vector.broadcast %cst_14 : f32 to vector<1x128xf32>
      %c0_15 = arith.constant 0 : index
      %c0_16 = arith.constant 0 : index
      %19 = vector.load %arg15[%c0_15, %c0_16] : memref<1x128xf32, #tpu.memory_space<vmem>>, vector<1x128xf32>
      tpu.vector_store %arg15[%c0_15, %c0_16], %18 {strides = array<i32>} : memref<1x128xf32, #tpu.memory_space<vmem>>, vector<1x128xf32>,
      %cst_17 = arith.constant 0.000000e+00 : f32
      %20 = vector.broadcast %cst_17 : f32 to vector<1x128xf32>
      %c0_18 = arith.constant 0 : index
      %c0_19 = arith.constant 0 : index
      %21 = vector.load %arg16[%c0_18, %c0_19] : memref<1x128xf32, #tpu.memory_space<vmem>>, vector<1x128xf32>
      tpu.vector_store %arg16[%c0_18, %c0_19], %20 {strides = array<i32>} : memref<1x128xf32, #tpu.memory_space<vmem>>, vector<1x128xf32>,
    } else {
    }
    %c0 = arith.constant 0 : index
    %c0_2 = arith.constant 0 : index
    %5 = vector.load %arg2[%c0, %c0_2] : memref<32x4xbf16, #tpu.memory_space<vmem>>, vector<32x4xbf16>
    %c0_3 = arith.constant 0 : index
    %c0_4 = arith.constant 0 : index
    %6 = vector.load %arg3[%c0_3, %c0_4] : memref<4x64xbf16, #tpu.memory_space<vmem>>, vector<4x64xbf16>
    %cst = arith.constant dense<0.000000e+00> : vector<32x64xf32>
    %7 = tpu.matmul %5, %6, %cst {dimension_numbers = #tpu.dot_dimension_numbers<[1], [0], [0], [1], [0, 0, 1, 1], [], []>} : vector<32x4xbf16>, vector<4x64xbf16>, vector<32x64xf32> -> vector<32x64xf32>
    %c0_i32_5 = arith.constant 0 : i32
    %8 = arith.cmpi eq, %arg0, %c0_i32_5 : i32
    %9 = arith.extui %8 : i1 to i32
    %c0_i32_6 = arith.constant 0 : i32
    %10 = arith.cmpi ne, %9, %c0_i32_6 : i32
    scf.if %10 {
      %c0_8 = arith.constant 0 : index
      %c0_9 = arith.constant 0 : index
      %14 = vector.load %arg13[%c0_8, %c0_9] : memref<1x64xf32, #tpu.memory_space<vmem>>, vector<1x64xf32>
      %cst_10 = arith.constant dense<0.000000e+00> : vector<64xf32>
      %15 = vector.multi_reduction <add>, %7, %cst_10 [0] : vector<32x64xf32> to vector<64xf32>
      %16 = vector.shape_cast %15 : vector<64xf32> to vector<1x64xf32>
      %17 = arith.addf %14, %16 : vector<1x64xf32>
      %c0_11 = arith.constant 0 : index
      %c0_12 = arith.constant 0 : index
      %18 = vector.load %arg13[%c0_11, %c0_12] : memref<1x64xf32, #tpu.memory_space<vmem>>, vector<1x64xf32>
      tpu.vector_store %arg13[%c0_11, %c0_12], %17 {strides = array<i32>} : memref<1x64xf32, #tpu.memory_space<vmem>>, vector<1x64xf32>,
      %c0_13 = arith.constant 0 : index
      %c0_14 = arith.constant 0 : index
      %19 = vector.load %arg14[%c0_13, %c0_14] : memref<1x64xf32, #tpu.memory_space<vmem>>, vector<1x64xf32>
      %20 = arith.mulf %7, %7 : vector<32x64xf32>
      %cst_15 = arith.constant dense<0.000000e+00> : vector<64xf32>
      %21 = vector.multi_reduction <add>, %20, %cst_15 [0] : vector<32x64xf32> to vector<64xf32>
      %22 = vector.shape_cast %21 : vector<64xf32> to vector<1x64xf32>
      %23 = arith.addf %19, %22 : vector<1x64xf32>
      %c0_16 = arith.constant 0 : index
      %c0_17 = arith.constant 0 : index
      %24 = vector.load %arg14[%c0_16, %c0_17] : memref<1x64xf32, #tpu.memory_space<vmem>>, vector<1x64xf32>
      tpu.vector_store %arg14[%c0_16, %c0_17], %23 {strides = array<i32>} : memref<1x64xf32, #tpu.memory_space<vmem>>, vector<1x64xf32>,
      %c0_i32_18 = arith.constant 0 : i32
      %25 = arith.cmpi eq, %arg1, %c0_i32_18 : i32
      %26 = arith.extui %25 : i1 to i32
      %c0_i32_19 = arith.constant 0 : i32
      %27 = arith.cmpi ne, %26, %c0_i32_19 : i32
      scf.if %27 {
        %c0_20 = arith.constant 0 : index
        %c0_21 = arith.constant 0 : index
        %28 = vector.load %arg13[%c0_20, %c0_21] : memref<1x64xf32, #tpu.memory_space<vmem>>, vector<1x64xf32>
        %cst_22 = arith.constant 3.125000e-02 : f32
        %29 = vector.broadcast %cst_22 : f32 to vector<1x64xf32>
        %30 = arith.mulf %28, %29 : vector<1x64xf32>
        %c0_23 = arith.constant 0 : index
        %c0_24 = arith.constant 0 : index
        %31 = vector.load %arg14[%c0_23, %c0_24] : memref<1x64xf32, #tpu.memory_space<vmem>>, vector<1x64xf32>
        %cst_25 = arith.constant 3.125000e-02 : f32
        %32 = vector.broadcast %cst_25 : f32 to vector<1x64xf32>
        %33 = arith.mulf %31, %32 : vector<1x64xf32>
        %34 = arith.mulf %30, %30 : vector<1x64xf32>
        %35 = arith.subf %33, %34 : vector<1x64xf32>
        %cst_26 = arith.constant 0.000000e+00 : f32
        %36 = vector.broadcast %cst_26 : f32 to vector<1x64xf32>
        %37 = arith.maximumf %35, %36 : vector<1x64xf32>
        %c0_27 = arith.constant 0 : index
        %c0_28 = arith.constant 0 : index
        %38 = vector.load %arg4[%c0_27, %c0_28] : memref<1x64xf32, #tpu.memory_space<vmem>>, vector<1x64xf32>
        %cst_29 = arith.constant 9.99999974E-6 : f32
        %39 = vector.broadcast %cst_29 : f32 to vector<1x64xf32>
        %40 = arith.addf %37, %39 : vector<1x64xf32>
        %41 = math.rsqrt %40 : vector<1x64xf32>
        %42 = arith.mulf %38, %41 : vector<1x64xf32>
        %c0_30 = arith.constant 0 : index
        %c0_31 = arith.constant 0 : index
        %43 = vector.load %arg5[%c0_30, %c0_31] : memref<1x64xf32, #tpu.memory_space<vmem>>, vector<1x64xf32>
        %44 = arith.mulf %30, %42 : vector<1x64xf32>
        %45 = arith.subf %43, %44 : vector<1x64xf32>
        %c0_32 = arith.constant 0 : index
        %c0_33 = arith.constant 0 : index
        %46 = vector.load %arg17[%c0_32, %c0_33] : memref<1x64xf32, #tpu.memory_space<vmem>>, vector<1x64xf32>
        tpu.vector_store %arg17[%c0_32, %c0_33], %42 {strides = array<i32>} : memref<1x64xf32, #tpu.memory_space<vmem>>, vector<1x64xf32>,
        %c0_34 = arith.constant 0 : index
        %c0_35 = arith.constant 0 : index
        %47 = vector.load %arg18[%c0_34, %c0_35] : memref<1x64xf32, #tpu.memory_space<vmem>>, vector<1x64xf32>
        tpu.vector_store %arg18[%c0_34, %c0_35], %45 {strides = array<i32>} : memref<1x64xf32, #tpu.memory_space<vmem>>, vector<1x64xf32>,
        %c0_36 = arith.constant 0 : index
        %c0_37 = arith.constant 0 : index
        %48 = vector.load %arg9[%c0_36, %c0_37] : memref<1x64xf32, #tpu.memory_space<vmem>>, vector<1x64xf32>
        tpu.vector_store %arg9[%c0_36, %c0_37], %42 {strides = array<i32>} : memref<1x64xf32, #tpu.memory_space<vmem>>, vector<1x64xf32>,
        %c0_38 = arith.constant 0 : index
        %c0_39 = arith.constant 0 : index
        %49 = vector.load %arg10[%c0_38, %c0_39] : memref<1x64xf32, #tpu.memory_space<vmem>>, vector<1x64xf32>
        tpu.vector_store %arg10[%c0_38, %c0_39], %45 {strides = array<i32>} : memref<1x64xf32, #tpu.memory_space<vmem>>, vector<1x64xf32>,
      } else {
      }
    } else {
    }
    %c1_i32 = arith.constant 1 : i32
    %11 = arith.cmpi eq, %arg0, %c1_i32 : i32
    %12 = arith.extui %11 : i1 to i32
    %c0_i32_7 = arith.constant 0 : i32
    %13 = arith.cmpi ne, %12, %c0_i32_7 : i32
    scf.if %13 {
      %c0_8 = arith.constant 0 : index
      %c0_9 = arith.constant 0 : index
      %14 = vector.load %arg17[%c0_8, %c0_9] : memref<1x64xf32, #tpu.memory_space<vmem>>, vector<1x64xf32>
      %15 = vector.broadcast %14 : vector<1x64xf32> to vector<32x64xf32>
      %16 = arith.mulf %7, %15 : vector<32x64xf32>
      %c0_10 = arith.constant 0 : index
      %c0_11 = arith.constant 0 : index
      %17 = vector.load %arg18[%c0_10, %c0_11] : memref<1x64xf32, #tpu.memory_space<vmem>>, vector<1x64xf32>
      %18 = vector.broadcast %17 : vector<1x64xf32> to vector<32x64xf32>
      %19 = arith.addf %16, %18 : vector<32x64xf32>
      %cst_12 = arith.constant 0.000000e+00 : f32
      %20 = vector.broadcast %cst_12 : f32 to vector<32x64xf32>
      %21 = arith.maximumf %19, %20 : vector<32x64xf32>
      %22 = arith.truncf %21 : vector<32x64xf32> to vector<32x64xbf16>
      %c0_13 = arith.constant 0 : index
      %c0_14 = arith.constant 0 : index
      %23 = vector.load %arg6[%c0_13, %c0_14] : memref<64x128xbf16, #tpu.memory_space<vmem>>, vector<64x128xbf16>
      %cst_15 = arith.constant dense<0.000000e+00> : vector<32x128xf32>
      %24 = tpu.matmul %22, %23, %cst_15 {dimension_numbers = #tpu.dot_dimension_numbers<[1], [0], [0], [1], [0, 0, 1, 1], [], []>} : vector<32x64xbf16>, vector<64x128xbf16>, vector<32x128xf32> -> vector<32x128xf32>
      %c0_16 = arith.constant 0 : index
      %c0_17 = arith.constant 0 : index
      %25 = vector.load %arg15[%c0_16, %c0_17] : memref<1x128xf32, #tpu.memory_space<vmem>>, vector<1x128xf32>
      %cst_18 = arith.constant dense<0.000000e+00> : vector<128xf32>
      %26 = vector.multi_reduction <add>, %24, %cst_18 [0] : vector<32x128xf32> to vector<128xf32>
      %27 = vector.shape_cast %26 : vector<128xf32> to vector<1x128xf32>
      %28 = arith.addf %25, %27 : vector<1x128xf32>
      %c0_19 = arith.constant 0 : index
      %c0_20 = arith.constant 0 : index
      %29 = vector.load %arg15[%c0_19, %c0_20] : memref<1x128xf32, #tpu.memory_space<vmem>>, vector<1x128xf32>
      tpu.vector_store %arg15[%c0_19, %c0_20], %28 {strides = array<i32>} : memref<1x128xf32, #tpu.memory_space<vmem>>, vector<1x128xf32>,
      %c0_21 = arith.constant 0 : index
      %c0_22 = arith.constant 0 : index
      %30 = vector.load %arg16[%c0_21, %c0_22] : memref<1x128xf32, #tpu.memory_space<vmem>>, vector<1x128xf32>
      %31 = arith.mulf %24, %24 : vector<32x128xf32>
      %cst_23 = arith.constant dense<0.000000e+00> : vector<128xf32>
      %32 = vector.multi_reduction <add>, %31, %cst_23 [0] : vector<32x128xf32> to vector<128xf32>
      %33 = vector.shape_cast %32 : vector<128xf32> to vector<1x128xf32>
      %34 = arith.addf %30, %33 : vector<1x128xf32>
      %c0_24 = arith.constant 0 : index
      %c0_25 = arith.constant 0 : index
      %35 = vector.load %arg16[%c0_24, %c0_25] : memref<1x128xf32, #tpu.memory_space<vmem>>, vector<1x128xf32>
      tpu.vector_store %arg16[%c0_24, %c0_25], %34 {strides = array<i32>} : memref<1x128xf32, #tpu.memory_space<vmem>>, vector<1x128xf32>,
      %c0_i32_26 = arith.constant 0 : i32
      %36 = arith.cmpi eq, %arg1, %c0_i32_26 : i32
      %37 = arith.extui %36 : i1 to i32
      %c0_i32_27 = arith.constant 0 : i32
      %38 = arith.cmpi ne, %37, %c0_i32_27 : i32
      scf.if %38 {
        %c0_28 = arith.constant 0 : index
        %c0_29 = arith.constant 0 : index
        %39 = vector.load %arg15[%c0_28, %c0_29] : memref<1x128xf32, #tpu.memory_space<vmem>>, vector<1x128xf32>
        %cst_30 = arith.constant 3.125000e-02 : f32
        %40 = vector.broadcast %cst_30 : f32 to vector<1x128xf32>
        %41 = arith.mulf %39, %40 : vector<1x128xf32>
        %c0_31 = arith.constant 0 : index
        %c0_32 = arith.constant 0 : index
        %42 = vector.load %arg16[%c0_31, %c0_32] : memref<1x128xf32, #tpu.memory_space<vmem>>, vector<1x128xf32>
        %cst_33 = arith.constant 3.125000e-02 : f32
        %43 = vector.broadcast %cst_33 : f32 to vector<1x128xf32>
        %44 = arith.mulf %42, %43 : vector<1x128xf32>
        %45 = arith.mulf %41, %41 : vector<1x128xf32>
        %46 = arith.subf %44, %45 : vector<1x128xf32>
        %cst_34 = arith.constant 0.000000e+00 : f32
        %47 = vector.broadcast %cst_34 : f32 to vector<1x128xf32>
        %48 = arith.maximumf %46, %47 : vector<1x128xf32>
        %c0_35 = arith.constant 0 : index
        %c0_36 = arith.constant 0 : index
        %49 = vector.load %arg7[%c0_35, %c0_36] : memref<1x128xf32, #tpu.memory_space<vmem>>, vector<1x128xf32>
        %cst_37 = arith.constant 9.99999974E-6 : f32
        %50 = vector.broadcast %cst_37 : f32 to vector<1x128xf32>
        %51 = arith.addf %48, %50 : vector<1x128xf32>
        %52 = math.rsqrt %51 : vector<1x128xf32>
        %53 = arith.mulf %49, %52 : vector<1x128xf32>
        %c0_38 = arith.constant 0 : index
        %c0_39 = arith.constant 0 : index
        %54 = vector.load %arg11[%c0_38, %c0_39] : memref<1x128xf32, #tpu.memory_space<vmem>>, vector<1x128xf32>
        tpu.vector_store %arg11[%c0_38, %c0_39], %53 {strides = array<i32>} : memref<1x128xf32, #tpu.memory_space<vmem>>, vector<1x128xf32>,
        %c0_40 = arith.constant 0 : index
        %c0_41 = arith.constant 0 : index
        %55 = vector.load %arg8[%c0_40, %c0_41] : memref<1x128xf32, #tpu.memory_space<vmem>>, vector<1x128xf32>
        %56 = arith.mulf %41, %53 : vector<1x128xf32>
        %57 = arith.subf %55, %56 : vector<1x128xf32>
        %c0_42 = arith.constant 0 : index
        %c0_43 = arith.constant 0 : index
        %58 = vector.load %arg12[%c0_42, %c0_43] : memref<1x128xf32, #tpu.memory_space<vmem>>, vector<1x128xf32>
        tpu.vector_store %arg12[%c0_42, %c0_43], %57 {strides = array<i32>} : memref<1x128xf32, #tpu.memory_space<vmem>>, vector<1x128xf32>,
      } else {
      }
    } else {
    }
    return
  }
  func.func @transform_0(%arg0: i32, %arg1: i32) -> (i32, i32) {
    %c0_i32 = arith.constant 0 : i32
    %c0_i32_0 = arith.constant 0 : i32
    return %arg1, %c0_i32 : i32, i32
  }
  func.func @transform_1(%arg0: i32, %arg1: i32) -> (i32, i32) {
    %c0_i32 = arith.constant 0 : i32
    %c0_i32_0 = arith.constant 0 : i32
    %c0_i32_1 = arith.constant 0 : i32
    return %c0_i32, %c0_i32_0 : i32, i32
  }
  func.func @transform_2(%arg0: i32, %arg1: i32) -> (i32, i32) {
    %c0_i32 = arith.constant 0 : i32
    %c0_i32_0 = arith.constant 0 : i32
    %c0_i32_1 = arith.constant 0 : i32
    return %c0_i32, %c0_i32_0 : i32, i32
  }
  func.func @transform_3(%arg0: i32, %arg1: i32) -> (i32, i32) {
    %c0_i32 = arith.constant 0 : i32
    %c0_i32_0 = arith.constant 0 : i32
    %c0_i32_1 = arith.constant 0 : i32
    return %c0_i32, %c0_i32_0 : i32, i32
  }
  func.func @transform_4(%arg0: i32, %arg1: i32) -> (i32, i32) {
    %c0_i32 = arith.constant 0 : i32
    %c0_i32_0 = arith.constant 0 : i32
    %c0_i32_1 = arith.constant 0 : i32
    return %c0_i32, %c0_i32_0 : i32, i32
  }
  func.func @transform_5(%arg0: i32, %arg1: i32) -> (i32, i32) {
    %c0_i32 = arith.constant 0 : i32
    %c0_i32_0 = arith.constant 0 : i32
    %c0_i32_1 = arith.constant 0 : i32
    return %c0_i32, %c0_i32_0 : i32, i32
  }
  func.func @transform_6(%arg0: i32, %arg1: i32) -> (i32, i32) {
    %c0_i32 = arith.constant 0 : i32
    %c0_i32_0 = arith.constant 0 : i32
    %c0_i32_1 = arith.constant 0 : i32
    return %c0_i32, %c0_i32_0 : i32, i32
  }
  func.func @transform_7(%arg0: i32, %arg1: i32) -> (i32, i32) {
    %c0_i32 = arith.constant 0 : i32
    %c0_i32_0 = arith.constant 0 : i32
    %c0_i32_1 = arith.constant 0 : i32
    return %c0_i32, %c0_i32_0 : i32, i32
  }
  func.func @transform_8(%arg0: i32, %arg1: i32) -> (i32, i32) {
    %c0_i32 = arith.constant 0 : i32
    %c0_i32_0 = arith.constant 0 : i32
    %c0_i32_1 = arith.constant 0 : i32
    return %c0_i32, %c0_i32_0 : i32, i32
  }
  func.func @transform_9(%arg0: i32, %arg1: i32) -> (i32, i32) {
    %c0_i32 = arith.constant 0 : i32
    %c0_i32_0 = arith.constant 0 : i32
    %c0_i32_1 = arith.constant 0 : i32
    return %c0_i32, %c0_i32_0 : i32, i32
  }
  func.func @transform_10(%arg0: i32, %arg1: i32) -> (i32, i32) {
    %c0_i32 = arith.constant 0 : i32
    %c0_i32_0 = arith.constant 0 : i32
    %c0_i32_1 = arith.constant 0 : i32
    return %c0_i32, %c0_i32_0 : i32, i32
  }
}

module attributes {stable_mosaic.version = 11 : i64} {
  func.func @fused_kernel(%arg0: i32, %arg1: memref<32x4xbf16, #tpu.memory_space<vmem>>, %arg2: memref<4x64xbf16, #tpu.memory_space<vmem>>, %arg3: memref<1x64xf32, #tpu.memory_space<vmem>>, %arg4: memref<1x64xf32, #tpu.memory_space<vmem>>, %arg5: memref<64x128xbf16, #tpu.memory_space<vmem>>, %arg6: memref<1x128xf32, #tpu.memory_space<vmem>>, %arg7: memref<1x128xf32, #tpu.memory_space<vmem>>, %arg8: memref<128x1024xbf16, #tpu.memory_space<vmem>>, %arg9: memref<1x1024xf32, #tpu.memory_space<vmem>>, %arg10: memref<1x1024xf32, #tpu.memory_space<vmem>>, %arg11: memref<1024x512xbf16, #tpu.memory_space<vmem>>, %arg12: memref<1x512xf32, #tpu.memory_space<vmem>>, %arg13: memref<1x512xf32, #tpu.memory_space<vmem>>, %arg14: memref<512x256xbf16, #tpu.memory_space<vmem>>, %arg15: memref<1x256xf32, #tpu.memory_space<vmem>>, %arg16: memref<1x256xf32, #tpu.memory_space<vmem>>, %arg17: memref<256x16xbf16, #tpu.memory_space<vmem>>, %arg18: memref<1x16xf32, #tpu.memory_space<vmem>>, %arg19: memref<2x16xf32, #tpu.memory_space<vmem>>, %arg20: memref<1x1024xf32, #tpu.memory_space<vmem>>, %arg21: memref<1x1024xf32, #tpu.memory_space<vmem>>, %arg22: memref<2x1024xf32, #tpu.memory_space<vmem>>, %arg23: memref<2x1024xf32, #tpu.memory_space<vmem>>) attributes {dimension_semantics = [#tpu.dimension_semantics<arbitrary>], iteration_bounds = array<i64: 1>, scalar_prefetch = 0 : i64, scratch_operands = 4 : i64, tpu.core_type = #tpu.core_type<tc>, window_params = [{transform_indices = @transform_0, window_bounds = array<i64: 32, 4>}, {pipeline_mode = #tpu.pipeline_mode<synchronous>, transform_indices = @transform_1, window_bounds = array<i64: 4, 64>}, {pipeline_mode = #tpu.pipeline_mode<synchronous>, transform_indices = @transform_2, window_bounds = array<i64: 1, 64>}, {pipeline_mode = #tpu.pipeline_mode<synchronous>, transform_indices = @transform_3, window_bounds = array<i64: 1, 64>}, {pipeline_mode = #tpu.pipeline_mode<synchronous>, transform_indices = @transform_4, window_bounds = array<i64: 64, 128>}, {pipeline_mode = #tpu.pipeline_mode<synchronous>, transform_indices = @transform_5, window_bounds = array<i64: 1, 128>}, {pipeline_mode = #tpu.pipeline_mode<synchronous>, transform_indices = @transform_6, window_bounds = array<i64: 1, 128>}, {pipeline_mode = #tpu.pipeline_mode<synchronous>, transform_indices = @transform_7, window_bounds = array<i64: 128, 1024>}, {pipeline_mode = #tpu.pipeline_mode<synchronous>, transform_indices = @transform_8, window_bounds = array<i64: 1, 1024>}, {pipeline_mode = #tpu.pipeline_mode<synchronous>, transform_indices = @transform_9, window_bounds = array<i64: 1, 1024>}, {pipeline_mode = #tpu.pipeline_mode<synchronous>, transform_indices = @transform_10, window_bounds = array<i64: 1024, 512>}, {pipeline_mode = #tpu.pipeline_mode<synchronous>, transform_indices = @transform_11, window_bounds = array<i64: 1, 512>}, {pipeline_mode = #tpu.pipeline_mode<synchronous>, transform_indices = @transform_12, window_bounds = array<i64: 1, 512>}, {pipeline_mode = #tpu.pipeline_mode<synchronous>, transform_indices = @transform_13, window_bounds = array<i64: 512, 256>}, {pipeline_mode = #tpu.pipeline_mode<synchronous>, transform_indices = @transform_14, window_bounds = array<i64: 1, 256>}, {pipeline_mode = #tpu.pipeline_mode<synchronous>, transform_indices = @transform_15, window_bounds = array<i64: 1, 256>}, {pipeline_mode = #tpu.pipeline_mode<synchronous>, transform_indices = @transform_16, window_bounds = array<i64: 256, 16>}, {pipeline_mode = #tpu.pipeline_mode<synchronous>, transform_indices = @transform_17, window_bounds = array<i64: 1, 16>}, {pipeline_mode = #tpu.pipeline_mode<synchronous>, transform_indices = @transform_18, window_bounds = array<i64: 2, 16>}]} {
    %c0_i32 = arith.constant 0 : i32
    %0 = arith.cmpi eq, %arg0, %c0_i32 : i32
    %1 = arith.extui %0 : i1 to i32
    %c0_i32_0 = arith.constant 0 : i32
    %2 = arith.cmpi ne, %1, %c0_i32_0 : i32
    scf.if %2 {
      %cst_36 = arith.constant 0.000000e+00 : f32
      %50 = vector.broadcast %cst_36 : f32 to vector<1x1024xf32>
      %c0_37 = arith.constant 0 : index
      %c0_38 = arith.constant 0 : index
      %51 = vector.load %arg20[%c0_37, %c0_38] : memref<1x1024xf32, #tpu.memory_space<vmem>>, vector<1x1024xf32>
      tpu.vector_store %arg20[%c0_37, %c0_38], %50 {strides = array<i32>} : memref<1x1024xf32, #tpu.memory_space<vmem>>, vector<1x1024xf32>,
      %cst_39 = arith.constant 0.000000e+00 : f32
      %52 = vector.broadcast %cst_39 : f32 to vector<1x1024xf32>
      %c0_40 = arith.constant 0 : index
      %c0_41 = arith.constant 0 : index
      %53 = vector.load %arg21[%c0_40, %c0_41] : memref<1x1024xf32, #tpu.memory_space<vmem>>, vector<1x1024xf32>
      tpu.vector_store %arg21[%c0_40, %c0_41], %52 {strides = array<i32>} : memref<1x1024xf32, #tpu.memory_space<vmem>>, vector<1x1024xf32>,
      %cst_42 = arith.constant 0xFF800000 : f32
      %54 = vector.broadcast %cst_42 : f32 to vector<2x1024xf32>
      %c0_43 = arith.constant 0 : index
      %c0_44 = arith.constant 0 : index
      %55 = vector.load %arg22[%c0_43, %c0_44] : memref<2x1024xf32, #tpu.memory_space<vmem>>, vector<2x1024xf32>
      tpu.vector_store %arg22[%c0_43, %c0_44], %54 {strides = array<i32>} : memref<2x1024xf32, #tpu.memory_space<vmem>>, vector<2x1024xf32>,
      %cst_45 = arith.constant 0x7F800000 : f32
      %56 = vector.broadcast %cst_45 : f32 to vector<2x1024xf32>
      %c0_46 = arith.constant 0 : index
      %c0_47 = arith.constant 0 : index
      %57 = vector.load %arg23[%c0_46, %c0_47] : memref<2x1024xf32, #tpu.memory_space<vmem>>, vector<2x1024xf32>
      tpu.vector_store %arg23[%c0_46, %c0_47], %56 {strides = array<i32>} : memref<2x1024xf32, #tpu.memory_space<vmem>>, vector<2x1024xf32>,
    } else {
    }
    %c0 = arith.constant 0 : index
    %c0_1 = arith.constant 0 : index
    %3 = vector.load %arg1[%c0, %c0_1] : memref<32x4xbf16, #tpu.memory_space<vmem>>, vector<32x4xbf16>
    %c0_2 = arith.constant 0 : index
    %c0_3 = arith.constant 0 : index
    %4 = vector.load %arg2[%c0_2, %c0_3] : memref<4x64xbf16, #tpu.memory_space<vmem>>, vector<4x64xbf16>
    %cst = arith.constant dense<0.000000e+00> : vector<32x64xf32>
    %5 = tpu.matmul %3, %4, %cst {dimension_numbers = #tpu.dot_dimension_numbers<[1], [0], [0], [1], [0, 0, 1, 1], [], []>} : vector<32x4xbf16>, vector<4x64xbf16>, vector<32x64xf32> -> vector<32x64xf32>
    %c0_4 = arith.constant 0 : index
    %c0_5 = arith.constant 0 : index
    %6 = vector.load %arg3[%c0_4, %c0_5] : memref<1x64xf32, #tpu.memory_space<vmem>>, vector<1x64xf32>
    %7 = vector.broadcast %6 : vector<1x64xf32> to vector<32x64xf32>
    %8 = arith.mulf %5, %7 : vector<32x64xf32>
    %c0_6 = arith.constant 0 : index
    %c0_7 = arith.constant 0 : index
    %9 = vector.load %arg4[%c0_6, %c0_7] : memref<1x64xf32, #tpu.memory_space<vmem>>, vector<1x64xf32>
    %10 = vector.broadcast %9 : vector<1x64xf32> to vector<32x64xf32>
    %11 = arith.addf %8, %10 : vector<32x64xf32>
    %cst_8 = arith.constant 0.000000e+00 : f32
    %12 = vector.broadcast %cst_8 : f32 to vector<32x64xf32>
    %13 = arith.maximumf %11, %12 : vector<32x64xf32>
    %14 = arith.truncf %13 : vector<32x64xf32> to vector<32x64xbf16>
    %c0_9 = arith.constant 0 : index
    %c0_10 = arith.constant 0 : index
    %15 = vector.load %arg5[%c0_9, %c0_10] : memref<64x128xbf16, #tpu.memory_space<vmem>>, vector<64x128xbf16>
    %cst_11 = arith.constant dense<0.000000e+00> : vector<32x128xf32>
    %16 = tpu.matmul %14, %15, %cst_11 {dimension_numbers = #tpu.dot_dimension_numbers<[1], [0], [0], [1], [0, 0, 1, 1], [], []>} : vector<32x64xbf16>, vector<64x128xbf16>, vector<32x128xf32> -> vector<32x128xf32>
    %c0_12 = arith.constant 0 : index
    %c0_13 = arith.constant 0 : index
    %17 = vector.load %arg6[%c0_12, %c0_13] : memref<1x128xf32, #tpu.memory_space<vmem>>, vector<1x128xf32>
    %18 = vector.broadcast %17 : vector<1x128xf32> to vector<32x128xf32>
    %19 = arith.mulf %16, %18 : vector<32x128xf32>
    %c0_14 = arith.constant 0 : index
    %c0_15 = arith.constant 0 : index
    %20 = vector.load %arg7[%c0_14, %c0_15] : memref<1x128xf32, #tpu.memory_space<vmem>>, vector<1x128xf32>
    %21 = vector.broadcast %20 : vector<1x128xf32> to vector<32x128xf32>
    %22 = arith.addf %19, %21 : vector<32x128xf32>
    %cst_16 = arith.constant 0.000000e+00 : f32
    %23 = vector.broadcast %cst_16 : f32 to vector<32x128xf32>
    %24 = arith.maximumf %22, %23 : vector<32x128xf32>
    %25 = arith.truncf %24 : vector<32x128xf32> to vector<32x128xbf16>
    %c0_17 = arith.constant 0 : index
    %c0_18 = arith.constant 0 : index
    %26 = vector.load %arg8[%c0_17, %c0_18] : memref<128x1024xbf16, #tpu.memory_space<vmem>>, vector<128x1024xbf16>
    %cst_19 = arith.constant dense<0.000000e+00> : vector<32x1024xf32>
    %27 = tpu.matmul %25, %26, %cst_19 {dimension_numbers = #tpu.dot_dimension_numbers<[1], [0], [0], [1], [0, 0, 1, 1], [], []>} : vector<32x128xbf16>, vector<128x1024xbf16>, vector<32x1024xf32> -> vector<32x1024xf32>
    %c0_20 = arith.constant 0 : index
    %c0_21 = arith.constant 0 : index
    %28 = vector.load %arg20[%c0_20, %c0_21] : memref<1x1024xf32, #tpu.memory_space<vmem>>, vector<1x1024xf32>
    %cst_22 = arith.constant dense<0.000000e+00> : vector<1024xf32>
    %29 = vector.multi_reduction <add>, %27, %cst_22 [0] : vector<32x1024xf32> to vector<1024xf32>
    %30 = vector.shape_cast %29 : vector<1024xf32> to vector<1x1024xf32>
    %31 = arith.addf %28, %30 : vector<1x1024xf32>
    %c0_23 = arith.constant 0 : index
    %c0_24 = arith.constant 0 : index
    %32 = vector.load %arg20[%c0_23, %c0_24] : memref<1x1024xf32, #tpu.memory_space<vmem>>, vector<1x1024xf32>
    tpu.vector_store %arg20[%c0_23, %c0_24], %31 {strides = array<i32>} : memref<1x1024xf32, #tpu.memory_space<vmem>>, vector<1x1024xf32>,
    %c0_25 = arith.constant 0 : index
    %c0_26 = arith.constant 0 : index
    %33 = vector.load %arg21[%c0_25, %c0_26] : memref<1x1024xf32, #tpu.memory_space<vmem>>, vector<1x1024xf32>
    %34 = arith.mulf %27, %27 : vector<32x1024xf32>
    %cst_27 = arith.constant dense<0.000000e+00> : vector<1024xf32>
    %35 = vector.multi_reduction <add>, %34, %cst_27 [0] : vector<32x1024xf32> to vector<1024xf32>
    %36 = vector.shape_cast %35 : vector<1024xf32> to vector<1x1024xf32>
    %37 = arith.addf %33, %36 : vector<1x1024xf32>
    %c0_28 = arith.constant 0 : index
    %c0_29 = arith.constant 0 : index
    %38 = vector.load %arg21[%c0_28, %c0_29] : memref<1x1024xf32, #tpu.memory_space<vmem>>, vector<1x1024xf32>
    tpu.vector_store %arg21[%c0_28, %c0_29], %37 {strides = array<i32>} : memref<1x1024xf32, #tpu.memory_space<vmem>>, vector<1x1024xf32>,
    %c2_i32 = arith.constant 2 : i32
    %39 = arith.muli %arg0, %c2_i32 : i32
    %40 = vector.shape_cast %27 : vector<32x1024xf32> to vector<2x16x1024xf32>
    %cst_30 = arith.constant dense<0xFF800000> : vector<2x1024xf32>
    %41 = vector.multi_reduction <maximumf>, %40, %cst_30 [1] : vector<2x16x1024xf32> to vector<2x1024xf32>
    %42 = arith.index_cast %39 : i32 to index
    %c0_31 = arith.constant 0 : index
    %43 = vector.load %arg22[%42, %c0_31] : memref<2x1024xf32, #tpu.memory_space<vmem>>, vector<2x1024xf32>
    tpu.vector_store %arg22[%42, %c0_31], %41 {strides = array<i32>} : memref<2x1024xf32, #tpu.memory_space<vmem>>, vector<2x1024xf32>,
    %cst_32 = arith.constant dense<0x7F800000> : vector<2x1024xf32>
    %44 = vector.multi_reduction <minimumf>, %40, %cst_32 [1] : vector<2x16x1024xf32> to vector<2x1024xf32>
    %45 = arith.index_cast %39 : i32 to index
    %c0_33 = arith.constant 0 : index
    %46 = vector.load %arg23[%45, %c0_33] : memref<2x1024xf32, #tpu.memory_space<vmem>>, vector<2x1024xf32>
    tpu.vector_store %arg23[%45, %c0_33], %44 {strides = array<i32>} : memref<2x1024xf32, #tpu.memory_space<vmem>>, vector<2x1024xf32>,
    %c0_i32_34 = arith.constant 0 : i32
    %47 = arith.cmpi eq, %arg0, %c0_i32_34 : i32
    %48 = arith.extui %47 : i1 to i32
    %c0_i32_35 = arith.constant 0 : i32
    %49 = arith.cmpi ne, %48, %c0_i32_35 : i32
    scf.if %49 {
      %c0_36 = arith.constant 0 : index
      %c0_37 = arith.constant 0 : index
      %50 = vector.load %arg20[%c0_36, %c0_37] : memref<1x1024xf32, #tpu.memory_space<vmem>>, vector<1x1024xf32>
      %cst_38 = arith.constant 3.125000e-02 : f32
      %51 = vector.broadcast %cst_38 : f32 to vector<1x1024xf32>
      %52 = arith.mulf %50, %51 : vector<1x1024xf32>
      %c0_39 = arith.constant 0 : index
      %c0_40 = arith.constant 0 : index
      %53 = vector.load %arg21[%c0_39, %c0_40] : memref<1x1024xf32, #tpu.memory_space<vmem>>, vector<1x1024xf32>
      %cst_41 = arith.constant 3.125000e-02 : f32
      %54 = vector.broadcast %cst_41 : f32 to vector<1x1024xf32>
      %55 = arith.mulf %53, %54 : vector<1x1024xf32>
      %56 = arith.mulf %52, %52 : vector<1x1024xf32>
      %57 = arith.subf %55, %56 : vector<1x1024xf32>
      %cst_42 = arith.constant 0.000000e+00 : f32
      %58 = vector.broadcast %cst_42 : f32 to vector<1x1024xf32>
      %59 = arith.maximumf %57, %58 : vector<1x1024xf32>
      %c0_43 = arith.constant 0 : index
      %c0_44 = arith.constant 0 : index
      %60 = vector.load %arg9[%c0_43, %c0_44] : memref<1x1024xf32, #tpu.memory_space<vmem>>, vector<1x1024xf32>
      %cst_45 = arith.constant 9.99999974E-6 : f32
      %61 = vector.broadcast %cst_45 : f32 to vector<1x1024xf32>
      %62 = arith.addf %59, %61 : vector<1x1024xf32>
      %63 = math.rsqrt %62 : vector<1x1024xf32>
      %64 = arith.mulf %60, %63 : vector<1x1024xf32>
      %c0_46 = arith.constant 0 : index
      %c0_47 = arith.constant 0 : index
      %65 = vector.load %arg10[%c0_46, %c0_47] : memref<1x1024xf32, #tpu.memory_space<vmem>>, vector<1x1024xf32>
      %66 = arith.mulf %52, %64 : vector<1x1024xf32>
      %67 = arith.subf %65, %66 : vector<1x1024xf32>
      %cst_48 = arith.constant 0.000000e+00 : f32
      %68 = vector.broadcast %cst_48 : f32 to vector<1x1024xf32>
      %69 = arith.cmpf oge, %64, %68 : vector<1x1024xf32>
      %c0_49 = arith.constant 0 : index
      %c0_50 = arith.constant 0 : index
      %70 = vector.load %arg22[%c0_49, %c0_50] : memref<2x1024xf32, #tpu.memory_space<vmem>>, vector<2x1024xf32>
      %c0_51 = arith.constant 0 : index
      %c0_52 = arith.constant 0 : index
      %71 = vector.load %arg23[%c0_51, %c0_52] : memref<2x1024xf32, #tpu.memory_space<vmem>>, vector<2x1024xf32>
      %72 = vector.shape_cast %69 : vector<1x1024xi1> to vector<1x1024xi1>
      %73 = vector.broadcast %72 : vector<1x1024xi1> to vector<2x1024xi1>
      %74 = arith.select %73, %70, %71 : vector<2x1024xi1>, vector<2x1024xf32>
      %75 = vector.broadcast %64 : vector<1x1024xf32> to vector<2x1024xf32>
      %76 = arith.mulf %74, %75 : vector<2x1024xf32>
      %77 = vector.broadcast %67 : vector<1x1024xf32> to vector<2x1024xf32>
      %78 = arith.addf %76, %77 : vector<2x1024xf32>
      %cst_53 = arith.constant 0.000000e+00 : f32
      %79 = vector.broadcast %cst_53 : f32 to vector<2x1024xf32>
      %80 = arith.maximumf %78, %79 : vector<2x1024xf32>
      %81 = arith.truncf %80 : vector<2x1024xf32> to vector<2x1024xbf16>
      %c0_54 = arith.constant 0 : index
      %c0_55 = arith.constant 0 : index
      %82 = vector.load %arg11[%c0_54, %c0_55] : memref<1024x512xbf16, #tpu.memory_space<vmem>>, vector<1024x512xbf16>
      %cst_56 = arith.constant dense<0.000000e+00> : vector<2x512xf32>
      %83 = tpu.matmul %81, %82, %cst_56 {dimension_numbers = #tpu.dot_dimension_numbers<[1], [0], [0], [1], [0, 0, 1, 1], [], []>} : vector<2x1024xbf16>, vector<1024x512xbf16>, vector<2x512xf32> -> vector<2x512xf32>
      %c0_57 = arith.constant 0 : index
      %c0_58 = arith.constant 0 : index
      %84 = vector.load %arg12[%c0_57, %c0_58] : memref<1x512xf32, #tpu.memory_space<vmem>>, vector<1x512xf32>
      %c0_59 = arith.constant 0 : index
      %c0_60 = arith.constant 0 : index
      %85 = vector.load %arg13[%c0_59, %c0_60] : memref<1x512xf32, #tpu.memory_space<vmem>>, vector<1x512xf32>
      %cst_61 = arith.constant dense<0.000000e+00> : vector<512xf32>
      %86 = vector.multi_reduction <add>, %83, %cst_61 [0] : vector<2x512xf32> to vector<512xf32>
      %87 = vector.shape_cast %86 : vector<512xf32> to vector<1x512xf32>
      %cst_62 = arith.constant 5.000000e-01 : f32
      %88 = vector.broadcast %cst_62 : f32 to vector<1x512xf32>
      %89 = arith.mulf %87, %88 : vector<1x512xf32>
      %90 = arith.mulf %83, %83 : vector<2x512xf32>
      %cst_63 = arith.constant dense<0.000000e+00> : vector<512xf32>
      %91 = vector.multi_reduction <add>, %90, %cst_63 [0] : vector<2x512xf32> to vector<512xf32>
      %92 = vector.shape_cast %91 : vector<512xf32> to vector<1x512xf32>
      %cst_64 = arith.constant 5.000000e-01 : f32
      %93 = vector.broadcast %cst_64 : f32 to vector<1x512xf32>
      %94 = arith.mulf %92, %93 : vector<1x512xf32>
      %95 = arith.mulf %89, %89 : vector<1x512xf32>
      %96 = arith.subf %94, %95 : vector<1x512xf32>
      %cst_65 = arith.constant 0.000000e+00 : f32
      %97 = vector.broadcast %cst_65 : f32 to vector<1x512xf32>
      %98 = arith.maximumf %96, %97 : vector<1x512xf32>
      %cst_66 = arith.constant 9.99999974E-6 : f32
      %99 = vector.broadcast %cst_66 : f32 to vector<1x512xf32>
      %100 = arith.addf %98, %99 : vector<1x512xf32>
      %101 = math.rsqrt %100 : vector<1x512xf32>
      %102 = arith.mulf %84, %101 : vector<1x512xf32>
      %103 = arith.mulf %89, %102 : vector<1x512xf32>
      %104 = arith.subf %85, %103 : vector<1x512xf32>
      %105 = vector.broadcast %102 : vector<1x512xf32> to vector<2x512xf32>
      %106 = arith.mulf %83, %105 : vector<2x512xf32>
      %107 = vector.broadcast %104 : vector<1x512xf32> to vector<2x512xf32>
      %108 = arith.addf %106, %107 : vector<2x512xf32>
      %cst_67 = arith.constant 0.000000e+00 : f32
      %109 = vector.broadcast %cst_67 : f32 to vector<2x512xf32>
      %110 = arith.maximumf %108, %109 : vector<2x512xf32>
      %111 = arith.truncf %110 : vector<2x512xf32> to vector<2x512xbf16>
      %c0_68 = arith.constant 0 : index
      %c0_69 = arith.constant 0 : index
      %112 = vector.load %arg14[%c0_68, %c0_69] : memref<512x256xbf16, #tpu.memory_space<vmem>>, vector<512x256xbf16>
      %cst_70 = arith.constant dense<0.000000e+00> : vector<2x256xf32>
      %113 = tpu.matmul %111, %112, %cst_70 {dimension_numbers = #tpu.dot_dimension_numbers<[1], [0], [0], [1], [0, 0, 1, 1], [], []>} : vector<2x512xbf16>, vector<512x256xbf16>, vector<2x256xf32> -> vector<2x256xf32>
      %c0_71 = arith.constant 0 : index
      %c0_72 = arith.constant 0 : index
      %114 = vector.load %arg15[%c0_71, %c0_72] : memref<1x256xf32, #tpu.memory_space<vmem>>, vector<1x256xf32>
      %c0_73 = arith.constant 0 : index
      %c0_74 = arith.constant 0 : index
      %115 = vector.load %arg16[%c0_73, %c0_74] : memref<1x256xf32, #tpu.memory_space<vmem>>, vector<1x256xf32>
      %cst_75 = arith.constant dense<0.000000e+00> : vector<256xf32>
      %116 = vector.multi_reduction <add>, %113, %cst_75 [0] : vector<2x256xf32> to vector<256xf32>
      %117 = vector.shape_cast %116 : vector<256xf32> to vector<1x256xf32>
      %cst_76 = arith.constant 5.000000e-01 : f32
      %118 = vector.broadcast %cst_76 : f32 to vector<1x256xf32>
      %119 = arith.mulf %117, %118 : vector<1x256xf32>
      %120 = arith.mulf %113, %113 : vector<2x256xf32>
      %cst_77 = arith.constant dense<0.000000e+00> : vector<256xf32>
      %121 = vector.multi_reduction <add>, %120, %cst_77 [0] : vector<2x256xf32> to vector<256xf32>
      %122 = vector.shape_cast %121 : vector<256xf32> to vector<1x256xf32>
      %cst_78 = arith.constant 5.000000e-01 : f32
      %123 = vector.broadcast %cst_78 : f32 to vector<1x256xf32>
      %124 = arith.mulf %122, %123 : vector<1x256xf32>
      %125 = arith.mulf %119, %119 : vector<1x256xf32>
      %126 = arith.subf %124, %125 : vector<1x256xf32>
      %cst_79 = arith.constant 0.000000e+00 : f32
      %127 = vector.broadcast %cst_79 : f32 to vector<1x256xf32>
      %128 = arith.maximumf %126, %127 : vector<1x256xf32>
      %cst_80 = arith.constant 9.99999974E-6 : f32
      %129 = vector.broadcast %cst_80 : f32 to vector<1x256xf32>
      %130 = arith.addf %128, %129 : vector<1x256xf32>
      %131 = math.rsqrt %130 : vector<1x256xf32>
      %132 = arith.mulf %114, %131 : vector<1x256xf32>
      %133 = arith.mulf %119, %132 : vector<1x256xf32>
      %134 = arith.subf %115, %133 : vector<1x256xf32>
      %135 = vector.broadcast %132 : vector<1x256xf32> to vector<2x256xf32>
      %136 = arith.mulf %113, %135 : vector<2x256xf32>
      %137 = vector.broadcast %134 : vector<1x256xf32> to vector<2x256xf32>
      %138 = arith.addf %136, %137 : vector<2x256xf32>
      %cst_81 = arith.constant 0.000000e+00 : f32
      %139 = vector.broadcast %cst_81 : f32 to vector<2x256xf32>
      %140 = arith.maximumf %138, %139 : vector<2x256xf32>
      %141 = arith.truncf %140 : vector<2x256xf32> to vector<2x256xbf16>
      %c0_82 = arith.constant 0 : index
      %c0_83 = arith.constant 0 : index
      %142 = vector.load %arg17[%c0_82, %c0_83] : memref<256x16xbf16, #tpu.memory_space<vmem>>, vector<256x16xbf16>
      %cst_84 = arith.constant dense<0.000000e+00> : vector<2x16xf32>
      %143 = tpu.matmul %141, %142, %cst_84 {dimension_numbers = #tpu.dot_dimension_numbers<[1], [0], [0], [1], [0, 0, 1, 1], [], []>} : vector<2x256xbf16>, vector<256x16xbf16>, vector<2x16xf32> -> vector<2x16xf32>
      %c0_85 = arith.constant 0 : index
      %c0_86 = arith.constant 0 : index
      %144 = vector.load %arg18[%c0_85, %c0_86] : memref<1x16xf32, #tpu.memory_space<vmem>>, vector<1x16xf32>
      %145 = vector.broadcast %144 : vector<1x16xf32> to vector<2x16xf32>
      %146 = arith.addf %143, %145 : vector<2x16xf32>
      %c0_87 = arith.constant 0 : index
      %c0_88 = arith.constant 0 : index
      %147 = vector.load %arg19[%c0_87, %c0_88] : memref<2x16xf32, #tpu.memory_space<vmem>>, vector<2x16xf32>
      tpu.vector_store %arg19[%c0_87, %c0_88], %146 {strides = array<i32>} : memref<2x16xf32, #tpu.memory_space<vmem>>, vector<2x16xf32>,
    } else {
    }
    return
  }
  func.func @transform_0(%arg0: i32) -> (i32, i32) {
    %c0_i32 = arith.constant 0 : i32
    %c0_i32_0 = arith.constant 0 : i32
    return %arg0, %c0_i32 : i32, i32
  }
  func.func @transform_1(%arg0: i32) -> (i32, i32) {
    %c0_i32 = arith.constant 0 : i32
    %c0_i32_0 = arith.constant 0 : i32
    %c0_i32_1 = arith.constant 0 : i32
    return %c0_i32, %c0_i32_0 : i32, i32
  }
  func.func @transform_2(%arg0: i32) -> (i32, i32) {
    %c0_i32 = arith.constant 0 : i32
    %c0_i32_0 = arith.constant 0 : i32
    %c0_i32_1 = arith.constant 0 : i32
    return %c0_i32, %c0_i32_0 : i32, i32
  }
  func.func @transform_3(%arg0: i32) -> (i32, i32) {
    %c0_i32 = arith.constant 0 : i32
    %c0_i32_0 = arith.constant 0 : i32
    %c0_i32_1 = arith.constant 0 : i32
    return %c0_i32, %c0_i32_0 : i32, i32
  }
  func.func @transform_4(%arg0: i32) -> (i32, i32) {
    %c0_i32 = arith.constant 0 : i32
    %c0_i32_0 = arith.constant 0 : i32
    %c0_i32_1 = arith.constant 0 : i32
    return %c0_i32, %c0_i32_0 : i32, i32
  }
  func.func @transform_5(%arg0: i32) -> (i32, i32) {
    %c0_i32 = arith.constant 0 : i32
    %c0_i32_0 = arith.constant 0 : i32
    %c0_i32_1 = arith.constant 0 : i32
    return %c0_i32, %c0_i32_0 : i32, i32
  }
  func.func @transform_6(%arg0: i32) -> (i32, i32) {
    %c0_i32 = arith.constant 0 : i32
    %c0_i32_0 = arith.constant 0 : i32
    %c0_i32_1 = arith.constant 0 : i32
    return %c0_i32, %c0_i32_0 : i32, i32
  }
  func.func @transform_7(%arg0: i32) -> (i32, i32) {
    %c0_i32 = arith.constant 0 : i32
    %c0_i32_0 = arith.constant 0 : i32
    %c0_i32_1 = arith.constant 0 : i32
    return %c0_i32, %c0_i32_0 : i32, i32
  }
  func.func @transform_8(%arg0: i32) -> (i32, i32) {
    %c0_i32 = arith.constant 0 : i32
    %c0_i32_0 = arith.constant 0 : i32
    %c0_i32_1 = arith.constant 0 : i32
    return %c0_i32, %c0_i32_0 : i32, i32
  }
  func.func @transform_9(%arg0: i32) -> (i32, i32) {
    %c0_i32 = arith.constant 0 : i32
    %c0_i32_0 = arith.constant 0 : i32
    %c0_i32_1 = arith.constant 0 : i32
    return %c0_i32, %c0_i32_0 : i32, i32
  }
  func.func @transform_10(%arg0: i32) -> (i32, i32) {
    %c0_i32 = arith.constant 0 : i32
    %c0_i32_0 = arith.constant 0 : i32
    %c0_i32_1 = arith.constant 0 : i32
    return %c0_i32, %c0_i32_0 : i32, i32
  }
  func.func @transform_11(%arg0: i32) -> (i32, i32) {
    %c0_i32 = arith.constant 0 : i32
    %c0_i32_0 = arith.constant 0 : i32
    %c0_i32_1 = arith.constant 0 : i32
    return %c0_i32, %c0_i32_0 : i32, i32
  }
  func.func @transform_12(%arg0: i32) -> (i32, i32) {
    %c0_i32 = arith.constant 0 : i32
    %c0_i32_0 = arith.constant 0 : i32
    %c0_i32_1 = arith.constant 0 : i32
    return %c0_i32, %c0_i32_0 : i32, i32
  }
  func.func @transform_13(%arg0: i32) -> (i32, i32) {
    %c0_i32 = arith.constant 0 : i32
    %c0_i32_0 = arith.constant 0 : i32
    %c0_i32_1 = arith.constant 0 : i32
    return %c0_i32, %c0_i32_0 : i32, i32
  }
  func.func @transform_14(%arg0: i32) -> (i32, i32) {
    %c0_i32 = arith.constant 0 : i32
    %c0_i32_0 = arith.constant 0 : i32
    %c0_i32_1 = arith.constant 0 : i32
    return %c0_i32, %c0_i32_0 : i32, i32
  }
  func.func @transform_15(%arg0: i32) -> (i32, i32) {
    %c0_i32 = arith.constant 0 : i32
    %c0_i32_0 = arith.constant 0 : i32
    %c0_i32_1 = arith.constant 0 : i32
    return %c0_i32, %c0_i32_0 : i32, i32
  }
  func.func @transform_16(%arg0: i32) -> (i32, i32) {
    %c0_i32 = arith.constant 0 : i32
    %c0_i32_0 = arith.constant 0 : i32
    %c0_i32_1 = arith.constant 0 : i32
    return %c0_i32, %c0_i32_0 : i32, i32
  }
  func.func @transform_17(%arg0: i32) -> (i32, i32) {
    %c0_i32 = arith.constant 0 : i32
    %c0_i32_0 = arith.constant 0 : i32
    %c0_i32_1 = arith.constant 0 : i32
    return %c0_i32, %c0_i32_0 : i32, i32
  }
  func.func @transform_18(%arg0: i32) -> (i32, i32) {
    %c0_i32 = arith.constant 0 : i32
    %c0_i32_0 = arith.constant 0 : i32
    %c0_i32_1 = arith.constant 0 : i32
    return %c0_i32, %c0_i32_0 : i32, i32
  }
}

</mosaic_0001>

<bundles_post_ra>
// kernel: tnet_forward.2
= control target key start
LH: loop header
LB: loop body
LE: loop exit
PB: predicated region body
PF: predicated region fallthrough
CT: control target
= control target key end

     0   :  { %16 = vsyncpa [#allocation9], 0  ;;  %s1268_s0 = inlined_call_operand.vmem [shape: bf16[32,4], index: 0, kind: input, shape index: {}]   ;;  %s1269_s1 = inlined_call_operand.vmem [shape: bf16[4,64], index: 1, kind: input, shape index: {}]   ;;  %s1270_s2 = inlined_call_operand.hbm [shape: f32[1,64], index: 2, kind: input, shape index: {}]   ;;  %s1271_s3 = inlined_call_operand.hbm [shape: f32[1,64], index: 3, kind: input, shape index: {}]   ;;  %s1272_s4 = inlined_call_operand.vmem [shape: bf16[64,128], index: 4, kind: input, shape index: {}]   ;;  %s1273_s5 = inlined_call_operand.hbm [shape: f32[1,128], index: 5, kind: input, shape index: {}]   ;;  %s1274_s6 = inlined_call_operand.hbm [shape: f32[1,128], index: 6, kind: input, shape index: {}]   ;;  %s1275_s7 = inlined_call_operand.vmem [shape: f32[1,64], index: 7, kind: output, shape index: {0}]   ;;  %s1276_s8 = inlined_call_operand.vmem [shape: f32[1,64], index: 8, kind: output, shape index: {1}]   ;;  %s1277_s9 = inlined_call_operand.vmem [shape: f32[1,128], index: 9, kind: output, shape index: {2}]   ;;  %s1278_s10 = inlined_call_operand.vmem [shape: f32[1,128], index: 10, kind: output, shape index: {3}]  }
   0x1   :  { %17 = vsyncpa [#allocation11], 0 }
   0x2   :  { %18 = vsyncpa [#allocation14], 0  ;;  %s1122_s13 = smov 0   ;;  %s1124_s14 = smov 0  }
   0x3   :  { %s1126_s15 = smov 0  }
   0x4 LB: > { %s313_s18 = sshll.u32 %s1271_s3, 4  ;;  %s777_s19 = sadd.s32 4294967295, %s1060_s15   ;;  %s1060_s15 = sphi %s1126_s15, %s24_s15   ;;  %s1056_s14 = sphi %s1124_s14, %s1283_s14   ;;  %s1052_s13 = sphi %s1122_s13, %s1282_s13   ;;  %s314_s18 = int_to_ptr.hbm [resolvable:$true] %s313_s18 }
   0x5   : > { %p778_p0 = scmp.ge.s32.totalorder %s1060_s15, 1  ;;  %p277_p1 = scmp.lt.s32.totalorder %s1060_s15, 3 }
   0x6   : > { %p1143_p2 = scmp.eq.s32.totalorder %s777_s19, 0  ;;  %s1062_s22 = smov [#allocation10]  }
   0x7   : > { %p1147_p3 = pnand %p778_p0, %p277_p1  ;;  %s315_s23 = sshll.u32 %s1062_s22, 4  ;;  %s316_s23 = int_to_ptr.vmem [resolvable:$true] %s315_s23 }
   0x8   : > { %s36_s25 = sadd.s32 1, %s1056_s14  ;;  %s301_s28 = sshll.u32 %s1270_s2, 4  ;;  %s302_s28 = int_to_ptr.hbm [resolvable:$true] %s301_s28 }
   0x9   : > { %p850_p4 = pneg %p1147_p3  ;;  %p38_p6 = scmp.ge.s32.totalorder %s36_s25, 2 }
   0xa   : > { %s328_s11 = sshll.u32 %s1273_s5, 4  ;;  %s1063_s12 = smov [#allocation8]   ;;  %s329_s11 = int_to_ptr.hbm [resolvable:$true] %s328_s11 }
   0xb   : > { %p1155_p5 = pnand %p1143_p2, %p850_p4  ;;  %s1285_s25 = smov (%p38_p6, %s36_s25), 0 }
   0xc   : > { %s303_s16 = sshll.u32 %s1063_s12, 4  ;;  %s1064_s17 = smov [#allocation12]   ;;  %s304_s16 = int_to_ptr.vmem [resolvable:$true] %s303_s16 }
   0xd   : > { %856 = dma.hbm_to_vmem [thread:$0]  (!%p1155_p5), %s314_s18, 16, %s316_s23, [#allocation11]  }
   0xe   : > { %853 = dma.hbm_to_vmem [thread:$0]  (!%p1155_p5), %s302_s28, 16, %s304_s16, [#allocation9]  }
   0xf   : > { %s330_s19 = sshll.u32 %s1064_s17, 4  ;;  %s340_s27 = sshll.u32 %s1274_s6, 4  ;;  %s331_s19 = int_to_ptr.vmem [resolvable:$true] %s330_s19  ;;  %s341_s27 = int_to_ptr.hbm [resolvable:$true] %s340_s27 }
  0x10   : > { %859 = dma.hbm_to_vmem [thread:$0]  (!%p1155_p5), %s329_s11, 16, %s331_s19, [#allocation11]  }
  0x11   : > { %s1065_s18 = smov [#allocation13]   ;;  %355 = sbr.rel (%p1147_p3) target bundleno = 459 (0x1cb), region = 48 }
  0x12   : > { %s342_s23 = sshll.u32 %s1065_s18, 4  ;;  %s343_s23 = int_to_ptr.vmem [resolvable:$true] %s342_s23 }
  0x13   : > { %862 = dma.hbm_to_vmem [thread:$0]  (!%p1155_p5), %s341_s27, 16, %s343_s23, [#allocation14]  }
  0x16   : > { %1039 = dma.done.wait (%p1143_p2), [#allocation9], 16  }
  0x17   : > { %1041 = vsyncadd (%p1143_p2), [#allocation9], 4294967280 }
  0x18   : > { %1043 = dma.done.wait (%p1143_p2), [#allocation11], 32  }
  0x19   : > { %1045 = vsyncadd (%p1143_p2), [#allocation11], 4294967264 }
  0x1a   : > { %1047 = dma.done.wait (%p1143_p2), [#allocation14], 16  }
  0x1b   : > { %1049 = vsyncadd (%p1143_p2), [#allocation14], 4294967280  ;;  %p411_p7 = scmp.eq.s32.totalorder %s1052_s13, 0 }
  0x1c   : > { %vm417_vm0 = vcmask (%p411_p7), 516096   ;;  %v1066_v0 = vmov (%p411_p7), 0.0  }
  0x1d   : > { %416 = sbr.rel (!%p411_p7) target bundleno = 34 (0x22), region = 68  ;;  %418 = vst.msk [vmem:[#allocation2] sm:$0x1] (%p411_p7), %vm417_vm0, %v1066_v0 }
  0x1e   : > { %419 = vst.msk [vmem:[#allocation3] sm:$0x1] (%p411_p7), %vm417_vm0, %v1066_v0 }
  0x1f   : > { %420 = vst [vmem:[#allocation4] sm:$0x1] (%p411_p7), %v1066_v0 }
  0x20   : > { %421 = vst [vmem:[#allocation5] sm:$0x1] (%p411_p7), %v1066_v0 }
  0x22 PF: > { %v426_v1 = vld [vmem:[%s1269_s1] sm:$0x3]  ;;  %vm444_vm1 = vcmask 1041408   ;;  %v824_v4 = vld [vmem:[%s1268_s0 + $0x8] sm:$0xff]  ;;  %vm437_vm2 = vcmask 31744   ;;  %p800_p8 = scmp.ne.s32.totalorder %s1052_s13, 0 }
  0x23   : > { %v446_v2 = vsel %vm444_vm1, %v426_v1, 0  ;;  %v823_v3 = vld [vmem:[%s1268_s0] sm:$0xff] }
  0x24   : > { %455 = vmatpush.bf16.msra.mxu0 %v446_v2  ;;  %829 = vmatpush.bf16.msra.mxu1 %v446_v2 }
  0x27   : > { %798 = vmatmul.msk.bf16.vlgmr.msra.gmra.mxu0 %vm437_vm2, %v823_v3  ;;  %799 = vmatmul.msk.bf16.vlgmr.msra.gmra.mxu1 %vm437_vm2, %v824_v4 }
  0xa4   : > { %v1203_v5 = vpop.f32.mrf.mxu0  ;;  %v1205_v6 = vpop.f32.mrf.mxu1 }
  0xa8   : > { %469 = sbr.rel (%p800_p8) target bundleno = 239 (0xef), region = 72 }
  0xac   : > { %v1207_v7 = vpop.f32.mrf.mxu0  ;;  %v1209_v8 = vpop.f32.mrf.mxu1 }
  0xad   : > { %vm471_vm3 = vcmask 523264   ;;  %v489_v9 = vmul.f32 %v1203_v5, %v1203_v5  ;;  %v490_v10 = vmul.f32 %v1207_v7, %v1207_v7  ;;  %v491_v15 = vmul.f32 %v1205_v6, %v1205_v6  ;;  %v470_v36 = vld [vmem:[#allocation2] sm:$0x1]  ;;  %v488_v39 = vld [vmem:[#allocation3] sm:$0x1] }
  0xae   : > { %v472_v11 = vsel %vm471_vm3, %v1203_v5, 0.0  ;;  %v473_v12 = vsel %vm471_vm3, %v1207_v7, 0.0  ;;  %v475_v13 = vsel %vm471_vm3, %v1205_v6, 0.0  ;;  %v492_v16 = vmul.f32 %v1209_v8, %v1209_v8  ;;  %v518_v56 = vld [vmem:[#allocation8] sm:$0x1] }
  0xaf   : > { %v474_v14 = vadd.f32 %v473_v12, %v472_v11  ;;  %v493_v17 = vsel %vm471_vm3, %v489_v9, 0.0  ;;  %v477_v18 = vsel %vm471_vm3, %v1209_v8, 0.0  ;;  %v494_v19 = vsel %vm471_vm3, %v490_v10, 0.0  ;;  %v531_v60 = vld [vmem:[#allocation10] sm:$0x1] }
  0xb0   : > { %v495_v21 = vadd.f32 %v494_v19, %v493_v17  ;;  %v496_v22 = vsel %vm471_vm3, %v491_v15, 0.0  ;;  %v498_v23 = vsel %vm471_vm3, %v492_v16, 0.0  ;;  %vm486_vm4 = vcmask 516096  }
  0xb1   : > { %v476_v20 = vadd.f32 %v475_v13, %v474_v14 }
  0xb2   : > { %v497_v25 = vadd.f32 %v496_v22, %v495_v21 }
  0xb3   : > { %v478_v24 = vadd.f32 %v477_v18, %v476_v20 }
  0xb4   : > { %v499_v27 = vadd.f32 %v498_v23, %v497_v25 }
  0xb5   : > { %v479_v26 = vrot.slane %v478_v24, 4 }
  0xb6   : > { %v500_v29 = vrot.slane %v499_v27, 4 }
  0xb7   : > { %v480_v28 = vadd.f32 %v479_v26, %v478_v24 }
  0xb8   : > { %v501_v31 = vadd.f32 %v500_v29, %v499_v27 }
  0xb9   : > { %v481_v30 = vrot.slane %v480_v28, 2 }
  0xba   : > { %v502_v33 = vrot.slane %v501_v31, 2 }
  0xbb   : > { %v482_v32 = vadd.f32 %v481_v30, %v480_v28 }
  0xbc   : > { %v503_v35 = vadd.f32 %v502_v33, %v501_v31 }
  0xbd   : > { %v483_v34 = vrot.slane %v482_v32, 1 }
  0xbe   : > { %v504_v38 = vrot.slane %v503_v35, 1 }
  0xbf   : > { %v484_v37 = vadd.f32 %v483_v34, %v482_v32 }
  0xc0   : > { %v505_v41 = vadd.f32 %v504_v38, %v503_v35 }
  0xc1   : > { %v485_v40 = vadd.f32 %v484_v37, %v470_v36 }
  0xc2   : > { %v506_v42 = vadd.f32 %v505_v41, %v488_v39 }
  0xc3   : > { %487 = vst.msk [vmem:[#allocation2] sm:$0x1] %vm486_vm4, %v485_v40 }
  0xc4   : > { %507 = vst.msk [vmem:[#allocation3] sm:$0x1] %vm486_vm4, %v506_v42 }
  0xca   : > { %v511_v43 = vld [vmem:[#allocation2] sm:$0x1] }
  0xcb   : > { %v512_v44 = vmul.f32 0.03125, %v511_v43  ;;  %v513_v45 = vld [vmem:[#allocation3] sm:$0x1] }
  0xcc   : > { %v514_v46 = vmul.f32 0.03125, %v513_v45 }
  0xcd   : > { %v515_v47 = vmul.f32 %v512_v44, %v512_v44 }
  0xcf   : > { %v516_v48 = vsub.f32 %v514_v46, %v515_v47 }
  0xd1   : > { %v517_v49 = vmax.f32 %v516_v48, 0.0 }
  0xd3   : > { %v519_v50 = vadd.f32 1e-05, %v517_v49 }
  0xd5   : > { %900 = vrsqrt.f32 %v519_v50  ;;  %vm526_vm6 = vweird.f32 %v519_v50 }
  0xdb   : > { %v901_v51 = vpop.eup %900 }
  0xdc   : > { %v521_v52 = vmul.f32 %v901_v51, %v519_v50  ;;  %vm527_vm5 = vweird.f32 %v901_v51 }
  0xdd   : > { %vm528_vm7 = vmor %vm526_vm6, %vm527_vm5 }
  0xde   : > { %v522_v53 = vmul.f32 %v901_v51, %v521_v52 }
  0xe0   : > { %v523_v54 = vmul.f32 0.5, %v522_v53 }
  0xe2   : > { %v524_v55 = vsub.f32 1.5, %v523_v54 }
  0xe4   : > { %v525_v57 = vmul.f32 %v901_v51, %v524_v55 }
  0xe6   : > { %v529_v58 = vsel %vm528_vm7, %v901_v51, %v525_v57 }
  0xe7   : > { %v530_v59 = vmul.f32 %v529_v58, %v518_v56 }
  0xe9   : > { %534 = vst.msk [vmem:[#allocation6] sm:$0x1] %vm486_vm4, %v530_v59  ;;  %v532_v61 = vmul.f32 %v530_v59, %v512_v44 }
  0xea   : > { %536 = vst.msk [vmem:[%s1275_s7] sm:$0x1] %vm486_vm4, %v530_v59 }
  0xeb   : > { %v533_v62 = vsub.f32 %v531_v60, %v532_v61 }
  0xed   : > { %535 = vst.msk [vmem:[#allocation7] sm:$0x1] %vm486_vm4, %v533_v62 }
  0xee   : > { %537 = vst.msk [vmem:[%s1276_s8] sm:$0x1] %vm486_vm4, %v533_v62 }
  0xef PF: > { %p801_p9 = scmp.ne.s32.totalorder %s1052_s13, 1 }
  0xf1   : > { %541 = sbr.rel (%p801_p9) target bundleno = 459 (0x1cb), region = 80 }
  0xf6   : > { %v828_v63 = vld [vmem:[%s1272_s4 + $0x18] sm:$0xff]  ;;  %v902_v0 = vld [vmem:[#allocation6] ss:$0 sm:$0xff]  ;;  %v827_v1 = vld [vmem:[%s1272_s4 + $0x10] sm:$0xff]  ;;  %vm596_vm8 = vcmask 523264  }
  0xf7   : > { %607 = vmatpush.bf16.msra.mxu0 %v828_v63  ;;  %830 = vmatpush.bf16.msra.mxu1 %v828_v63  ;;  %v903_v2 = vld [vmem:[#allocation7] ss:$0 sm:$0xff]  ;;  %v546_v3 = vmul.f32 %v902_v0, %v1203_v5  ;;  %v547_v4 = vmul.f32 %v902_v0, %v1207_v7  ;;  %v548_v9 = vmul.f32 %v902_v0, %v1205_v6  ;;  %v826_v15 = vld [vmem:[%s1272_s4 + $0x8] sm:$0xff]  ;;  %v622_v42 = vld [vmem:[#allocation4] sm:$0x1] }
  0xf8   : > { %v549_v10 = vmul.f32 %v902_v0, %v1209_v8  ;;  %v825_v6 = vld [vmem:[%s1272_s4] sm:$0xff]  ;;  %v660_v62 = vld [vmem:[#allocation12] sm:$0x1] }
  0xf9   : > { %v554_v11 = vadd.f32 %v903_v2, %v546_v3  ;;  %v555_v12 = vadd.f32 %v903_v2, %v547_v4  ;;  %v556_v13 = vadd.f32 %v903_v2, %v548_v9  ;;  %v634_v45 = vld [vmem:[#allocation5] sm:$0x1] }
  0xfa   : > { %v557_v14 = vadd.f32 %v903_v2, %v549_v10  ;;  %v674_v2 = vld [vmem:[#allocation13] sm:$0x1] }
  0xfb   : > { %608 = vmatpush.bf16.msra.mxu0 %v827_v1  ;;  %831 = vmatpush.bf16.msra.mxu1 %v827_v1  ;;  %v558_v16 = vmax.f32 %v554_v11, 0.0  ;;  %v559_v17 = vmax.f32 %v555_v12, 0.0  ;;  %v560_v18 = vmax.f32 %v556_v13, 0.0 }
  0xfc   : > { %v561_v5 = vmax.f32 %v557_v14, 0.0 }
  0xfd   : > { %v562_v7 = vpack.c.bf16 %v559_v17, %v558_v16 }
  0xfe   : > { %v563_v8 = vpack.c.bf16 %v561_v5, %v560_v18 }
  0xff   : > { %609 = vmatpush.bf16.msra.mxu0 %v826_v15  ;;  %832 = vmatpush.bf16.msra.mxu1 %v826_v15 }
 0x103   : > { %610 = vmatpush.bf16.msra.mxu0 %v825_v6  ;;  %833 = vmatpush.bf16.msra.mxu1 %v825_v6 }
 0x106   : > { %818 = vmatmul.msk.bf16.vlgmr.msra.gmra.mxu0 %vm596_vm8, %v562_v7  ;;  %819 = vmatmul.msk.bf16.vlgmr.msra.gmra.mxu1 %vm596_vm8, %v563_v8 }
 0x183   : > { %v612_v19 = vpop.f32.mrf.mxu0  ;;  %v617_v20 = vpop.f32.mrf.mxu1 }
 0x184   : > { %v635_v22 = vmul.f32 %v612_v19, %v612_v19  ;;  %v637_v26 = vmul.f32 %v617_v20, %v617_v20 }
 0x18b   : > { %v614_v21 = vpop.f32.mrf.mxu0  ;;  %v619_v25 = vpop.f32.mrf.mxu1 }
 0x18c   : > { %v623_v23 = vadd.f32 %v614_v21, %v612_v19  ;;  %v636_v24 = vmul.f32 %v614_v21, %v614_v21  ;;  %v638_v30 = vmul.f32 %v619_v25, %v619_v25 }
 0x18e   : > { %v639_v27 = vadd.f32 %v636_v24, %v635_v22  ;;  %v624_v28 = vadd.f32 %v623_v23, %v617_v20 }
 0x190   : > { %v625_v29 = vadd.f32 %v624_v28, %v619_v25  ;;  %v640_v31 = vadd.f32 %v639_v27, %v637_v26 }
 0x192   : > { %v626_v32 = vrot.slane %v625_v29, 4  ;;  %v641_v33 = vadd.f32 %v640_v31, %v638_v30 }
 0x194   : > { %v627_v34 = vadd.f32 %v626_v32, %v625_v29  ;;  %v642_v35 = vrot.slane %v641_v33, 4 }
 0x196   : > { %v628_v36 = vrot.slane %v627_v34, 2  ;;  %v643_v37 = vadd.f32 %v642_v35, %v641_v33 }
 0x198   : > { %v629_v38 = vadd.f32 %v628_v36, %v627_v34  ;;  %v644_v39 = vrot.slane %v643_v37, 2 }
 0x19a   : > { %v630_v40 = vrot.slane %v629_v38, 1  ;;  %v645_v41 = vadd.f32 %v644_v39, %v643_v37 }
 0x19c   : > { %v631_v43 = vadd.f32 %v630_v40, %v629_v38  ;;  %v646_v44 = vrot.slane %v645_v41, 1 }
 0x19e   : > { %v632_v46 = vadd.f32 %v631_v43, %v622_v42  ;;  %v647_v47 = vadd.f32 %v646_v44, %v645_v41 }
 0x1a0   : > { %633 = vst [vmem:[#allocation4] sm:$0x1] %v632_v46  ;;  %v648_v48 = vadd.f32 %v647_v47, %v634_v45 }
 0x1a2   : > { %649 = vst [vmem:[#allocation5] sm:$0x1] %v648_v48 }
 0x1a7   : > { %v653_v49 = vld [vmem:[#allocation4] sm:$0x1] }
 0x1a8   : > { %v654_v50 = vmul.f32 0.03125, %v653_v49 }
 0x1a9   : > { %v655_v51 = vld [vmem:[#allocation5] sm:$0x1] }
 0x1aa   : > { %v656_v52 = vmul.f32 0.03125, %v655_v51  ;;  %v657_v53 = vmul.f32 %v654_v50, %v654_v50 }
 0x1ac   : > { %v658_v54 = vsub.f32 %v656_v52, %v657_v53 }
 0x1ae   : > { %v659_v55 = vmax.f32 %v658_v54, 0.0 }
 0x1b0   : > { %v661_v56 = vadd.f32 1e-05, %v659_v55 }
 0x1b2   : > { %904 = vrsqrt.f32 %v661_v56  ;;  %vm668_vm10 = vweird.f32 %v661_v56 }
 0x1b8   : > { %v905_v57 = vpop.eup %904 }
 0x1b9   : > { %v663_v58 = vmul.f32 %v905_v57, %v661_v56  ;;  %vm669_vm9 = vweird.f32 %v905_v57 }
 0x1ba   : > { %vm670_vm11 = vmor %vm668_vm10, %vm669_vm9 }
 0x1bb   : > { %v664_v59 = vmul.f32 %v905_v57, %v663_v58 }
 0x1bd   : > { %v665_v60 = vmul.f32 0.5, %v664_v59 }
 0x1bf   : > { %v666_v61 = vsub.f32 1.5, %v665_v60 }
 0x1c1   : > { %v667_v63 = vmul.f32 %v905_v57, %v666_v61 }
 0x1c3   : > { %v671_v0 = vsel %vm670_vm11, %v905_v57, %v667_v63 }
 0x1c4   : > { %v672_v1 = vmul.f32 %v671_v0, %v660_v62 }
 0x1c6   : > { %673 = vst [vmem:[%s1277_s9] sm:$0x1] %v672_v1  ;;  %v675_v3 = vmul.f32 %v672_v1, %v654_v50 }
 0x1c8   : > { %v676_v4 = vsub.f32 %v674_v2, %v675_v3 }
 0x1ca   : > { %677 = vst [vmem:[%s1278_s10] sm:$0x1] %v676_v4 }
 0x1cb PF: > { %s24_s15 = sadd.s32 1, %s1060_s15   ;;  %s1282_s13 = smov %s1056_s14 }
 0x1cc   : > { %p21_p10 = scmp.ge.s32.totalorder %s24_s15, 4   ;;  %s1283_s14 = smov %s1285_s25 }
 0x1ce   :  { %23 = sbr.rel (!%p21_p10) target bundleno = 4 (0x4), region = 135 }
 0x1d3   :  { %707 = vsyncpa [#allocation9], 1 }
 0x1d4   :  { %709 = vsyncpa [#allocation9 + $0x1], 1 }
 0x1d5   :  { %710 = vsyncpa [#allocation11], 1 }
 0x1d6   :  { %711 = vsyncpa [#allocation14], 1 }

// kernel: tnet_forward.3
= control target key start
LH: loop header
LB: loop body
LE: loop exit
PB: predicated region body
PF: predicated region fallthrough
CT: control target
= control target key end

     0   :  { %vm92_vm0 = vcmask 1041408   ;;  %vm85_vm1 = vcmask 31744   ;;  %vm169_vm2 = vcmask 523264   ;;  %vm850_vm3 = vcmask 1045508   ;;  %s9811_s1 = inlined_call_operand.vmem [shape: bf16[4,64], index: 1, kind: input, shape index: {}]   ;;  %s9812_s0 = inlined_call_operand.vmem [shape: bf16[32,4], index: 0, kind: input, shape index: {}]   ;;  %s9813_s2 = inlined_call_operand.vmem [shape: f32[1,64], index: 2, kind: input, shape index: {}]   ;;  %s9814_s3 = inlined_call_operand.vmem [shape: f32[1,64], index: 3, kind: input, shape index: {}]   ;;  %s9815_s5 = inlined_call_operand.vmem [shape: f32[1,128], index: 5, kind: input, shape index: {}]   ;;  %s9816_s6 = inlined_call_operand.vmem [shape: f32[1,128], index: 6, kind: input, shape index: {}]   ;;  %s9817_s4 = inlined_call_operand.vmem [shape: bf16[64,128], index: 4, kind: input, shape index: {}]   ;;  %s9818_s7 = inlined_call_operand.vmem [shape: bf16[128,1024], index: 7, kind: input, shape index: {}]   ;;  %s9819_s10 = inlined_call_operand.vmem [shape: bf16[1024,512], index: 10, kind: input, shape index: {}]   ;;  %s9820_s8 = inlined_call_operand.vmem [shape: f32[1,1024], index: 8, kind: input, shape index: {}]   ;;  %s9821_s9 = inlined_call_operand.vmem [shape: f32[1,1024], index: 9, kind: input, shape index: {}]   ;;  %s9822_s13 = inlined_call_operand.vmem [shape: bf16[512,256], index: 13, kind: input, shape index: {}]   ;;  %s9823_s11 = inlined_call_operand.vmem [shape: f32[1,512], index: 11, kind: input, shape index: {}]   ;;  %s9824_s12 = inlined_call_operand.vmem [shape: f32[1,512], index: 12, kind: input, shape index: {}]   ;;  %s9825_s17 = inlined_call_operand.vmem [shape: f32[1,16], index: 17, kind: input, shape index: {}]   ;;  %s9826_s16 = inlined_call_operand.vmem [shape: bf16[256,16], index: 16, kind: input, shape index: {}]   ;;  %s9827_s14 = inlined_call_operand.vmem [shape: f32[1,256], index: 14, kind: input, shape index: {}]   ;;  %s9828_s15 = inlined_call_operand.vmem [shape: f32[1,256], index: 15, kind: input, shape index: {}]   ;;  %s9829_s18 = inlined_call_operand.vmem [shape: f32[2,16], index: 18, kind: output, shape index: {}]  }
   0x1   :  { %9831 = sst [smem:[#allocation6_spill]] %s9811_s1  ;;  %v6028_v4 = vld [vmem:[%s9817_s4 + $0x18] sm:$0xff]  ;;  %v6027_v5 = vld [vmem:[%s9817_s4 + $0x10] sm:$0xff]  ;;  %v6026_v6 = vld [vmem:[%s9817_s4 + $0x8] sm:$0xff]  ;;  %vm852_vm4 = vcmask 1043456   ;;  %vm843_vm5 = vcmask 1042434  }
   0x2   :  { %9832 = sst [smem:[#allocation7_spill]] %s9812_s0  ;;  %180 = vmatpush.bf16.msra.mxu1 %v6028_v4  ;;  %v6025_v7 = vld [vmem:[%s9817_s4] sm:$0xff]  ;;  %v4657_v16 = vld [vmem:[%s9818_s7 + $0x1c8] sm:$0xf]  ;;  %v6086_v20 = vld [vmem:[%s9818_s7 + $0x1cc] sm:$0xf] }
   0x3   :  { %9833 = sst [smem:[#allocation8_spill]] %s9813_s2  ;;  %v4649_v10 = vld [vmem:[%s9818_s7 + $0x1c0] sm:$0xf]  ;;  %v6085_v12 = vld [vmem:[%s9818_s7 + $0x1c4] sm:$0xf]  ;;  %vm841_vm6 = vcmask 1040384  }
   0x4   :  { %s9834_s29 = sld [smem:[#allocation6_spill]]  ;;  %v6089_v11 = vld [vmem:[%s9818_s7 + $0x1dc] sm:$0xf0]  ;;  %v4651_v15 = vld [vmem:[%s9818_s7 + $0x1e0] sm:$0xf0]  ;;  %vm1143_vm7 = vcmask 1041409  }
   0x5   :  { %s9835_s19 = sld [smem:[#allocation7_spill]]  ;;  %v6584_v13 = vld [vmem:[%s9814_s3] ss:$0 sm:$0xff]  ;;  %v4650_v14 = vor.u32 %v6089_v11, %v4649_v10  ;;  %v6090_v17 = vld [vmem:[%s9818_s7 + $0x1e4] sm:$0xf0]  ;;  %v4654_v18 = vor.u32 %v6085_v12, %v4651_v15  ;;  %vm1145_vm8 = vcmask 1043459  }
   0x6   :  { %181 = vmatpush.bf16.msra.mxu1 %v6027_v5  ;;  %s9836_s30 = sld [smem:[#allocation8_spill]]  ;;  %v4658_v19 = vor.u32 %v6090_v17, %v4657_v16  ;;  %v4659_v21 = vld [vmem:[%s9818_s7 + $0x1e8] sm:$0xf0]  ;;  %v4617_v22 = vld [vmem:[%s9818_s7 + $0x180] sm:$0xf]  ;;  %vm1147_vm9 = vcmask 1045509  }
   0x7   :  { %601 = vmatpush.bf16.msra.mxu2 %v4650_v14  ;;  %v4662_v24 = vor.u32 %v6086_v20, %v4659_v21  ;;  %v6081_v25 = vld [vmem:[%s9818_s7 + $0x19c] sm:$0xf0]  ;;  %v6077_v26 = vld [vmem:[%s9818_s7 + $0x184] sm:$0xf]  ;;  %620 = vmatpush.bf16.msra.mxu3 %v4654_v18  ;;  %v4625_v30 = vld [vmem:[%s9818_s7 + $0x188] sm:$0xf] }
   0x8   :  { %v4619_v27 = vld [vmem:[%s9818_s7 + $0x1a0] sm:$0xf0]  ;;  %v4618_v28 = vor.u32 %v6081_v25, %v4617_v22  ;;  %v6082_v31 = vld [vmem:[%s9818_s7 + $0x1a4] sm:$0xf0]  ;;  %v6078_v33 = vld [vmem:[%s9818_s7 + $0x18c] sm:$0xf] }
   0x9   :  { %v4622_v29 = vor.u32 %v6077_v26, %v4619_v27  ;;  %v4626_v32 = vor.u32 %v6082_v31, %v4625_v30  ;;  %v4627_v34 = vld [vmem:[%s9818_s7 + $0x1a8] sm:$0xf0]  ;;  %v4585_v35 = vld [vmem:[%s9818_s7 + $0x140] sm:$0xf]  ;;  %v6069_v38 = vld [vmem:[%s9818_s7 + $0x144] sm:$0xf] }
   0xa   :  { %v74_v0 = vld [vmem:[%s9834_s29] sm:$0x3]  ;;  %182 = vmatpush.bf16.msra.mxu1 %v6026_v6  ;;  %v4630_v36 = vor.u32 %v6078_v33, %v4627_v34  ;;  %v4587_v39 = vld [vmem:[%s9818_s7 + $0x160] sm:$0xf0]  ;;  %v4593_v43 = vld [vmem:[%s9818_s7 + $0x148] sm:$0xf] }
   0xb   :  { %v94_v1 = vsel %vm92_vm0, %v74_v0, 0  ;;  %v6023_v2 = vld [vmem:[%s9835_s19] sm:$0xff]  ;;  %v6024_v3 = vld [vmem:[%s9835_s19 + $0x8] sm:$0xff]  ;;  %602 = vmatpush.bf16.msra.mxu2 %v4618_v28  ;;  %621 = vmatpush.bf16.msra.mxu3 %v4622_v29  ;;  %v4590_v47 = vor.u32 %v6069_v38, %v4587_v39  ;;  %vm1149_vm10 = vcmask 1047559   ;;  %vm848_vm11 = vcmask 1046534  }
   0xc   :  { %103 = vmatpush.bf16.msra.mxu0 %v94_v1  ;;  %v6570_v9 = vld [vmem:[%s9836_s30] ss:$0 sm:$0xff]  ;;  %v6074_v44 = vld [vmem:[%s9818_s7 + $0x164] sm:$0xf0]  ;;  %v6070_v45 = vld [vmem:[%s9818_s7 + $0x14c] sm:$0xf] }
   0xd   :  { %v6073_v37 = vld [vmem:[%s9818_s7 + $0x15c] sm:$0xf0]  ;;  %v4594_v48 = vor.u32 %v6074_v44, %v4593_v43  ;;  %v4595_v49 = vld [vmem:[%s9818_s7 + $0x168] sm:$0xf0]  ;;  %v6061_v53 = vld [vmem:[%s9818_s7 + $0x104] sm:$0xf] }
   0xe   :  { %183 = vmatpush.bf16.msra.mxu1 %v6025_v7  ;;  %v4586_v42 = vor.u32 %v6073_v37, %v4585_v35  ;;  %v4553_v50 = vld [vmem:[%s9818_s7 + $0x100] sm:$0xf]  ;;  %v4598_v52 = vor.u32 %v6070_v45, %v4595_v49  ;;  %v4555_v54 = vld [vmem:[%s9818_s7 + $0x120] sm:$0xf0]  ;;  %v4561_v55 = vld [vmem:[%s9818_s7 + $0x108] sm:$0xf] }
   0xf   :  { %4403 = vmatmul.msk.bf16.vlgmr.msra.gmra.mxu0 %vm85_vm1, %v6023_v2  ;;  %v6065_v51 = vld [vmem:[%s9818_s7 + $0x11c] sm:$0xf0]  ;;  %v6066_v57 = vld [vmem:[%s9818_s7 + $0x124] sm:$0xf0]  ;;  %v6062_v58 = vld [vmem:[%s9818_s7 + $0x10c] sm:$0xf]  ;;  %622 = vmatpush.bf16.msra.mxu3 %v4590_v47  ;;  %v4558_v63 = vor.u32 %v6061_v53, %v4555_v54 }
  0x10   :  { %639 = vmatpush.bf16.msrb.mxu0 %v4658_v19  ;;  %v4563_v59 = vld [vmem:[%s9818_s7 + $0x128] sm:$0xf0]  ;;  %603 = vmatpush.bf16.msra.mxu2 %v4586_v42  ;;  %v4554_v60 = vor.u32 %v6065_v51, %v4553_v50  ;;  %v4562_v0 = vor.u32 %v6066_v57, %v4561_v55  ;;  %v4521_v14 = vld [vmem:[%s9818_s7 + $0xc0] sm:$0xf]  ;;  %v4529_v17 = vld [vmem:[%s9818_s7 + $0xc8] sm:$0xf] }
  0x11   :  { %v4566_v1 = vor.u32 %v6062_v58, %v4563_v59  ;;  %v6057_v15 = vld [vmem:[%s9818_s7 + $0xdc] sm:$0xf0]  ;;  %v6058_v19 = vld [vmem:[%s9818_s7 + $0xe4] sm:$0xf0]  ;;  %v6054_v20 = vld [vmem:[%s9818_s7 + $0xcc] sm:$0xf] }
  0x12   :  { %658 = vmatpush.bf16.msrb.mxu1 %v4662_v24  ;;  %v4522_v16 = vor.u32 %v6057_v15, %v4521_v14  ;;  %v4530_v21 = vor.u32 %v6058_v19, %v4529_v17  ;;  %v4531_v22 = vld [vmem:[%s9818_s7 + $0xe8] sm:$0xf0]  ;;  %v4489_v24 = vld [vmem:[%s9818_s7 + $0x80] sm:$0xf]  ;;  %v6045_v26 = vld [vmem:[%s9818_s7 + $0x84] sm:$0xf] }
  0x13   :  { %623 = vmatpush.bf16.msra.mxu3 %v4558_v63  ;;  %v6049_v25 = vld [vmem:[%s9818_s7 + $0x9c] sm:$0xf0]  ;;  %v4491_v28 = vld [vmem:[%s9818_s7 + $0xa0] sm:$0xf0]  ;;  %v4497_v29 = vld [vmem:[%s9818_s7 + $0x88] sm:$0xf] }
  0x14   :  { %640 = vmatpush.bf16.msrb.mxu0 %v4626_v32  ;;  %604 = vmatpush.bf16.msra.mxu2 %v4554_v60  ;;  %v4490_v27 = vor.u32 %v6049_v25, %v4489_v24  ;;  %v6050_v30 = vld [vmem:[%s9818_s7 + $0xa4] sm:$0xf0]  ;;  %v4494_v31 = vor.u32 %v6045_v26, %v4491_v28  ;;  %v6046_v33 = vld [vmem:[%s9818_s7 + $0x8c] sm:$0xf]  ;;  %v6041_v37 = vld [vmem:[%s9818_s7 + $0x5c] sm:$0xf0] }
  0x15   :  { %v4498_v32 = vor.u32 %v6050_v30, %v4497_v29  ;;  %v4499_v34 = vld [vmem:[%s9818_s7 + $0xa8] sm:$0xf0]  ;;  %v6037_v38 = vld [vmem:[%s9818_s7 + $0x44] sm:$0xf]  ;;  %v6042_v42 = vld [vmem:[%s9818_s7 + $0x64] sm:$0xf0] }
  0x16   :  { %659 = vmatpush.bf16.msrb.mxu1 %v4630_v36  ;;  %v4502_v35 = vor.u32 %v6046_v33, %v4499_v34  ;;  %v4457_v36 = vld [vmem:[%s9818_s7 + $0x40] sm:$0xf]  ;;  %v6038_v45 = vld [vmem:[%s9818_s7 + $0x4c] sm:$0xf]  ;;  %v6029_v50 = vld [vmem:[%s9818_s7 + $0x4] sm:$0xf] }
  0x17   :  { %v4458_v39 = vor.u32 %v6041_v37, %v4457_v36  ;;  %v6033_v49 = vld [vmem:[%s9818_s7 + $0x1c] sm:$0xf0]  ;;  %v4433_v53 = vld [vmem:[%s9818_s7 + $0x8] sm:$0xf]  ;;  %v6030_v57 = vld [vmem:[%s9818_s7 + $0xc] sm:$0xf] }
  0x18   :  { %641 = vmatpush.bf16.msrb.mxu0 %v4594_v48  ;;  %605 = vmatpush.bf16.msra.mxu2 %v4522_v16  ;;  %v4425_v48 = vld [vmem:[%s9818_s7] sm:$0xf]  ;;  %v6034_v54 = vld [vmem:[%s9818_s7 + $0x24] sm:$0xf0]  ;;  %v4435_v58 = vld [vmem:[%s9818_s7 + $0x28] sm:$0xf0] }
  0x19   :  { %v4426_v51 = vor.u32 %v6033_v49, %v4425_v48  ;;  %v4438_v59 = vor.u32 %v6030_v57, %v4435_v58  ;;  %v4665_v60 = vld [vmem:[%s9818_s7 + $0x1d0] sm:$0xf]  ;;  %v4635_v14 = vld [vmem:[%s9818_s7 + $0x1b0] sm:$0xf0]  ;;  %v4641_v15 = vld [vmem:[%s9818_s7 + $0x198] sm:$0xf] }
  0x1a   :  { %660 = vmatpush.bf16.msrb.mxu1 %v4598_v52  ;;  %v4427_v52 = vld [vmem:[%s9818_s7 + $0x20] sm:$0xf0]  ;;  %v6084_v16 = vld [vmem:[%s9818_s7 + $0x1b4] sm:$0xf0]  ;;  %v6080_v17 = vld [vmem:[%s9818_s7 + $0x19c] sm:$0xf] }
  0x1b   :  { %v4430_v55 = vor.u32 %v6029_v50, %v4427_v52  ;;  %v4603_v24 = vld [vmem:[%s9818_s7 + $0x170] sm:$0xf0]  ;;  %v4609_v25 = vld [vmem:[%s9818_s7 + $0x158] sm:$0xf]  ;;  %v6072_v29 = vld [vmem:[%s9818_s7 + $0x15c] sm:$0xf] }
  0x1c   :  { %642 = vmatpush.bf16.msrb.mxu0 %v4562_v0  ;;  %606 = vmatpush.bf16.msra.mxu2 %v4490_v27  ;;  %v4667_v0 = vld [vmem:[%s9818_s7 + $0x1f0] sm:$0xf0]  ;;  %v6076_v26 = vld [vmem:[%s9818_s7 + $0x174] sm:$0xf0]  ;;  %v4611_v30 = vld [vmem:[%s9818_s7 + $0x178] sm:$0xf0] }
  0x1d   :  { %v4610_v28 = vor.u32 %v6076_v26, %v4609_v25  ;;  %v6067_v33 = vld [vmem:[%s9818_s7 + $0x12c] sm:$0xf0]  ;;  %v6063_v34 = vld [vmem:[%s9818_s7 + $0x114] sm:$0xf]  ;;  %v4577_v37 = vld [vmem:[%s9818_s7 + $0x118] sm:$0xf] }
  0x1e   :  { %661 = vmatpush.bf16.msrb.mxu1 %v4566_v1  ;;  %v4673_v1 = vld [vmem:[%s9818_s7 + $0x1d8] sm:$0xf]  ;;  %v4571_v36 = vld [vmem:[%s9818_s7 + $0x130] sm:$0xf0]  ;;  %v4505_v57 = vld [vmem:[%s9818_s7 + $0x90] sm:$0xf] }
  0x1f   :  { %4404 = vmatmul.msk.bf16.gmra.mxu0 %vm85_vm1, %v6024_v3  ;;  %v6055_v48 = vld [vmem:[%s9818_s7 + $0xd4] sm:$0xf]  ;;  %v6060_v52 = vld [vmem:[%s9818_s7 + $0xf4] sm:$0xf0]  ;;  %vm846_vm12 = vcmask 1044484  }
  0x20   :  { %643 = vmatpush.bf16.msrb.mxu0 %v4530_v21  ;;  %607 = vmatpush.bf16.msra.mxu2 %v4458_v39  ;;  %v6075_v21 = vld [vmem:[%s9818_s7 + $0x16c] sm:$0xf0]  ;;  %v4574_v39 = vor.u32 %v6063_v34, %v4571_v36  ;;  %v4539_v50 = vld [vmem:[%s9818_s7 + $0xf0] sm:$0xf0]  ;;  %v4451_v34 = vld [vmem:[%s9818_s7 + $0x38] sm:$0xf0] }
  0x21   :  { %v6031_v25 = vld [vmem:[%s9818_s7 + $0x14] sm:$0xf] }
  0x22   :  { %v4443_v26 = vld [vmem:[%s9818_s7 + $0x30] sm:$0xf0] }
  0x24   :  { %644 = vmatpush.bf16.msrb.mxu0 %v4498_v32  ;;  %608 = vmatpush.bf16.msra.mxu2 %v4426_v51  ;;  %v4569_v32 = vld [vmem:[%s9818_s7 + $0x110] sm:$0xf]  ;;  %v4545_v51 = vld [vmem:[%s9818_s7 + $0xd8] sm:$0xf] }
  0x8c   :  { %v105_v8 = vpop.f32.mrf.mxu0 }
  0x8d   :  { %v119_v23 = vmul.f32 %v6570_v9, %v105_v8 }
  0x8f   :  { %v127_v40 = vadd.f32 %v6584_v13, %v119_v23  ;;  %v4534_v23 = vor.u32 %v6054_v20, %v4531_v22  ;;  %v4601_v20 = vld [vmem:[%s9818_s7 + $0x150] sm:$0xf]  ;;  %v6071_v22 = vld [vmem:[%s9818_s7 + $0x154] sm:$0xf] }
  0x90   :  { %v4606_v27 = vor.u32 %v6071_v22, %v4603_v24 }
  0x91   :  { %v131_v61 = vmax.f32 %v127_v40, 0.0  ;;  %662 = vmatpush.bf16.msrb.mxu1 %v4534_v23  ;;  %v4459_v40 = vld [vmem:[%s9818_s7 + $0x60] sm:$0xf0]  ;;  %v4602_v23 = vor.u32 %v6075_v21, %v4601_v20  ;;  %v4441_v20 = vld [vmem:[%s9818_s7 + $0x10] sm:$0xf] }
  0x92   :  { %v4462_v43 = vor.u32 %v6037_v38, %v4459_v40  ;;  %v6068_v38 = vld [vmem:[%s9818_s7 + $0x134] sm:$0xf0]  ;;  %v6035_v21 = vld [vmem:[%s9818_s7 + $0x2c] sm:$0xf0] }
  0x93   :  { %v4578_v40 = vor.u32 %v6068_v38, %v4577_v37 }
  0x94   :  { %v107_v41 = vpop.f32.mrf.mxu0 }
  0x95   :  { %v120_v46 = vmul.f32 %v6570_v9, %v107_v41  ;;  %v4465_v41 = vld [vmem:[%s9818_s7 + $0x48] sm:$0xf]  ;;  %663 = vmatpush.bf16.msrb.mxu1 %v4502_v35  ;;  %v4570_v35 = vor.u32 %v6067_v33, %v4569_v32  ;;  %v6032_v33 = vld [vmem:[%s9818_s7 + $0x1c] sm:$0xf] }
  0x96   :  { %v4466_v44 = vor.u32 %v6042_v42, %v4465_v41  ;;  %v6064_v41 = vld [vmem:[%s9818_s7 + $0x11c] sm:$0xf]  ;;  %v4454_v38 = vor.u32 %v6032_v33, %v4451_v34 }
  0x97   :  { %v128_v56 = vadd.f32 %v6584_v13, %v120_v46  ;;  %v4467_v46 = vld [vmem:[%s9818_s7 + $0x68] sm:$0xf0]  ;;  %v4579_v42 = vld [vmem:[%s9818_s7 + $0x138] sm:$0xf0] }
  0x98   :  { %v4470_v47 = vor.u32 %v6038_v45, %v4467_v46  ;;  %645 = vmatpush.bf16.msrb.mxu0 %v4466_v44  ;;  %v4582_v44 = vor.u32 %v6064_v41, %v4579_v42  ;;  %v4537_v46 = vld [vmem:[%s9818_s7 + $0xd0] sm:$0xf] }
  0x99   :  { %v132_v62 = vmax.f32 %v128_v56, 0.0  ;;  %v4434_v56 = vor.u32 %v6034_v54, %v4433_v53  ;;  %v4542_v53 = vor.u32 %v6055_v48, %v4539_v50  ;;  %v4546_v54 = vor.u32 %v6060_v52, %v4545_v51 }
  0x9a   :  { %664 = vmatpush.bf16.msrb.mxu1 %v4470_v47  ;;  %v6059_v47 = vld [vmem:[%s9818_s7 + $0xec] sm:$0xf0] }
  0x9b   :  { %v135_v2 = vpack.c.bf16 %v132_v62, %v131_v61  ;;  %v6091_v61 = vld [vmem:[%s9818_s7 + $0x1ec] sm:$0xf0]  ;;  %v6087_v62 = vld [vmem:[%s9818_s7 + $0x1d4] sm:$0xf]  ;;  %v4538_v49 = vor.u32 %v6059_v47, %v4537_v46 }
  0x9c   :  { %v110_v3 = vpop.f32.mrf.mxu0  ;;  %646 = vmatpush.bf16.msrb.mxu0 %v4434_v56  ;;  %v4666_v63 = vor.u32 %v6091_v61, %v4665_v60  ;;  %v4547_v56 = vld [vmem:[%s9818_s7 + $0xf8] sm:$0xf0]  ;;  %v6047_v60 = vld [vmem:[%s9818_s7 + $0x94] sm:$0xf] }
  0x9d   :  { %4421 = vmatmul.msk.bf16.vlgmr.msra.gmra.mxu1 %vm169_vm2, %v135_v2  ;;  %v121_v4 = vmul.f32 %v6570_v9, %v110_v3  ;;  %v6092_v2 = vld [vmem:[%s9818_s7 + $0x1f4] sm:$0xf0]  ;;  %v4670_v3 = vor.u32 %v6087_v62, %v4667_v0  ;;  %v4507_v61 = vld [vmem:[%s9818_s7 + $0xb0] sm:$0xf0] }
  0x9e   :  { %665 = vmatpush.bf16.msrb.mxu1 %v4438_v59  ;;  %677 = vmatpush.bf16.msrb.mxu2 %v4666_v63  ;;  %v6051_v59 = vld [vmem:[%s9818_s7 + $0xac] sm:$0xf0]  ;;  %v4510_v63 = vor.u32 %v6047_v60, %v4507_v61  ;;  %v4513_v0 = vld [vmem:[%s9818_s7 + $0x98] sm:$0xf] }
  0x9f   :  { %v129_v6 = vadd.f32 %v6584_v13, %v121_v4  ;;  %v4674_v4 = vor.u32 %v6092_v2, %v4673_v1  ;;  %v4506_v62 = vor.u32 %v6051_v59, %v4505_v57  ;;  %v6052_v1 = vld [vmem:[%s9818_s7 + $0xb4] sm:$0xf0]  ;;  %v6048_v2 = vld [vmem:[%s9818_s7 + $0x9c] sm:$0xf] }
  0xa1   :  { %v133_v10 = vmax.f32 %v129_v6, 0.0  ;;  %v4675_v6 = vld [vmem:[%s9818_s7 + $0x1f8] sm:$0xf0]  ;;  %715 = vmatpush.bf16.msra.mxu0 %v4674_v4  ;;  %v6433_v4 = vld [vmem:[%s9816_s6] ss:$0 sm:$0xff] }
  0xa4   :  { %v112_v5 = vpop.f32.mrf.mxu0 }
  0xa5   :  { %v122_v7 = vmul.f32 %v6570_v9, %v112_v5  ;;  %v6053_v9 = vld [vmem:[%s9818_s7 + $0xc4] sm:$0xf]  ;;  %v6088_v5 = vld [vmem:[%s9818_s7 + $0x1dc] sm:$0xf] }
  0xa7   :  { %v130_v8 = vadd.f32 %v6584_v13, %v122_v7  ;;  %v4523_v13 = vld [vmem:[%s9818_s7 + $0xe0] sm:$0xf0]  ;;  %v4678_v7 = vor.u32 %v6088_v5, %v4675_v6  ;;  %v4514_v5 = vor.u32 %v6052_v1, %v4513_v0  ;;  %v4515_v6 = vld [vmem:[%s9818_s7 + $0xb8] sm:$0xf0] }
  0xa8   :  { %v4526_v18 = vor.u32 %v6053_v9, %v4523_v13  ;;  %v4642_v13 = vor.u32 %v6084_v16, %v4641_v15  ;;  %v4481_v15 = vld [vmem:[%s9818_s7 + $0x58] sm:$0xf] }
  0xa9   :  { %v134_v11 = vmax.f32 %v130_v8, 0.0  ;;  %v4633_v8 = vld [vmem:[%s9818_s7 + $0x190] sm:$0xf]  ;;  %734 = vmatpush.bf16.msra.mxu1 %v4678_v7  ;;  %v6044_v16 = vld [vmem:[%s9818_s7 + $0x74] sm:$0xf0] }
  0xaa   :  { %624 = vmatpush.bf16.msra.mxu3 %v4526_v18  ;;  %v4643_v18 = vld [vmem:[%s9818_s7 + $0x1b8] sm:$0xf0]  ;;  %716 = vmatpush.bf16.msra.mxu0 %v4642_v13  ;;  %v4473_v7 = vld [vmem:[%s9818_s7 + $0x50] sm:$0xf] }
  0xab   :  { %v136_v12 = vpack.c.bf16 %v134_v11, %v133_v10  ;;  %v6083_v10 = vld [vmem:[%s9818_s7 + $0x1ac] sm:$0xf0]  ;;  %v6079_v11 = vld [vmem:[%s9818_s7 + $0x194] sm:$0xf]  ;;  %v4646_v19 = vor.u32 %v6080_v17, %v4643_v18  ;;  %v4482_v18 = vor.u32 %v6044_v16, %v4481_v15 }
  0xac   :  { %v4638_v9 = vor.u32 %v6079_v11, %v4635_v14  ;;  %v6039_v11 = vld [vmem:[%s9818_s7 + $0x54] sm:$0xf] }
  0xad   :  { %4422 = vmatmul.msk.bf16.gmra.mxu1 %vm169_vm2, %v136_v12  ;;  %v4634_v12 = vor.u32 %v6083_v10, %v4633_v8  ;;  %v4518_v8 = vor.u32 %v6048_v2, %v4515_v6  ;;  %v6043_v10 = vld [vmem:[%s9818_s7 + $0x6c] sm:$0xf0] }
  0xae   :  { %625 = vmatpush.bf16.msra.mxu3 %v4494_v31  ;;  %735 = vmatpush.bf16.msra.mxu1 %v4646_v19  ;;  %v4614_v31 = vor.u32 %v6072_v29, %v4611_v30  ;;  %v4474_v14 = vor.u32 %v6043_v10, %v4473_v7  ;;  %v4483_v19 = vld [vmem:[%s9818_s7 + $0x78] sm:$0xf0]  ;;  %v4442_v30 = vor.u32 %v6035_v21, %v4441_v20 }
  0xaf   :  { %678 = vmatpush.bf16.msrb.mxu2 %v4634_v12  ;;  %717 = vmatpush.bf16.msra.mxu0 %v4610_v28  ;;  %v4475_v12 = vld [vmem:[%s9818_s7 + $0x70] sm:$0xf0]  ;;  %v6036_v28 = vld [vmem:[%s9818_s7 + $0x34] sm:$0xf0] }
  0xb0   :  { %v4478_v17 = vor.u32 %v6039_v11, %v4475_v12 }
  0xb2   :  { %626 = vmatpush.bf16.msra.mxu3 %v4462_v43  ;;  %736 = vmatpush.bf16.msra.mxu1 %v4614_v31  ;;  %v6878_v43 = vld [vmem:[%s9815_s5] ss:$0 sm:$0xff]  ;;  %v4446_v31 = vor.u32 %v6031_v25, %v4443_v26 }
  0xb3   :  { %679 = vmatpush.bf16.msrb.mxu2 %v4602_v23  ;;  %718 = vmatpush.bf16.msra.mxu0 %v4578_v40 }
  0xb6   :  { %627 = vmatpush.bf16.msra.mxu3 %v4430_v55  ;;  %737 = vmatpush.bf16.msra.mxu1 %v4582_v44  ;;  %v6056_v55 = vld [vmem:[%s9818_s7 + $0xdc] sm:$0xf] }
  0xb7   :  { %680 = vmatpush.bf16.msrb.mxu2 %v4570_v35  ;;  %v4550_v58 = vor.u32 %v6056_v55, %v4547_v56  ;;  %719 = vmatpush.bf16.msra.mxu0 %v4546_v54 }
  0xba   :  { %696 = vmatpush.bf16.msrb.mxu3 %v4670_v3  ;;  %738 = vmatpush.bf16.msra.mxu1 %v4550_v58 }
  0xbb   :  { %681 = vmatpush.bf16.msrb.mxu2 %v4538_v49  ;;  %720 = vmatpush.bf16.msra.mxu0 %v4514_v5 }
  0xbe   :  { %697 = vmatpush.bf16.msrb.mxu3 %v4638_v9  ;;  %v6040_v9 = vld [vmem:[%s9818_s7 + $0x5c] sm:$0xf]  ;;  %739 = vmatpush.bf16.msra.mxu1 %v4518_v8 }
  0xbf   :  { %682 = vmatpush.bf16.msrb.mxu2 %v4506_v62  ;;  %v4486_v24 = vor.u32 %v6040_v9, %v4483_v19  ;;  %721 = vmatpush.bf16.msra.mxu0 %v4482_v18 }
  0xc2   :  { %698 = vmatpush.bf16.msrb.mxu3 %v4606_v27  ;;  %v4449_v27 = vld [vmem:[%s9818_s7 + $0x18] sm:$0xf]  ;;  %740 = vmatpush.bf16.msra.mxu1 %v4486_v24 }
  0xc3   :  { %683 = vmatpush.bf16.msrb.mxu2 %v4474_v14  ;;  %v4450_v32 = vor.u32 %v6036_v28, %v4449_v27 }
  0xc5   :  { %722 = vmatpush.bf16.msra.mxu0 %v4450_v32 }
  0xc6   :  { %699 = vmatpush.bf16.msrb.mxu3 %v4574_v39  ;;  %741 = vmatpush.bf16.msra.mxu1 %v4454_v38 }
  0xc7   :  { %684 = vmatpush.bf16.msrb.mxu2 %v4442_v30 }
  0xca   :  { %700 = vmatpush.bf16.msrb.mxu3 %v4542_v53 }
  0xce   :  { %701 = vmatpush.bf16.msrb.mxu3 %v4510_v63 }
  0xd2   :  { %702 = vmatpush.bf16.msrb.mxu3 %v4478_v17 }
  0xd6   :  { %703 = vmatpush.bf16.msrb.mxu3 %v4446_v31 }
 0x11a   :  { %v185_v45 = vpop.f32.mrf.mxu1 }
 0x11b   :  { %v199_v3 = vmul.f32 %v6878_v43, %v185_v45 }
 0x11d   :  { %v207_v22 = vadd.f32 %v6433_v4, %v199_v3 }
 0x11f   :  { %v211_v35 = vmax.f32 %v207_v22, 0.0 }
 0x122   :  { %v187_v13 = vpop.f32.mrf.mxu1 }
 0x123   :  { %v200_v23 = vmul.f32 %v6878_v43, %v187_v13 }
 0x125   :  { %v208_v29 = vadd.f32 %v6433_v4, %v200_v23 }
 0x127   :  { %v212_v36 = vmax.f32 %v208_v29, 0.0 }
 0x129   :  { %v215_v37 = vpack.c.bf16 %v212_v36, %v211_v35 }
 0x12a   :  { %v190_v39 = vpop.f32.mrf.mxu1 }
 0x12b   :  { %609 = vmatmul.bf16.vlgmr.msra.gmra.mxu2 %v215_v37  ;;  %628 = vmatmul.bf16.vlgmr.msra.gmra.mxu3 %v215_v37  ;;  %v201_v40 = vmul.f32 %v6878_v43, %v190_v39 }
 0x12c   :  { %647 = vmatmul.bf16.vlgmr.msrb.gmra.mxu0 %v215_v37  ;;  %666 = vmatmul.bf16.vlgmr.msrb.gmra.mxu1 %v215_v37 }
 0x12d   :  { %v209_v42 = vadd.f32 %v6433_v4, %v201_v40 }
 0x12f   :  { %v213_v46 = vmax.f32 %v209_v42, 0.0 }
 0x132   :  { %v192_v41 = vpop.f32.mrf.mxu1 }
 0x133   :  { %v202_v44 = vmul.f32 %v6878_v43, %v192_v41 }
 0x135   :  { %v210_v45 = vadd.f32 %v6433_v4, %v202_v44 }
 0x137   :  { %v214_v47 = vmax.f32 %v210_v45, 0.0 }
 0x139   :  { %v216_v48 = vpack.c.bf16 %v214_v47, %v213_v46 }
 0x13b   :  { %614 = vmatmul.bf16.gmra.mxu2 %v216_v48  ;;  %633 = vmatmul.bf16.gmra.mxu3 %v216_v48 }
 0x13c   :  { %652 = vmatmul.bf16.gmra.mxu0 %v216_v48  ;;  %671 = vmatmul.bf16.gmra.mxu1 %v216_v48 }
 0x14b   :  { %685 = vmatmul.bf16.vlgmr.msrb.gmra.mxu2 %v215_v37  ;;  %704 = vmatmul.bf16.vlgmr.msrb.gmra.mxu3 %v215_v37 }
 0x14c   :  { %723 = vmatmul.bf16.vlgmr.msra.gmra.mxu0 %v215_v37  ;;  %742 = vmatmul.bf16.vlgmr.msra.gmra.mxu1 %v215_v37 }
 0x15b   :  { %690 = vmatmul.bf16.gmra.mxu2 %v216_v48  ;;  %709 = vmatmul.bf16.gmra.mxu3 %v216_v48 }
 0x15c   :  { %728 = vmatmul.bf16.gmra.mxu0 %v216_v48  ;;  %747 = vmatmul.bf16.gmra.mxu1 %v216_v48 }
 0x1a9   :  { %v648_v49 = vpop.f32.mrf.mxu0  ;;  %v667_v50 = vpop.f32.mrf.mxu1 }
 0x1aa   :  { %v860_v4 = vmul.f32 %v648_v49, %v648_v49  ;;  %v861_v8 = vmul.f32 %v667_v50, %v667_v50 }
 0x1ae   :  { %v6983_v51 = vpop.f32.mrf.mxu2  ;;  %v6985_v43 = vpop.f32.mrf.mxu3 }
 0x1af   :  { %v858_v10 = vmul.f32 %v6983_v51, %v6983_v51  ;;  %v859_v14 = vmul.f32 %v6985_v43, %v6985_v43 }
 0x1b1   :  { %v650_v52 = vpop.f32.mrf.mxu0  ;;  %v669_v53 = vpop.f32.mrf.mxu1 }
 0x1b2   :  { %v1002_v54 = vmax.f32 %v648_v49, %v650_v52  ;;  %v1181_v55 = vmin.f32 %v648_v49, %v650_v52  ;;  %v1009_v56 = vmax.f32 %v667_v50, %v669_v53  ;;  %v1188_v57 = vmin.f32 %v667_v50, %v669_v53 }
 0x1b3   :  { %v868_v13 = vmul.f32 %v650_v52, %v650_v52  ;;  %v869_v25 = vmul.f32 %v669_v53, %v669_v53  ;;  %v772_v28 = vadd.f32 %v650_v52, %v648_v49  ;;  %v781_v33 = vadd.f32 %v669_v53, %v667_v50 }
 0x1b4   :  { %v1003_v58 = vrot.slane %v1002_v54, 4  ;;  %v1182_v59 = vrot.slane %v1181_v55, 4  ;;  %v1010_v60 = vrot.slane %v1009_v56, 4  ;;  %v1189_v61 = vrot.slane %v1188_v57, 4 }
 0x1b5   :  { %v908_v37 = vadd.f32 %v868_v13, %v860_v4  ;;  %v917_v46 = vadd.f32 %v869_v25, %v861_v8 }
 0x1b6   :  { %v1183_v62 = vmin.f32 %v1181_v55, %v1182_v59  ;;  %v6987_v63 = vpop.f32.mrf.mxu2  ;;  %v6989_v0 = vpop.f32.mrf.mxu3  ;;  %v1004_v1 = vmax.f32 %v1002_v54, %v1003_v58  ;;  %v1011_v2 = vmax.f32 %v1009_v56, %v1010_v60  ;;  %v1190_v3 = vmin.f32 %v1188_v57, %v1189_v61 }
 0x1b7   :  { %v988_v6 = vmax.f32 %v6983_v51, %v6987_v63  ;;  %v1167_v7 = vmin.f32 %v6983_v51, %v6987_v63  ;;  %v995_v12 = vmax.f32 %v6985_v43, %v6989_v0  ;;  %v1174_v9 = vmin.f32 %v6985_v43, %v6989_v0 }
 0x1b8   :  { %v1184_v5 = vrot.slane %v1183_v62, 2  ;;  %v1191_v11 = vrot.slane %v1190_v3, 2  ;;  %v1005_v17 = vrot.slane %v1004_v1, 2  ;;  %v1012_v18 = vrot.slane %v1011_v2, 2 }
 0x1b9   :  { %v1168_v16 = vrot.slane %v1167_v7, 4  ;;  %v7003_v20 = vpop.f32.mrf.mxu0  ;;  %v989_v22 = vrot.slane %v988_v6, 4  ;;  %v1175_v24 = vrot.slane %v1174_v9, 4  ;;  %v996_v27 = vrot.slane %v995_v12, 4  ;;  %v7005_v32 = vpop.f32.mrf.mxu1 }
 0x1ba   :  { %v1185_v15 = vmin.f32 %v1183_v62, %v1184_v5  ;;  %v1192_v19 = vmin.f32 %v1190_v3, %v1191_v11  ;;  %v1006_v34 = vmax.f32 %v1004_v1, %v1005_v17  ;;  %v1013_v35 = vmax.f32 %v1011_v2, %v1012_v18 }
 0x1bb   :  { %v1169_v23 = vmin.f32 %v1167_v7, %v1168_v16  ;;  %v1176_v31 = vmin.f32 %v1174_v9, %v1175_v24  ;;  %v7007_v39 = vmax.f32 %v988_v6, %v989_v22  ;;  %v866_v44 = vmul.f32 %v6987_v63, %v6987_v63 }
 0x1bc   :  { %v1186_v21 = vrot.slane %v1185_v15, 1  ;;  %v1193_v26 = vrot.slane %v1192_v19, 1  ;;  %v997_v45 = vmax.f32 %v995_v12, %v996_v27  ;;  %v867_v47 = vmul.f32 %v6989_v0, %v6989_v0 }
 0x1bd   :  { %v1170_v30 = vrot.slane %v1169_v23, 2  ;;  %v1177_v41 = vrot.slane %v1176_v31, 2  ;;  %v773_v49 = vadd.f32 %v772_v28, %v7003_v20  ;;  %v876_v50 = vmul.f32 %v7003_v20, %v7003_v20 }
 0x1be   :  { %v1187_v29 = vmin.f32 %v1185_v15, %v1186_v21  ;;  %v1194_v36 = vmin.f32 %v1192_v19, %v1193_v26  ;;  %v7016_v52 = vpop.f32.mrf.mxu2  ;;  %v1007_v53 = vrot.slane %v1006_v34, 1  ;;  %v1014_v54 = vrot.slane %v1013_v35, 1  ;;  %v7019_v57 = vpop.f32.mrf.mxu3 }
 0x1bf   :  { %v1171_v40 = vmin.f32 %v1169_v23, %v1170_v30  ;;  %v1178_v48 = vmin.f32 %v1176_v31, %v1177_v41  ;;  %v991_v58 = vrot.slane %v7007_v39, 2  ;;  %v909_v60 = vadd.f32 %v908_v37, %v876_v50 }
 0x1c0   :  { %v1296_v38 = vrot.slane %v1187_v29, 4  ;;  %v1297_v42 = vrot.slane %v1194_v36, 2  ;;  %v782_v61 = vadd.f32 %v781_v33, %v7005_v32  ;;  %v998_v62 = vrot.slane %v997_v45, 2 }
 0x1c1   :  { %v1172_v56 = vrot.slane %v1171_v40, 1  ;;  %v1179_v59 = vrot.slane %v1178_v48, 1  ;;  %v877_v1 = vmul.f32 %v7005_v32, %v7005_v32  ;;  %v754_v2 = vadd.f32 %v6987_v63, %v6983_v51  ;;  %v655_v4 = vpop.f32.mrf.mxu0 }
 0x1c2   :  { %v1308_v55 = vsel %vm850_vm3, %v1296_v38, %v1297_v42  ;;  %v874_v3 = vmul.f32 %v7016_v52, %v7016_v52  ;;  %v890_v6 = vadd.f32 %v866_v44, %v858_v10  ;;  %v763_v7 = vadd.f32 %v6989_v0, %v6985_v43  ;;  %v674_v10 = vpop.f32.mrf.mxu1 }
 0x1c3   :  { %v1180_v5 = vmin.f32 %v1178_v48, %v1179_v59  ;;  %v875_v8 = vmul.f32 %v7019_v57, %v7019_v57  ;;  %v1173_v11 = vmin.f32 %v1171_v40, %v1172_v56  ;;  %v918_v12 = vadd.f32 %v917_v46, %v877_v1 }
 0x1c4   :  { %v7034_v15 = vadd.f32 %v754_v2, %v7016_v52  ;;  %v899_v16 = vadd.f32 %v867_v47, %v859_v14  ;;  %v7036_v51 = vadd.f32 %v890_v6, %v874_v3  ;;  %v7039_v63 = vadd.f32 %v763_v7, %v7019_v57 }
 0x1c5   :  { %v1295_v9 = vrot.slane %v1180_v5, 6  ;;  %v774_v13 = vadd.f32 %v773_v49, %v655_v4  ;;  %v7041_v17 = vmax.f32 %v1006_v34, %v1007_v53  ;;  %v884_v0 = vmul.f32 %v655_v4, %v655_v4 }
 0x1c6   :  { %v7043_v43 = vadd.f32 %v899_v16, %v875_v8  ;;  %v1058_v18 = vmax.f32 %v7003_v20, %v655_v4  ;;  %v7046_v19 = vmax.f32 %v1013_v35, %v1014_v54  ;;  %v1237_v22 = vmin.f32 %v7003_v20, %v655_v4 }
 0x1c7   :  { %v1307_v21 = vsel %vm92_vm0, %v1173_v11, %v1295_v9  ;;  %v775_v14 = vrot.slane %v774_v13, 4  ;;  %v910_v24 = vadd.f32 %v909_v60, %v884_v0  ;;  %v783_v26 = vadd.f32 %v782_v61, %v674_v10 }
 0x1c8   :  { %v7051_v23 = vsel %vm852_vm4, %v1307_v21, %v1308_v55  ;;  %v1059_v25 = vrot.slane %v1058_v18, 4  ;;  %v999_v27 = vmax.f32 %v997_v45, %v998_v62  ;;  %v1238_v29 = vrot.slane %v1237_v22, 4 }
 0x1c9   :  { %v776_v28 = vadd.f32 %v775_v14, %v774_v13  ;;  %v885_v30 = vmul.f32 %v674_v10, %v674_v10  ;;  %v911_v31 = vrot.slane %v910_v24, 4  ;;  %v784_v34 = vrot.slane %v783_v26, 4 }
 0x1ca   :  { %v1060_v33 = vmax.f32 %v1058_v18, %v1059_v25  ;;  %v1065_v35 = vmax.f32 %v7005_v32, %v674_v10  ;;  %v1239_v37 = vmin.f32 %v1237_v22, %v1238_v29  ;;  %v1244_v20 = vmin.f32 %v7005_v32, %v674_v10 }
 0x1cb   :  { %v777_v36 = vrot.slane %v776_v28, 2  ;;  %v919_v38 = vadd.f32 %v918_v12, %v885_v30  ;;  %v912_v40 = vadd.f32 %v911_v31, %v910_v24  ;;  %v785_v42 = vadd.f32 %v784_v34, %v783_v26  ;;  %v617_v12 = vpop.f32.mrf.mxu2 }
 0x1cc   :  { %v1061_v41 = vrot.slane %v1060_v33, 2  ;;  %v1066_v44 = vrot.slane %v1065_v35, 4  ;;  %v1240_v47 = vrot.slane %v1239_v37, 2  ;;  %v1245_v48 = vrot.slane %v1244_v20, 4 }
 0x1cd   :  { %v778_v46 = vadd.f32 %v777_v36, %v776_v28  ;;  %v920_v45 = vrot.slane %v919_v38, 4  ;;  %v1000_v49 = vrot.slane %v999_v27, 1  ;;  %v913_v50 = vrot.slane %v912_v40, 2 }
 0x1ce   :  { %v786_v53 = vrot.slane %v785_v42, 2  ;;  %v1067_v54 = vmax.f32 %v1065_v35, %v1066_v44  ;;  %v1241_v56 = vmin.f32 %v1239_v37, %v1240_v47  ;;  %v1246_v60 = vmin.f32 %v1244_v20, %v1245_v48 }
 0x1cf   :  { %v779_v55 = vrot.slane %v778_v46, 1  ;;  %v921_v59 = vadd.f32 %v920_v45, %v919_v38  ;;  %v914_v61 = vadd.f32 %v913_v50, %v912_v40  ;;  %v1062_v62 = vmax.f32 %v1060_v33, %v1061_v41  ;;  %v636_v33 = vpop.f32.mrf.mxu3 }
 0x1d0   :  { %v787_v1 = vadd.f32 %v786_v53, %v785_v42  ;;  %v1068_v32 = vrot.slane %v1067_v54, 2  ;;  %v1242_v3 = vrot.slane %v1241_v56, 1  ;;  %v1247_v5 = vrot.slane %v1246_v60, 2 }
 0x1d1   :  { %v780_v2 = vadd.f32 %v779_v55, %v778_v46  ;;  %v922_v4 = vrot.slane %v921_v59, 2  ;;  %v992_v6 = vmax.f32 %v7007_v39, %v991_v58  ;;  %v7058_v7 = vmax.f32 %v999_v27, %v1000_v49  ;;  %v7075_v49 = vpop.f32.mrf.mxu0 }
 0x1d2   :  { %v915_v8 = vrot.slane %v914_v61, 1  ;;  %v788_v11 = vrot.slane %v787_v1, 1  ;;  %v1243_v16 = vmin.f32 %v1241_v56, %v1242_v3  ;;  %v1248_v13 = vmin.f32 %v1246_v60, %v1247_v5 }
 0x1d3   :  { %v923_v9 = vadd.f32 %v922_v4, %v921_v59  ;;  %v835_v10 = vrot.slane %v780_v2, 6  ;;  %v1069_v21 = vmax.f32 %v1067_v54, %v1068_v32  ;;  %v1063_v14 = vrot.slane %v1062_v62, 1 }
 0x1d4   :  { %v916_v0 = vadd.f32 %v915_v8, %v914_v61  ;;  %v789_v18 = vadd.f32 %v788_v11, %v787_v1  ;;  %v1249_v24 = vrot.slane %v1248_v13, 1  ;;  %v756_v25 = vadd.f32 %v7034_v15, %v617_v12 }
 0x1d5   :  { %v924_v22 = vrot.slane %v923_v9, 1  ;;  %v1302_v39 = vrot.slane %v1243_v16, 4  ;;  %v882_v27 = vmul.f32 %v617_v12, %v617_v12  ;;  %v1044_v31 = vmax.f32 %v7016_v52, %v617_v12 }
 0x1d6   :  { %v971_v26 = vrot.slane %v916_v0, 6  ;;  %v836_v58 = vrot.slane %v789_v18, 5  ;;  %v1250_v29 = vmin.f32 %v1248_v13, %v1249_v24  ;;  %v757_v30 = vrot.slane %v756_v25, 4 }
 0x1d7   :  { %v925_v28 = vadd.f32 %v924_v22, %v923_v9  ;;  %v1070_v35 = vrot.slane %v1069_v21, 1  ;;  %v892_v36 = vadd.f32 %v7036_v51, %v882_v27  ;;  %v1223_v37 = vmin.f32 %v7016_v52, %v617_v12 }
 0x1d8   :  { %v7063_v34 = vsel %vm843_vm5, %v835_v10, %v836_v58  ;;  %v1303_v15 = vrot.slane %v1250_v29, 2  ;;  %v758_v20 = vadd.f32 %v757_v30, %v756_v25  ;;  %v1045_v40 = vrot.slane %v1044_v31, 4  ;;  %v7090_v30 = vpop.f32.mrf.mxu2 }
 0x1d9   :  { %v972_v38 = vrot.slane %v925_v28, 5  ;;  %v1117_v41 = vrot.slane %v7041_v17, 4  ;;  %v993_v42 = vrot.slane %v992_v6, 1  ;;  %v893_v44 = vrot.slane %v892_v36, 4  ;;  %v7088_v58 = vpop.f32.mrf.mxu0 }
 0x1da   :  { %v765_v46 = vadd.f32 %v7039_v63, %v636_v33  ;;  %v7073_v45 = vsel %vm850_vm3, %v1302_v39, %v1303_v15  ;;  %v759_v48 = vrot.slane %v758_v20, 2  ;;  %v1046_v51 = vmax.f32 %v1044_v31, %v1045_v40 }
 0x1db   :  { %v7070_v47 = vsel %vm843_vm5, %v971_v26, %v972_v38  ;;  %v1064_v52 = vmax.f32 %v1062_v62, %v1063_v14  ;;  %v1071_v50 = vmax.f32 %v1069_v21, %v1070_v35  ;;  %v894_v53 = vadd.f32 %v893_v44, %v892_v36  ;;  %v7081_v62 = vpop.f32.mrf.mxu1 }
 0x1dc   :  { %v766_v54 = vrot.slane %v765_v46, 4  ;;  %v1116_v17 = vrot.slane %v7058_v7, 6  ;;  %v1224_v55 = vrot.slane %v1223_v37, 4  ;;  %v883_v56 = vmul.f32 %v636_v33, %v636_v33 }
 0x1dd   :  { %v1051_v63 = vmax.f32 %v7019_v57, %v636_v33  ;;  %v1118_v59 = vrot.slane %v7046_v19, 2  ;;  %v994_v60 = vmax.f32 %v992_v6, %v993_v42  ;;  %v760_v61 = vadd.f32 %v759_v48, %v758_v20 }
 0x1de   :  { %v767_v1 = vadd.f32 %v766_v54, %v765_v46  ;;  %v895_v32 = vrot.slane %v894_v53, 2  ;;  %v1047_v2 = vrot.slane %v1046_v51, 2  ;;  %v901_v3 = vadd.f32 %v7043_v43, %v883_v56 }
 0x1df   :  { %v1052_v4 = vrot.slane %v1051_v63, 4  ;;  %v1123_v5 = vrot.slane %v1064_v52, 4  ;;  %v1124_v8 = vrot.slane %v1071_v50, 2  ;;  %v1128_v7 = vsel %vm92_vm0, %v994_v60, %v1116_v17  ;;  %v7103_v17 = vpop.f32.mrf.mxu3 }
 0x1e0   :  { %v768_v11 = vrot.slane %v767_v1, 2  ;;  %v1225_v12 = vmin.f32 %v1223_v37, %v1224_v55  ;;  %v902_v16 = vrot.slane %v901_v3, 4  ;;  %v1129_v19 = vsel %vm850_vm3, %v1117_v41, %v1118_v59 }
 0x1e1   :  { %v1053_v9 = vmax.f32 %v1051_v63, %v1052_v4  ;;  %v761_v6 = vrot.slane %v760_v61, 1  ;;  %v896_v10 = vadd.f32 %v895_v32, %v894_v53  ;;  %v1048_v0 = vmax.f32 %v1046_v51, %v1047_v2 }
 0x1e2   :  { %v769_v13 = vadd.f32 %v768_v11, %v767_v1  ;;  %v903_v18 = vadd.f32 %v902_v16, %v901_v3  ;;  %v1130_v43 = vsel %vm852_vm4, %v1128_v7, %v1129_v19  ;;  %v1135_v14 = vsel %vm850_vm3, %v1123_v5, %v1124_v8 }
 0x1e3   :  { %v1054_v21 = vrot.slane %v1053_v9, 2  ;;  %v1230_v24 = vmin.f32 %v7019_v57, %v636_v33  ;;  %v1226_v25 = vrot.slane %v1225_v12, 2  ;;  %v762_v27 = vadd.f32 %v761_v6, %v760_v61  ;;  %v7096_v42 = vpop.f32.mrf.mxu1 }
 0x1e4   :  { %v770_v22 = vrot.slane %v769_v13, 1  ;;  %v904_v26 = vrot.slane %v903_v18, 2  ;;  %v897_v31 = vrot.slane %v896_v10, 1  ;;  %v1049_v35 = vrot.slane %v1048_v0, 1 }
 0x1e5   :  { %v1055_v39 = vmax.f32 %v1053_v9, %v1054_v21  ;;  %v1231_v29 = vrot.slane %v1230_v24, 4  ;;  %v1030_v57 = vmax.f32 %v7075_v49, %v7088_v58  ;;  %v1209_v33 = vmin.f32 %v7075_v49, %v7088_v58  ;;  %v7116_v9 = vpop.f32.mrf.mxu2 }
 0x1e6   :  { %v771_v28 = vadd.f32 %v770_v22, %v769_v13  ;;  %v905_v36 = vadd.f32 %v904_v26, %v903_v18  ;;  %v1227_v20 = vmin.f32 %v1225_v12, %v1226_v25  ;;  %v1050_v52 = vmax.f32 %v1048_v0, %v1049_v35 }
 0x1e7   :  { %v1056_v37 = vrot.slane %v1055_v39, 1  ;;  %v1232_v15 = vmin.f32 %v1230_v24, %v1231_v29  ;;  %v1031_v48 = vrot.slane %v1030_v57, 4  ;;  %v1210_v51 = vrot.slane %v1209_v33, 4 }
 0x1e8   :  { %v834_v38 = vrot.slane %v771_v28, 7  ;;  %v906_v40 = vrot.slane %v905_v36, 1  ;;  %v898_v55 = vadd.f32 %v897_v31, %v896_v10  ;;  %v1037_v59 = vmax.f32 %v7081_v62, %v7096_v42  ;;  %v7127_v31 = vpop.f32.mrf.mxu3 }
 0x1e9   :  { %v1057_v41 = vmax.f32 %v1055_v39, %v1056_v37  ;;  %v1233_v46 = vrot.slane %v1232_v15, 2  ;;  %v1032_v63 = vmax.f32 %v1030_v57, %v1031_v48  ;;  %v1211_v1 = vmin.f32 %v1209_v33, %v1210_v51 }
 0x1ea   :  { %v842_v44 = vsel %vm841_vm6, %v762_v27, %v834_v38  ;;  %v907_v53 = vadd.f32 %v906_v40, %v905_v36  ;;  %v1216_v32 = vmin.f32 %v7081_v62, %v7096_v42  ;;  %v1228_v2 = vrot.slane %v1227_v20, 1  ;;  %v729_v38 = vpop.f32.mrf.mxu0 }
 0x1eb   :  { %v7101_v50 = vsel %vm92_vm0, %v842_v44, %v7063_v34  ;;  %v1122_v54 = vrot.slane %v1057_v41, 6  ;;  %v1234_v56 = vmin.f32 %v1232_v15, %v1233_v46  ;;  %v1038_v8 = vrot.slane %v1037_v59, 4  ;;  %v7137_v40 = vpop.f32.mrf.mxu1 }
 0x1ec   :  { %v970_v60 = vrot.slane %v907_v53, 7  ;;  %v1217_v11 = vrot.slane %v1216_v32, 4  ;;  %v1033_v16 = vrot.slane %v1032_v63, 2  ;;  %v1212_v6 = vrot.slane %v1211_v1, 2 }
 0x1ed   :  { %v1134_v61 = vsel %vm92_vm0, %v1050_v52, %v1122_v54  ;;  %v1235_v3 = vrot.slane %v1234_v56, 1  ;;  %v1039_v13 = vmax.f32 %v1037_v59, %v1038_v8  ;;  %v1229_v0 = vmin.f32 %v1227_v20, %v1228_v2 }
 0x1ee   :  { %v1136_v34 = vsel %vm852_vm4, %v1134_v61, %v1135_v14  ;;  %v977_v4 = vsel %vm841_vm6, %v898_v55, %v970_v60  ;;  %v1218_v10 = vmin.f32 %v1216_v32, %v1217_v11  ;;  %v1034_v39 = vmax.f32 %v1032_v63, %v1033_v16 }
 0x1ef   :  { %v1142_v5 = vrot.slane %v1136_v34, 7  ;;  %v7114_v7 = vsel %vm92_vm0, %v977_v4, %v7070_v47  ;;  %v1236_v12 = vmin.f32 %v1234_v56, %v1235_v3  ;;  %v1040_v22 = vrot.slane %v1039_v13, 2 }
 0x1f0   :  { %v1219_v24 = vrot.slane %v1218_v10, 2  ;;  %v1016_v47 = vmax.f32 %v7090_v30, %v7116_v9  ;;  %v1213_v27 = vmin.f32 %v1211_v1, %v1212_v6  ;;  %v1195_v37 = vmin.f32 %v7090_v30, %v7116_v9 }
 0x1f1   :  { %v1144_v19 = vsel %vm1143_vm7, %v1142_v5, %v1130_v43  ;;  %v1301_v21 = vrot.slane %v1236_v12, 6  ;;  %v1041_v28 = vmax.f32 %v1039_v13, %v1040_v22  ;;  %v1202_v20 = vmin.f32 %v7103_v17, %v7127_v31 }
 0x1f2   :  { %v1146_v18 = vsel %vm1145_vm8, %v1142_v5, %v1144_v19  ;;  %v1017_v29 = vrot.slane %v1016_v47, 4  ;;  %v1220_v36 = vmin.f32 %v1218_v10, %v1219_v24  ;;  %v1196_v33 = vrot.slane %v1195_v37, 4 }
 0x1f3   :  { %v1148_v14 = vsel %vm1147_vm9, %v1142_v5, %v1146_v18  ;;  %v1313_v26 = vsel %vm92_vm0, %v1229_v0, %v1301_v21  ;;  %v1035_v44 = vrot.slane %v1034_v39, 1  ;;  %v1214_v46 = vrot.slane %v1213_v27, 1  ;;  %v731_v18 = vpop.f32.mrf.mxu0 }
 0x1f4   :  { %v1150_v25 = vsel %vm1149_vm10, %v1142_v5, %v1148_v14  ;;  %v1315_v43 = vsel %vm852_vm4, %v1313_v26, %v7073_v45  ;;  %v1018_v15 = vmax.f32 %v1016_v47, %v1017_v29  ;;  %v1023_v45 = vmax.f32 %v7103_v17, %v7127_v31  ;;  %v750_v26 = vpop.f32.mrf.mxu1 }
 0x1f5   :  { %1389 = vst [vmem:[#allocation1] ss:$4 sm:$0xff] %v1150_v25  ;;  %v1321_v35 = vrot.slane %v1315_v43, 7  ;;  %v1042_v48 = vrot.slane %v1041_v28, 1  ;;  %v1221_v52 = vrot.slane %v1220_v36, 1  ;;  %v872_v55 = vmul.f32 %v7088_v58, %v7088_v58 }
 0x1f6   :  { %v1019_v53 = vrot.slane %v1018_v15, 2  ;;  %v1024_v54 = vrot.slane %v1023_v45, 4  ;;  %v1197_v56 = vmin.f32 %v1195_v37, %v1196_v33  ;;  %v1203_v63 = vrot.slane %v1202_v20, 4 }
 0x1f7   :  { %v1322_v57 = vsel %vm1143_vm7, %v1321_v35, %v7051_v23  ;;  %v864_v59 = vmul.f32 %v7075_v49, %v7075_v49  ;;  %v873_v60 = vmul.f32 %v7096_v42, %v7096_v42  ;;  %v865_v1 = vmul.f32 %v7081_v62, %v7081_v62 }
 0x1f8   :  { %v1323_v41 = vsel %vm1145_vm8, %v1321_v35, %v1322_v57  ;;  %v1025_v61 = vmax.f32 %v1023_v45, %v1024_v54  ;;  %v7154_v32 = vmul.f32 %v7090_v30, %v7090_v30  ;;  %v1036_v2 = vmax.f32 %v1034_v39, %v1035_v44 }
 0x1f9   :  { %v1324_v51 = vsel %vm1147_vm9, %v1321_v35, %v1323_v41  ;;  %v7156_v34 = vmin.f32 %v1213_v27, %v1214_v46  ;;  %v7160_v3 = vmul.f32 %v7103_v17, %v7103_v17  ;;  %v1043_v4 = vmax.f32 %v1041_v28, %v1042_v48 }
 0x1fa   :  { %v7142_v23 = vsel %vm1149_vm10, %v1321_v35, %v1324_v51  ;;  %v7162_v5 = vmin.f32 %v1220_v36, %v1221_v52  ;;  %v1020_v8 = vmax.f32 %v1018_v15, %v1019_v53  ;;  %v808_v11 = vadd.f32 %v7088_v58, %v7075_v49 }
 0x1fb   :  { %v944_v12 = vadd.f32 %v872_v55, %v864_v59  ;;  %v1198_v16 = vrot.slane %v1197_v56, 2  ;;  %v1204_v19 = vmin.f32 %v1202_v20, %v1203_v63  ;;  %v817_v6 = vadd.f32 %v7096_v42, %v7081_v62  ;;  %v7182_v20 = vpop.f32.mrf.mxu2 }
 0x1fc   :  { %v953_v13 = vadd.f32 %v873_v60, %v865_v1  ;;  %v1026_v10 = vrot.slane %v1025_v61, 2  ;;  %v880_v0 = vmul.f32 %v729_v38, %v729_v38  ;;  %v1120_v21 = vrot.slane %v1036_v2, 4 }
 0x1fd   :  { %v1299_v14 = vrot.slane %v7156_v34, 4  ;;  %v870_v22 = vmul.f32 %v7116_v9, %v7116_v9  ;;  %v809_v24 = vadd.f32 %v808_v11, %v729_v38  ;;  %v1121_v47 = vrot.slane %v1043_v4, 2 }
 0x1fe   :  { %v1300_v49 = vrot.slane %v7162_v5, 2  ;;  %v1021_v58 = vrot.slane %v1020_v8, 1  ;;  %v871_v25 = vmul.f32 %v7127_v31, %v7127_v31  ;;  %v7174_v62 = vmin.f32 %v1197_v56, %v1198_v16  ;;  %v6347_v5 = vld [vmem:[%s9819_s10 + $0x7ec] sm:$0xf0] }
 0x1ff   :  { %v1205_v42 = vrot.slane %v1204_v19, 2  ;;  %v818_v39 = vadd.f32 %v817_v6, %v7137_v40  ;;  %v810_v43 = vadd.f32 %v809_v24, %v731_v18  ;;  %v1027_v27 = vmax.f32 %v1025_v61, %v1026_v10 }
 0x200   :  { %v945_v28 = vadd.f32 %v944_v12, %v880_v0  ;;  %v888_v29 = vmul.f32 %v731_v18, %v731_v18  ;;  %v1086_v35 = vmax.f32 %v729_v38, %v731_v18  ;;  %v881_v36 = vmul.f32 %v7137_v40, %v7137_v40 }
 0x201   :  { %v811_v37 = vrot.slane %v810_v43, 4  ;;  %v1265_v15 = vmin.f32 %v729_v38, %v731_v18  ;;  %v819_v57 = vadd.f32 %v818_v39, %v750_v26  ;;  %v7180_v33 = vsel %vm850_vm3, %v1120_v21, %v1121_v47 }
 0x202   :  { %v1022_v45 = vmax.f32 %v1020_v8, %v1021_v58  ;;  %v946_v41 = vadd.f32 %v945_v28, %v888_v29  ;;  %v1087_v44 = vrot.slane %v1086_v35, 4  ;;  %v790_v46 = vadd.f32 %v7116_v9, %v7090_v30  ;;  %v7190_v9 = vpop.f32.mrf.mxu3 }
 0x203   :  { %v812_v48 = vadd.f32 %v811_v37, %v810_v43  ;;  %v1266_v51 = vrot.slane %v1265_v15, 4  ;;  %v820_v52 = vrot.slane %v819_v57, 4  ;;  %v1200_v53 = vrot.slane %v7174_v62, 1 }
 0x204   :  { %v1028_v54 = vrot.slane %v1027_v27, 1  ;;  %v947_v55 = vrot.slane %v946_v41, 4  ;;  %v1088_v38 = vmax.f32 %v1086_v35, %v1087_v44  ;;  %v1206_v56 = vmin.f32 %v1204_v19, %v1205_v42 }
 0x205   :  { %v954_v63 = vadd.f32 %v953_v13, %v881_v36  ;;  %v813_v59 = vrot.slane %v812_v48, 2  ;;  %v1267_v60 = vmin.f32 %v1265_v15, %v1266_v51  ;;  %v821_v2 = vadd.f32 %v820_v52, %v819_v57 }
 0x206   :  { %v948_v61 = vadd.f32 %v947_v55, %v946_v41  ;;  %v1089_v1 = vrot.slane %v1088_v38, 2  ;;  %v889_v4 = vmul.f32 %v750_v26, %v750_v26  ;;  %v791_v8 = vadd.f32 %v790_v46, %v7182_v20 }
 0x207   :  { %v878_v30 = vmul.f32 %v7182_v20, %v7182_v20  ;;  %v1093_v11 = vmax.f32 %v7137_v40, %v750_v26  ;;  %v1272_v12 = vmin.f32 %v7137_v40, %v750_v26  ;;  %v1029_v16 = vmax.f32 %v1027_v27, %v1028_v54 }
 0x208   :  { %v949_v19 = vrot.slane %v948_v61, 2  ;;  %v822_v6 = vrot.slane %v821_v2, 2  ;;  %v955_v13 = vadd.f32 %v954_v63, %v889_v4  ;;  %v926_v10 = vadd.f32 %v870_v22, %v7154_v32  ;;  %v693_v32 = vpop.f32.mrf.mxu2 }
 0x209   :  { %v814_v0 = vadd.f32 %v813_v59, %v812_v48  ;;  %v1268_v18 = vrot.slane %v1267_v60, 2  ;;  %v1094_v21 = vrot.slane %v1093_v11, 4  ;;  %v1207_v24 = vrot.slane %v1206_v56, 1 }
 0x20a   :  { %v1090_v47 = vmax.f32 %v1088_v38, %v1089_v1  ;;  %v956_v58 = vrot.slane %v955_v13, 4  ;;  %v1273_v42 = vrot.slane %v1272_v12, 4  ;;  %v799_v39 = vadd.f32 %v7127_v31, %v7103_v17  ;;  %v712_v59 = vpop.f32.mrf.mxu3 }
 0x20b   :  { %v879_v43 = vmul.f32 %v7190_v9, %v7190_v9  ;;  %v823_v40 = vadd.f32 %v822_v6, %v821_v2  ;;  %v1095_v26 = vmax.f32 %v1093_v11, %v1094_v21  ;;  %v1119_v27 = vrot.slane %v1029_v16, 6 }
 0x20c   :  { %v927_v28 = vadd.f32 %v926_v10, %v878_v30  ;;  %v950_v29 = vadd.f32 %v949_v19, %v948_v61  ;;  %v957_v35 = vadd.f32 %v956_v58, %v955_v13  ;;  %v935_v22 = vadd.f32 %v871_v25, %v7160_v3 }
 0x20d   :  { %v815_v36 = vrot.slane %v814_v0, 1  ;;  %v1269_v37 = vmin.f32 %v1267_v60, %v1268_v18  ;;  %v1096_v15 = vrot.slane %v1095_v26, 2  ;;  %v7200_v57 = vmin.f32 %v1206_v56, %v1207_v24 }
 0x20e   :  { %v800_v41 = vadd.f32 %v799_v39, %v7190_v9  ;;  %v1091_v17 = vrot.slane %v1090_v47, 1  ;;  %v1274_v31 = vmin.f32 %v1272_v12, %v1273_v42  ;;  %v936_v44 = vadd.f32 %v935_v22, %v879_v43 }
 0x20f   :  { %v824_v46 = vrot.slane %v823_v40, 1  ;;  %v958_v48 = vrot.slane %v957_v35, 2  ;;  %v792_v51 = vadd.f32 %v791_v8, %v693_v32  ;;  %v7204_v52 = vsel %vm92_vm0, %v1022_v45, %v1119_v27 }
 0x210   :  { %v951_v54 = vrot.slane %v950_v29, 1  ;;  %v1097_v55 = vmax.f32 %v1095_v26, %v1096_v15  ;;  %v886_v3 = vmul.f32 %v693_v32, %v693_v32  ;;  %v816_v25 = vadd.f32 %v815_v36, %v814_v0 }
 0x211   :  { %v1270_v38 = vrot.slane %v1269_v37, 1  ;;  %v793_v63 = vrot.slane %v792_v51, 4  ;;  %v1072_v56 = vmax.f32 %v7182_v20, %v693_v32  ;;  %v7207_v60 = vmax.f32 %v1090_v47, %v1091_v17  ;;  %v6123_v17 = vld [vmem:[%s9819_s10 + $0xec] sm:$0xf0] }
 0x212   :  { %v1275_v61 = vrot.slane %v1274_v31, 2  ;;  %v928_v1 = vadd.f32 %v927_v28, %v886_v3  ;;  %v1251_v2 = vmin.f32 %v7182_v20, %v693_v32  ;;  %v825_v4 = vadd.f32 %v824_v46, %v823_v40  ;;  %v5049_v3 = vld [vmem:[%s9819_s10 + $0x2e0] sm:$0xf] }
 0x213   :  { %v959_v8 = vadd.f32 %v958_v48, %v957_v35  ;;  %v794_v45 = vadd.f32 %v793_v63, %v792_v51  ;;  %v1073_v30 = vrot.slane %v1072_v56, 4  ;;  %v7210_v11 = vadd.f32 %v951_v54, %v950_v29 }
 0x214   :  { %v1098_v12 = vrot.slane %v1097_v55, 1  ;;  %v929_v16 = vrot.slane %v928_v1, 4  ;;  %v801_v19 = vadd.f32 %v800_v41, %v712_v59  ;;  %v839_v6 = vrot.slane %v816_v25, 2  ;;  %v4793_v41 = vld [vmem:[%s9819_s10 + $0xe0] sm:$0xf] }
 0x215   :  { %v795_v13 = vrot.slane %v794_v45, 2  ;;  %v1074_v10 = vmax.f32 %v1072_v56, %v1073_v30  ;;  %v1252_v0 = vrot.slane %v1251_v2, 4  ;;  %v7212_v18 = vmin.f32 %v1269_v37, %v1270_v38  ;;  %v6187_v25 = vld [vmem:[%s9819_s10 + $0x2ec] sm:$0xf0] }
 0x216   :  { %v7214_v21 = vmin.f32 %v1274_v31, %v1275_v61  ;;  %v930_v24 = vadd.f32 %v929_v16, %v928_v1  ;;  %v802_v47 = vrot.slane %v801_v19, 4  ;;  %v1126_v20 = vrot.slane %v7207_v60, 4  ;;  %v4921_v31 = vld [vmem:[%s9819_s10 + $0x1e0] sm:$0xf] }
 0x217   :  { %v840_v58 = vrot.slane %v825_v4, 1  ;;  %v960_v42 = vrot.slane %v959_v8, 1  ;;  %v796_v39 = vadd.f32 %v795_v13, %v794_v45  ;;  %v975_v43 = vrot.slane %v7210_v11, 2  ;;  %v6119_v45 = vld [vmem:[%s9819_s10 + $0xcc] sm:$0xf0] }
 0x218   :  { %v7218_v40 = vmax.f32 %v1097_v55, %v1098_v12  ;;  %v931_v26 = vrot.slane %v930_v24, 2  ;;  %v803_v27 = vadd.f32 %v802_v47, %v801_v19  ;;  %v1075_v29 = vrot.slane %v1074_v10, 2  ;;  %v6155_v55 = vld [vmem:[%s9819_s10 + $0x1ec] sm:$0xf0]  ;;  %v4905_v19 = vld [vmem:[%s9819_s10 + $0x1c0] sm:$0xf] }
 0x219   :  { %v797_v28 = vrot.slane %v796_v39, 1  ;;  %v7220_v35 = vmin.f32 %v1251_v2, %v1252_v0  ;;  %v887_v32 = vmul.f32 %v712_v59, %v712_v59  ;;  %v1277_v22 = vrot.slane %v7214_v21, 1  ;;  %v5033_v47 = vld [vmem:[%s9819_s10 + $0x2c0] sm:$0xf] }
 0x21a   :  { %v932_v36 = vadd.f32 %v931_v26, %v930_v24  ;;  %v804_v37 = vrot.slane %v803_v27, 2  ;;  %v1079_v15 = vmax.f32 %v7190_v9, %v712_v59  ;;  %v7234_v46 = vsel %vm848_vm11, %v839_v6, %v840_v58  ;;  %v6151_v24 = vld [vmem:[%s9819_s10 + $0x1cc] sm:$0xf0]  ;;  %v4857_v11 = vld [vmem:[%s9819_s10 + $0x160] sm:$0xf] }
 0x21b   :  { %v7236_v48 = vadd.f32 %v960_v42, %v959_v8  ;;  %v937_v51 = vadd.f32 %v936_v44, %v887_v32  ;;  %v1258_v54 = vmin.f32 %v7190_v9, %v712_v59  ;;  %v1127_v38 = vrot.slane %v7218_v40, 2  ;;  %v5177_v9 = vld [vmem:[%s9819_s10 + $0x3e0] sm:$0xf]  ;;  %v6219_v44 = vld [vmem:[%s9819_s10 + $0x3ec] sm:$0xf0] }
 0x21c   :  { %v798_v63 = vadd.f32 %v797_v28, %v796_v39  ;;  %v805_v56 = vadd.f32 %v804_v37, %v803_v27  ;;  %v1080_v61 = vrot.slane %v1079_v15, 4  ;;  %v4777_v59 = vld [vmem:[%s9819_s10 + $0xc0] sm:$0xf]  ;;  %v7258_v1 = vmax.f32 %v1074_v10, %v1075_v29  ;;  %v6183_v58 = vld [vmem:[%s9819_s10 + $0x2cc] sm:$0xf0] }
 0x21d   :  { %v1254_v2 = vrot.slane %v7220_v35, 2  ;;  %v938_v4 = vrot.slane %v937_v51, 4  ;;  %v1259_v8 = vrot.slane %v1258_v54, 4  ;;  %v933_v30 = vrot.slane %v932_v36, 1  ;;  %v5161_v28 = vld [vmem:[%s9819_s10 + $0x3c0] sm:$0xf] }
 0x21e   :  { %v806_v12 = vrot.slane %v805_v56, 1  ;;  %v1081_v16 = vmax.f32 %v1079_v15, %v1080_v61  ;;  %v4794_v10 = vor.u32 %v6123_v17, %v4793_v41  ;;  %v4922_v0 = vor.u32 %v6155_v55, %v4921_v31  ;;  %v6215_v29 = vld [vmem:[%s9819_s10 + $0x3cc] sm:$0xf0]  ;;  %v4761_v17 = vld [vmem:[%s9819_s10 + $0xa0] sm:$0xf] }
 0x21f   :  { %v939_v6 = vadd.f32 %v938_v4, %v937_v51  ;;  %v1260_v13 = vmin.f32 %v1258_v54, %v1259_v8  ;;  %v837_v42 = vrot.slane %v798_v63, 4  ;;  %v5050_v27 = vor.u32 %v6187_v25, %v5049_v3  ;;  %v6115_v31 = vld [vmem:[%s9819_s10 + $0xac] sm:$0xf0]  ;;  %v4889_v25 = vld [vmem:[%s9819_s10 + $0x1a0] sm:$0xf] }
 0x220   :  { %v807_v39 = vadd.f32 %v806_v12, %v805_v56  ;;  %v1082_v26 = vrot.slane %v1081_v16, 2  ;;  %3039 = vmatpush.bf16.msra.mxu2 %v4794_v10  ;;  %3052 = vmatpush.bf16.msra.mxu3 %v4922_v0  ;;  %v5178_v15 = vor.u32 %v6219_v44, %v5177_v9  ;;  %v4778_v41 = vor.u32 %v6119_v45, %v4777_v59  ;;  %v6147_v63 = vld [vmem:[%s9819_s10 + $0x1ac] sm:$0xf0]  ;;  %v5017_v59 = vld [vmem:[%s9819_s10 + $0x2a0] sm:$0xf] }
 0x221   :  { %v940_v32 = vrot.slane %v939_v6, 2  ;;  %v1261_v37 = vrot.slane %v1260_v13, 2  ;;  %3065 = vmatpush.bf16.msrb.mxu0 %v5050_v27  ;;  %v4906_v55 = vor.u32 %v6151_v24, %v4905_v19  ;;  %v5034_v3 = vor.u32 %v6183_v58, %v5033_v47  ;;  %v6179_v4 = vld [vmem:[%s9819_s10 + $0x2ac] sm:$0xf0]  ;;  %v4745_v0 = vld [vmem:[%s9819_s10 + $0x80] sm:$0xf] }
 0x222   :  { %v838_v51 = vrot.slane %v807_v39, 3  ;;  %v1083_v54 = vmax.f32 %v1081_v16, %v1082_v26  ;;  %v934_v56 = vadd.f32 %v933_v30, %v932_v36  ;;  %3078 = vmatpush.bf16.msrb.mxu1 %v5178_v15  ;;  %v5162_v44 = vor.u32 %v6215_v29, %v5161_v28  ;;  %v5145_v36 = vld [vmem:[%s9819_s10 + $0x3a0] sm:$0xf]  ;;  %v6211_v30 = vld [vmem:[%s9819_s10 + $0x3ac] sm:$0xf0] }
 0x223   :  { %v941_v61 = vadd.f32 %v940_v32, %v939_v6  ;;  %v1262_v9 = vmin.f32 %v1260_v13, %v1261_v37  ;;  %v1077_v8 = vrot.slane %v7258_v1, 1  ;;  %v4762_v16 = vor.u32 %v6115_v31, %v4761_v17  ;;  %v6111_v24 = vld [vmem:[%s9819_s10 + $0x8c] sm:$0xf0]  ;;  %v4873_v39 = vld [vmem:[%s9819_s10 + $0x180] sm:$0xf] }
 0x224   :  { %v847_v45 = vsel %vm846_vm12, %v837_v42, %v838_v51  ;;  %v1084_v12 = vrot.slane %v1083_v54, 1  ;;  %3040 = vmatpush.bf16.msra.mxu2 %v4778_v41  ;;  %3053 = vmatpush.bf16.msra.mxu3 %v4906_v55  ;;  %v4890_v10 = vor.u32 %v6147_v63, %v4889_v25  ;;  %v976_v47 = vrot.slane %v7236_v48, 1  ;;  %v6143_v26 = vld [vmem:[%s9819_s10 + $0x18c] sm:$0xf0] }
 0x225   :  { %v851_v19 = vsel %vm850_vm3, %v847_v45, %v7234_v46  ;;  %v942_v6 = vrot.slane %v941_v61, 1  ;;  %v1263_v13 = vrot.slane %v1262_v9, 1  ;;  %3066 = vmatpush.bf16.msrb.mxu0 %v5034_v3  ;;  %v5018_v46 = vor.u32 %v6179_v4, %v5017_v59  ;;  %v6175_v32 = vld [vmem:[%s9819_s10 + $0x28c] sm:$0xf0] }
 0x226   :  { %v853_v58 = vsel %vm852_vm4, %v7101_v50, %v851_v19  ;;  %v1085_v42 = vmax.f32 %v1083_v54, %v1084_v12  ;;  %v973_v27 = vrot.slane %v934_v56, 4  ;;  %v1255_v28 = vmin.f32 %v7220_v35, %v1254_v2  ;;  %3079 = vmatpush.bf16.msrb.mxu1 %v5162_v44  ;;  %v5001_v50 = vld [vmem:[%s9819_s10 + $0x280] sm:$0xf]  ;;  %v6207_v17 = vld [vmem:[%s9819_s10 + $0x38c] sm:$0xf0] }
 0x227   :  { %v943_v48 = vadd.f32 %v942_v6, %v941_v61  ;;  %v5146_v29 = vor.u32 %v6211_v30, %v5145_v36  ;;  %v7337_v37 = vmin.f32 %v7214_v21, %v1277_v22  ;;  %v1078_v15 = vmax.f32 %v7258_v1, %v1077_v8  ;;  %v5129_v2 = vld [vmem:[%s9819_s10 + $0x380] sm:$0xf]  ;;  %v6107_v63 = vld [vmem:[%s9819_s10 + $0x6c] sm:$0xf0] }
 0x228   :  { %v1125_v41 = vrot.slane %v1085_v42, 6  ;;  %v7340_v35 = vmul.f32 0.03125, %v853_v58  ;;  %v1264_v51 = vmin.f32 %v1262_v9, %v1263_v13  ;;  %3041 = vmatpush.bf16.msra.mxu2 %v4762_v16  ;;  %3054 = vmatpush.bf16.msra.mxu3 %v4890_v10  ;;  %v4746_v54 = vor.u32 %v6111_v24, %v4745_v0  ;;  %v4729_v22 = vld [vmem:[%s9819_s10 + $0x60] sm:$0xf]  ;;  %v6171_v61 = vld [vmem:[%s9819_s10 + $0x26c] sm:$0xf0] }
 0x229   :  { %v974_v31 = vrot.slane %v943_v48, 3  ;;  %v4874_v21 = vor.u32 %v6143_v26, %v4873_v39  ;;  %v981_v1 = vsel %vm848_vm11, %v975_v43, %v976_v47  ;;  %v1138_v55 = vsel %vm850_vm3, %v1126_v20, %v1127_v38  ;;  %3067 = vmatpush.bf16.msrb.mxu0 %v5018_v46  ;;  %v6139_v43 = vld [vmem:[%s9819_s10 + $0x16c] sm:$0xf0]  ;;  %v4985_v56 = vld [vmem:[%s9819_s10 + $0x260] sm:$0xf] }
 0x22a   :  { %v1137_v3 = vsel %vm92_vm0, %v1078_v15, %v1125_v41  ;;  %v5002_v25 = vor.u32 %v6175_v32, %v5001_v50  ;;  %v1256_v40 = vrot.slane %v1255_v28, 1  ;;  %3080 = vmatpush.bf16.msrb.mxu1 %v5146_v29  ;;  %v5130_v38 = vor.u32 %v6207_v17, %v5129_v2  ;;  %v5113_v8 = vld [vmem:[%s9819_s10 + $0x360] sm:$0xf]  ;;  %v6203_v45 = vld [vmem:[%s9819_s10 + $0x36c] sm:$0xf0] }
 0x22b   :  { %v980_v60 = vsel %vm846_vm12, %v973_v27, %v974_v31  ;;  %v1139_v20 = vsel %vm852_vm4, %v1137_v3, %v1138_v55  ;;  %v1133_v9 = vsel %vm852_vm4, %v7204_v52, %v7180_v33  ;;  %v1346_v4 = vmul.f32 %v7340_v35, %v7340_v35  ;;  %v4713_v36 = vld [vmem:[%s9819_s10 + $0x40] sm:$0xf]  ;;  %v6103_v30 = vld [vmem:[%s9819_s10 + $0x4c] sm:$0xf0] }
 0x22c   :  { %v982_v44 = vsel %vm850_vm3, %v980_v60, %v981_v1  ;;  %v1153_v59 = vrot.slane %v1139_v20, 7  ;;  %v1304_v16 = vrot.slane %v1264_v51, 6  ;;  %3042 = vmatpush.bf16.msra.mxu2 %v4746_v54  ;;  %3055 = vmatpush.bf16.msra.mxu3 %v4874_v21  ;;  %v4730_v33 = vor.u32 %v6107_v63, %v4729_v22  ;;  %v4841_v10 = vld [vmem:[%s9819_s10 + $0x140] sm:$0xf]  ;;  %v6135_v0 = vld [vmem:[%s9819_s10 + $0x14c] sm:$0xf0] }
 0x22d   :  { %v983_v12 = vsel %vm852_vm4, %v7114_v7, %v982_v44  ;;  %v4858_v52 = vor.u32 %v6139_v43, %v4857_v11  ;;  %v1305_v19 = vrot.slane %v7212_v18, 4  ;;  %3068 = vmatpush.bf16.msrb.mxu0 %v5002_v25  ;;  %v4986_v7 = vor.u32 %v6171_v61, %v4985_v56  ;;  %v4969_v42 = vld [vmem:[%s9819_s10 + $0x240] sm:$0xf]  ;;  %v6167_v46 = vld [vmem:[%s9819_s10 + $0x24c] sm:$0xf0] }
 0x22e   :  { %v1154_v6 = vsel %vm1143_vm7, %v1153_v59, %v1133_v9  ;;  %v1345_v13 = vmul.f32 0.03125, %v983_v12  ;;  %v1306_v24 = vrot.slane %v7337_v37, 2  ;;  %v1257_v47 = vmin.f32 %v1255_v28, %v1256_v40  ;;  %3081 = vmatpush.bf16.msrb.mxu1 %v5130_v38  ;;  %v5097_v28 = vld [vmem:[%s9819_s10 + $0x340] sm:$0xf]  ;;  %v6199_v48 = vld [vmem:[%s9819_s10 + $0x34c] sm:$0xf0] }
 0x22f   :  { %v1155_v58 = vsel %vm1145_vm8, %v1153_v59, %v1154_v6  ;;  %v5114_v18 = vor.u32 %v6203_v45, %v5113_v8  ;;  %v4714_v27 = vor.u32 %v6103_v30, %v4713_v36  ;;  %v4697_v29 = vld [vmem:[%s9819_s10 + $0x20] sm:$0xf]  ;;  %v4842_v37 = vor.u32 %v6135_v0, %v4841_v10  ;;  %v6099_v15 = vld [vmem:[%s9819_s10 + $0x2c] sm:$0xf0] }
 0x230   :  { %v1156_v39 = vsel %vm1147_vm9, %v1153_v59, %v1155_v58  ;;  %v1347_v26 = vsub.f32 %v1345_v13, %v1346_v4  ;;  %v1316_v32 = vsel %vm92_vm0, %v1257_v47, %v1304_v16  ;;  %3043 = vmatpush.bf16.msra.mxu2 %v4730_v33  ;;  %3056 = vmatpush.bf16.msra.mxu3 %v4858_v52  ;;  %v4825_v41 = vld [vmem:[%s9819_s10 + $0x120] sm:$0xf]  ;;  %v6131_v2 = vld [vmem:[%s9819_s10 + $0x12c] sm:$0xf0]  ;;  %v1298_v17 = vrot.slane %v7200_v57, 6 }
 0x231   :  { %v1157_v50 = vsel %vm1149_vm10, %v1153_v59, %v1156_v39  ;;  %3069 = vmatpush.bf16.msrb.mxu0 %v4986_v7  ;;  %v4970_v51 = vor.u32 %v6167_v46, %v4969_v42  ;;  %v4953_v54 = vld [vmem:[%s9819_s10 + $0x220] sm:$0xf]  ;;  %v1317_v21 = vsel %vm850_vm3, %v1305_v19, %v1306_v24  ;;  %v5098_v22 = vor.u32 %v6199_v48, %v5097_v28  ;;  %v6163_v1 = vld [vmem:[%s9819_s10 + $0x22c] sm:$0xf0] }
 0x232   :  { %v1348_v31 = vmax.f32 %v1347_v26, 0.0  ;;  %1391 = vst [vmem:[#allocation1 + $0x20] ss:$4 sm:$0xff] %v1157_v50  ;;  %3082 = vmatpush.bf16.msrb.mxu1 %v5114_v18  ;;  %v5081_v57 = vld [vmem:[%s9819_s10 + $0x320] sm:$0xf]  ;;  %v1318_v3 = vsel %vm852_vm4, %v1316_v32, %v1317_v21  ;;  %v1201_v43 = vmin.f32 %v7174_v62, %v1200_v53  ;;  %v4698_v40 = vor.u32 %v6099_v15, %v4697_v29 }
 0x233   :  { %v6195_v55 = vld [vmem:[%s9819_s10 + $0x32c] sm:$0xf0]  ;;  %v4681_v63 = vld [vmem:[%s9819_s10] sm:$0xf]  ;;  %v4826_v60 = vor.u32 %v6131_v2, %v4825_v41  ;;  %v4954_v62 = vor.u32 %v6163_v1, %v4953_v54  ;;  %v7480_v59 = vrot.slane %v1318_v3, 7  ;;  %v1311_v6 = vsel %vm850_vm3, %v1299_v14, %v1300_v49 }
 0x234   :  { %v7449_v25 = vadd.f32 1e-05, %v1348_v31  ;;  %v6095_v11 = vld [vmem:[%s9819_s10 + $0xc] sm:$0xf0]  ;;  %3044 = vmatpush.bf16.msra.mxu2 %v4714_v27  ;;  %3057 = vmatpush.bf16.msra.mxu3 %v4842_v37  ;;  %v4809_v20 = vld [vmem:[%s9819_s10 + $0x100] sm:$0xf]  ;;  %v1310_v44 = vsel %vm92_vm0, %v1201_v43, %v1298_v17  ;;  %v5082_v4 = vor.u32 %v6195_v55, %v5081_v57 }
 0x235   :  { %v6127_v38 = vld [vmem:[%s9819_s10 + $0x10c] sm:$0xf0]  ;;  %v4937_v56 = vld [vmem:[%s9819_s10 + $0x200] sm:$0xf]  ;;  %3070 = vmatpush.bf16.msrb.mxu0 %v4970_v51  ;;  %v4682_v13 = vor.u32 %v6095_v11, %v4681_v63  ;;  %v1312_v34 = vsel %vm852_vm4, %v1310_v44, %v1311_v6 }
 0x236   :  { %6435 = vrsqrt.f32 %v7449_v25  ;;  %v6159_v53 = vld [vmem:[%s9819_s10 + $0x20c] sm:$0xf0]  ;;  %v5065_v61 = vld [vmem:[%s9819_s10 + $0x300] sm:$0xf]  ;;  %3083 = vmatpush.bf16.msrb.mxu1 %v5098_v22  ;;  %v4810_v7 = vor.u32 %v6127_v38, %v4809_v20  ;;  %v1329_v47 = vsel %vm1143_vm7, %v7480_v59, %v1312_v34  ;;  %vm1357_vm14 = vweird.f32 %v7449_v25 }
 0x237   :  { %v6191_v9 = vld [vmem:[%s9819_s10 + $0x30c] sm:$0xf0]  ;;  %v5305_v8 = vld [vmem:[%s9819_s10 + $0x4e0] sm:$0xf]  ;;  %v4938_v14 = vor.u32 %v6159_v53, %v4937_v56 }
 0x238   :  { %v6251_v45 = vld [vmem:[%s9819_s10 + $0x4ec] sm:$0xf0]  ;;  %v7488_v12 = vld.sshfl [vmem:[#allocation1] sm:$0xff pattern:$0x73625140]  ;;  %3045 = vmatpush.bf16.msra.mxu2 %v4698_v40  ;;  %3058 = vmatpush.bf16.msra.mxu3 %v4826_v60  ;;  %v5066_v58 = vor.u32 %v6191_v9, %v5065_v61 }
 0x239   :  { %v7490_v16 = vld.sshfl [vmem:[#allocation1 + $0x8] sm:$0xff pattern:$0x73625140]  ;;  %v7492_v33 = vld.sshfl [vmem:[#allocation1 + $0x10] sm:$0xff pattern:$0x73625140]  ;;  %3071 = vmatpush.bf16.msrb.mxu0 %v4954_v62  ;;  %v5306_v49 = vor.u32 %v6251_v45, %v5305_v8 }
 0x23a   :  { %v7494_v52 = vld.sshfl [vmem:[#allocation1 + $0x18] sm:$0xff pattern:$0x73625140]  ;;  %v5433_v36 = vld [vmem:[%s9819_s10 + $0x5e0] sm:$0xf]  ;;  %3084 = vmatpush.bf16.msrb.mxu1 %v5082_v4 }
 0x23b   :  { %v6283_v30 = vld [vmem:[%s9819_s10 + $0x5ec] sm:$0xf0]  ;;  %v5561_v19 = vld [vmem:[%s9819_s10 + $0x6e0] sm:$0xf]  ;;  %1410 = vst [vmem:[#allocation1] ss:$4 sm:$0xff] %v7142_v23  ;;  %v1330_v23 = vsel %vm1145_vm8, %v7480_v59, %v1329_v47 }
 0x23c   :  { %v6315_v10 = vld [vmem:[%s9819_s10 + $0x6ec] sm:$0xf0]  ;;  %v5689_v0 = vld [vmem:[%s9819_s10 + $0x7e0] sm:$0xf]  ;;  %v5434_v18 = vor.u32 %v6283_v30, %v5433_v36  ;;  %v7534_v26 = vpop.eup %6435  ;;  %3046 = vmatpush.bf16.msra.mxu2 %v4682_v13  ;;  %3059 = vmatpush.bf16.msra.mxu3 %v4810_v7  ;;  %v1331_v38 = vsel %vm1147_vm9, %v7480_v59, %v1330_v23 }
 0x23d   :  { %v5289_v24 = vld [vmem:[%s9819_s10 + $0x4c0] sm:$0xf]  ;;  %v6247_v42 = vld [vmem:[%s9819_s10 + $0x4cc] sm:$0xf0]  ;;  %v5562_v27 = vor.u32 %v6315_v10, %v5561_v19  ;;  %v5690_v28 = vor.u32 %v6347_v5, %v5689_v0  ;;  %v1352_v50 = vmul.f32 %v7534_v26, %v7449_v25  ;;  %3072 = vmatpush.bf16.msrb.mxu0 %v4938_v14  ;;  %vm1358_vm13 = vweird.f32 %v7534_v26 }
 0x23e   :  { %v5417_v46 = vld [vmem:[%s9819_s10 + $0x5c0] sm:$0xf]  ;;  %v6279_v39 = vld [vmem:[%s9819_s10 + $0x5cc] sm:$0xf0]  ;;  %v5290_v41 = vor.u32 %v6247_v42, %v5289_v24  ;;  %3085 = vmatpush.bf16.msrb.mxu1 %v5066_v58  ;;  %v7732_v58 = vsel %vm1149_vm10, %v7480_v59, %v1331_v38  ;;  %vm7785_vm15 = vmor %vm1357_vm14, %vm1358_vm13 }
 0x23f   :  { %v7539_v48 = vld [vmem:[%s9819_s10 + $0x6c0] sm:$0xf]  ;;  %v7544_v29 = vld [vmem:[%s9819_s10 + $0x6cc] sm:$0xf0]  ;;  %v1353_v51 = vmul.f32 %v7534_v26, %v1352_v50  ;;  %v5418_v54 = vor.u32 %v6279_v39, %v5417_v46 }
 0x240   :  { %v5673_v32 = vld [vmem:[%s9819_s10 + $0x7c0] sm:$0xf]  ;;  %v6343_v37 = vld [vmem:[%s9819_s10 + $0x7cc] sm:$0xf0]  ;;  %3091 = vmatpush.bf16.msrb.mxu2 %v5306_v49  ;;  %3104 = vmatpush.bf16.msrb.mxu3 %v5434_v18  ;;  %v5546_v55 = vor.u32 %v7544_v29, %v7539_v48 }
 0x241   :  { %v7558_v15 = vld [vmem:[%s9819_s10 + $0x4a0] sm:$0xf]  ;;  %v7565_v2 = vld [vmem:[%s9819_s10 + $0x4ac] sm:$0xf0]  ;;  %3117 = vmatpush.bf16.msra.mxu0 %v5562_v27  ;;  %v5674_v3 = vor.u32 %v6343_v37, %v5673_v32  ;;  %v1354_v56 = vmul.f32 0.5, %v1353_v51 }
 0x242   :  { %v7570_v17 = vld [vmem:[%s9819_s10 + $0x5a0] sm:$0xf]  ;;  %v7575_v31 = vld [vmem:[%s9819_s10 + $0x5ac] sm:$0xf0]  ;;  %3130 = vmatpush.bf16.msra.mxu1 %v5690_v28  ;;  %v5274_v36 = vor.u32 %v7565_v2, %v7558_v15 }
 0x243   :  { %v7581_v21 = vld [vmem:[%s9819_s10 + $0x6a0] sm:$0xf]  ;;  %v7586_v22 = vld [vmem:[%s9819_s10 + $0x6ac] sm:$0xf0]  ;;  %v1355_v5 = vsub.f32 1.5, %v1354_v56  ;;  %v5402_v34 = vor.u32 %v7575_v31, %v7570_v17 }
 0x244   :  { %v7591_v1 = vld [vmem:[%s9819_s10 + $0x7a0] sm:$0xf]  ;;  %v7596_v57 = vld [vmem:[%s9819_s10 + $0x7ac] sm:$0xf0]  ;;  %3092 = vmatpush.bf16.msrb.mxu2 %v5290_v41  ;;  %3105 = vmatpush.bf16.msrb.mxu3 %v5418_v54  ;;  %v5530_v18 = vor.u32 %v7586_v22, %v7581_v21 }
 0x245   :  { %v7603_v63 = vld [vmem:[%s9819_s10 + $0x480] sm:$0xf]  ;;  %v7608_v11 = vld [vmem:[%s9819_s10 + $0x48c] sm:$0xf0]  ;;  %3118 = vmatpush.bf16.msra.mxu0 %v5546_v55  ;;  %v5658_v42 = vor.u32 %v7596_v57, %v7591_v1  ;;  %v1356_v28 = vmul.f32 %v7534_v26, %v1355_v5 }
 0x246   :  { %v7613_v43 = vld [vmem:[%s9819_s10 + $0x580] sm:$0xf]  ;;  %v7618_v40 = vld [vmem:[%s9819_s10 + $0x58c] sm:$0xf0]  ;;  %3131 = vmatpush.bf16.msra.mxu1 %v5674_v3  ;;  %v5258_v48 = vor.u32 %v7608_v11, %v7603_v63 }
 0x247   :  { %v7623_v60 = vld [vmem:[%s9819_s10 + $0x680] sm:$0xf]  ;;  %v7628_v20 = vld [vmem:[%s9819_s10 + $0x68c] sm:$0xf0]  ;;  %v5386_v29 = vor.u32 %v7618_v40, %v7613_v43  ;;  %v1360_v54 = vsel %vm7785_vm15, %v7534_v26, %v1356_v28 }
 0x248   :  { %v7635_v62 = vld [vmem:[%s9819_s10 + $0x780] sm:$0xf]  ;;  %v7640_v53 = vld [vmem:[%s9819_s10 + $0x78c] sm:$0xf0]  ;;  %v5514_v50 = vor.u32 %v7628_v20, %v7623_v60  ;;  %3093 = vmatpush.bf16.msrb.mxu2 %v5274_v36  ;;  %3106 = vmatpush.bf16.msrb.mxu3 %v5402_v34  ;;  %v6449_v36 = vmov 0  }
 0x249   :  { %v7645_v61 = vld [vmem:[%s9819_s10 + $0x460] sm:$0xf]  ;;  %v7650_v9 = vld [vmem:[%s9819_s10 + $0x46c] sm:$0xf0]  ;;  %v5642_v41 = vor.u32 %v7640_v53, %v7635_v62  ;;  %3119 = vmatpush.bf16.msra.mxu0 %v5530_v18  ;;  %v7910_v62 = vld [vmem:[%s9819_s10 + $0x1e4] sm:$0xf] }
 0x24a   :  { %v7655_v44 = vld [vmem:[%s9819_s10 + $0x560] sm:$0xf]  ;;  %v7660_v4 = vld [vmem:[%s9819_s10 + $0x56c] sm:$0xf0]  ;;  %v5242_v2 = vor.u32 %v7650_v9, %v7645_v61  ;;  %3132 = vmatpush.bf16.msra.mxu1 %v5658_v42 }
 0x24b   :  { %v7665_v8 = vld [vmem:[%s9819_s10 + $0x660] sm:$0xf]  ;;  %v7670_v45 = vld [vmem:[%s9819_s10 + $0x66c] sm:$0xf0]  ;;  %v5370_v17 = vor.u32 %v7660_v4, %v7655_v44 }
 0x24c   :  { %v7677_v30 = vld [vmem:[%s9819_s10 + $0x760] sm:$0xf]  ;;  %v7682_v19 = vld [vmem:[%s9819_s10 + $0x76c] sm:$0xf0]  ;;  %v5498_v31 = vor.u32 %v7670_v45, %v7665_v8  ;;  %3094 = vmatpush.bf16.msrb.mxu2 %v5258_v48  ;;  %3107 = vmatpush.bf16.msrb.mxu3 %v5386_v29  ;;  %v7889_v29 = vld [vmem:[%s9819_s10 + $0xe4] sm:$0xf] }
 0x24d   :  { %v7687_v6 = vld [vmem:[%s9819_s10 + $0x440] sm:$0xf]  ;;  %v7692_v13 = vld [vmem:[%s9819_s10 + $0x44c] sm:$0xf0]  ;;  %v5626_v21 = vor.u32 %v7682_v19, %v7677_v30  ;;  %3120 = vmatpush.bf16.msra.mxu0 %v5514_v50 }
 0x24e   :  { %v7697_v7 = vld [vmem:[%s9819_s10 + $0x540] sm:$0xf]  ;;  %v7702_v10 = vld [vmem:[%s9819_s10 + $0x54c] sm:$0xf0]  ;;  %v5226_v22 = vor.u32 %v7692_v13, %v7687_v6  ;;  %3133 = vmatpush.bf16.msra.mxu1 %v5642_v41  ;;  %v7950_v6 = vld [vmem:[%s9819_s10 + $0x2f0] sm:$0xf0] }
 0x24f   :  { %v1349_v0 = vld [vmem:[%s9820_s8] sm:$0xff]  ;;  %v7718_v49 = vld [vmem:[%s9819_s10 + $0x64c] sm:$0xf0]  ;;  %v5354_v1 = vor.u32 %v7702_v10, %v7697_v7  ;;  %v1414_v28 = vld.sshfl [vmem:[#allocation1 + $0x8] sm:$0xff pattern:$0x73625140] }
 0x250   :  { %v7713_v14 = vld [vmem:[%s9819_s10 + $0x640] sm:$0xf]  ;;  %v7728_v47 = vld [vmem:[%s9819_s10 + $0x74c] sm:$0xf0]  ;;  %v7831_v3 = vmul.f32 %v1360_v54, %v1349_v0  ;;  %3095 = vmatpush.bf16.msrb.mxu2 %v5242_v2  ;;  %3108 = vmatpush.bf16.msrb.mxu3 %v5370_v17 }
 0x251   :  { %v7723_v24 = vld [vmem:[%s9819_s10 + $0x740] sm:$0xf]  ;;  %v7747_v59 = vld [vmem:[%s9819_s10 + $0x42c] sm:$0xf0]  ;;  %v5482_v63 = vor.u32 %v7718_v49, %v7713_v14  ;;  %3121 = vmatpush.bf16.msra.mxu0 %v5498_v31  ;;  %v5179_v14 = vld [vmem:[%s9819_s10 + $0x3f0] sm:$0xf0] }
 0x252   :  { %v7742_v46 = vld [vmem:[%s9819_s10 + $0x420] sm:$0xf]  ;;  %v7757_v27 = vld [vmem:[%s9819_s10 + $0x52c] sm:$0xf0]  ;;  %v1363_v53 = vmul.f32 %v7831_v3, %v7340_v35  ;;  %vm1365_vm1 = vcmp.ge.f32.partialorder %v7831_v3, 0.0  ;;  %v1438_v19 = vperm.slane %v7831_v3, 0  ;;  %3134 = vmatpush.bf16.msra.mxu1 %v5626_v21  ;;  %v9841_v10 = vor.u32 %v7728_v47, %v7723_v24 }
 0x253   :  { %v7752_v39 = vld [vmem:[%s9819_s10 + $0x520] sm:$0xf]  ;;  %v7774_v37 = vld [vmem:[%s9819_s10 + $0x62c] sm:$0xf0]  ;;  %v7877_v30 = vsel %vm1365_vm1, 1, %v6449_v36  ;;  %v1439_v0 = vperm.slane %v7831_v3, 1 }
 0x254   :  { %v7769_v32 = vld [vmem:[%s9819_s10 + $0x620] sm:$0xf]  ;;  %v7800_v25 = vld [vmem:[%s9819_s10 + $0x72c] sm:$0xf0]  ;;  %v1371_v34 = vperm.slane %v7877_v30, 0  ;;  %v1372_v42 = vperm.slane %v7877_v30, 1  ;;  %3096 = vmatpush.bf16.msrb.mxu2 %v5226_v22  ;;  %3109 = vmatpush.bf16.msrb.mxu3 %v5354_v1 }
 0x255   :  { %v7779_v15 = vld [vmem:[%s9819_s10 + $0x720] sm:$0xf]  ;;  %v7819_v57 = vld [vmem:[%s9819_s10 + $0x40c] sm:$0xf0]  ;;  %v1373_v48 = vperm.slane %v7877_v30, 2  ;;  %v1440_v50 = vperm.slane %v7831_v3, 2  ;;  %3122 = vmatpush.bf16.msra.mxu0 %v5482_v63  ;;  %v9842_v63 = vor.u32 %v7747_v59, %v7742_v46 }
 0x256   :  { %v7805_v51 = vld [vmem:[%s9819_s10 + $0x400] sm:$0xf]  ;;  %v7829_v26 = vld [vmem:[%s9819_s10 + $0x50c] sm:$0xf0]  ;;  %v1374_v41 = vperm.slane %v7877_v30, 3  ;;  %v1375_v4 = vperm.slane %v7877_v30, 4  ;;  %3135 = vmatpush.bf16.msra.mxu1 %v9841_v10 }
 0x257   :  { %v7824_v55 = vld [vmem:[%s9819_s10 + $0x500] sm:$0xf]  ;;  %v7845_v40 = vld [vmem:[%s9819_s10 + $0x60c] sm:$0xf0]  ;;  %v7901_v36 = vld [vmem:[%s9819_s10 + $0xf0] sm:$0xf0] }
 0x258   :  { %v7840_v43 = vld [vmem:[%s9819_s10 + $0x600] sm:$0xf]  ;;  %v7875_v35 = vld [vmem:[%s9819_s10 + $0x70c] sm:$0xf0]  ;;  %vm1379_vm2 = vcmp.eq.s32.totalorder %v1371_v34, 1  ;;  %vm1380_vm3 = vcmp.eq.s32.totalorder %v1372_v42, 1  ;;  %v4798_v8 = vor.u32 %v7889_v29, %v7901_v36  ;;  %3097 = vmatpush.bf16.msrb.mxu2 %v9842_v63 }
 0x259   :  { %v1362_v60 = vld [vmem:[%s9821_s9] sm:$0xff]  ;;  %v7893_v54 = vld.sshfl [vmem:[#allocation1 + $0x28] sm:$0xff pattern:$0x73625140]  ;;  %v1430_v20 = vsel %vm1380_vm3, %v7490_v16, %v1414_v28  ;;  %vm1381_vm4 = vcmp.eq.s32.totalorder %v1373_v48, 1  ;;  %vm1382_vm7 = vcmp.eq.s32.totalorder %v1374_v41, 1 }
 0x25a   :  { %v7867_v44 = vld [vmem:[%s9819_s10 + $0x700] sm:$0xf]  ;;  %v7881_v5 = vsub.f32 %v1362_v60, %v1363_v53  ;;  %v1415_v60 = vld.sshfl [vmem:[#allocation1 + $0x10] sm:$0xff pattern:$0x73625140]  ;;  %v1441_v53 = vperm.slane %v7831_v3, 3  ;;  %v1455_v42 = vmul.f32 %v1439_v0, %v1430_v20 }
 0x25b   :  { %v1413_v18 = vld.sshfl [vmem:[#allocation1] sm:$0xff pattern:$0x73625140]  ;;  %v7912_v56 = vld.sshfl [vmem:[#allocation1 + $0x30] sm:$0xff pattern:$0x73625140]  ;;  %v1431_v11 = vsel %vm1381_vm4, %v7492_v33, %v1415_v60 }
 0x25c   :  { %v7891_v23 = vld.sshfl [vmem:[#allocation1 + $0x20] sm:$0xff pattern:$0x73625140]  ;;  %v1463_v61 = vperm.slane %v7881_v5, 0  ;;  %v1429_v38 = vsel %vm1379_vm2, %v7488_v12, %v1413_v18  ;;  %v1464_v2 = vperm.slane %v7881_v5, 1  ;;  %v1456_v16 = vmul.f32 %v1440_v50, %v1431_v11 }
 0x25d   :  { %v7917_v9 = vld.sshfl [vmem:[#allocation1 + $0x38] sm:$0xff pattern:$0x73625140]  ;;  %v1454_v34 = vmul.f32 %v1438_v19, %v1429_v38  ;;  %v7926_v12 = vld [vmem:[%s9819_s10 + $0x1f0] sm:$0xf0]  ;;  %v1465_v18 = vperm.slane %v7881_v5, 2  ;;  %v9845_v50 = vor.u32 %v7757_v27, %v7752_v39 }
 0x25e   :  { %v1416_v17 = vld.sshfl [vmem:[#allocation1 + $0x18] sm:$0xff pattern:$0x73625140]  ;;  %1412 = vst [vmem:[#allocation1 + $0x20] ss:$4 sm:$0xff] %v7732_v58  ;;  %v1480_v45 = vadd.f32 %v1464_v2, %v1455_v42  ;;  %v1466_v21 = vperm.slane %v7881_v5, 3  ;;  %v9848_v2 = vor.u32 %v7774_v37, %v7769_v32 }
 0x25f   :  { %v1432_v28 = vsel %vm1382_vm7, %v7494_v52, %v1416_v17  ;;  %v1479_v33 = vadd.f32 %v1463_v61, %v1454_v34  ;;  %v1481_v11 = vadd.f32 %v1465_v18, %v1456_v16  ;;  %v4926_v52 = vor.u32 %v7910_v62, %v7926_v12  ;;  %v7945_v58 = vld [vmem:[%s9819_s10 + $0x2e4] sm:$0xf]  ;;  %3110 = vmatpush.bf16.msrb.mxu3 %v9845_v50  ;;  %v4779_v32 = vld [vmem:[%s9819_s10 + $0xd0] sm:$0xf0] }
 0x260   :  { %v1457_v31 = vmul.f32 %v1441_v53, %v1432_v28  ;;  %vm7952_vm8 = vcmp.eq.s32.totalorder %v1375_v4, 1  ;;  %v1376_v7 = vperm.slane %v7877_v30, 5  ;;  %v1488_v1 = vmax.f32 %v1480_v45, 0.0  ;;  %v7966_v38 = vld [vmem:[%s9819_s10 + $0x3e4] sm:$0xf]  ;;  %3123 = vmatpush.bf16.msra.mxu0 %v9848_v2 }
 0x261   :  { %v1487_v22 = vmax.f32 %v1479_v33, 0.0  ;;  %v1442_v61 = vperm.slane %v7831_v3, 4  ;;  %v1489_v4 = vmax.f32 %v1481_v11, 0.0  ;;  %v1467_v49 = vperm.slane %v7881_v5, 4  ;;  %v6117_v17 = vld [vmem:[%s9819_s10 + $0xc4] sm:$0xf] }
 0x262   :  { %v1482_v20 = vadd.f32 %v1466_v21, %v1457_v31  ;;  %v1443_v24 = vperm.slane %v7831_v3, 5  ;;  %v1377_v47 = vperm.slane %v7877_v30, 6  ;;  %v7980_v0 = vpack.c.bf16 %v1488_v1, %v1488_v1  ;;  %v6149_v37 = vld [vmem:[%s9819_s10 + $0x1c4] sm:$0xf]  ;;  %v4891_v36 = vld [vmem:[%s9819_s10 + $0x1b0] sm:$0xf0] }
 0x263   :  { %v7978_v19 = vpack.c.bf16 %v1487_v22, %v1487_v22  ;;  %vm7982_vm9 = vcmp.eq.s32.totalorder %v1376_v7, 1  ;;  %v7989_v41 = vpack.c.bf16 %v1489_v4, %v1489_v4  ;;  %v1468_v53 = vperm.slane %v7881_v5, 5  ;;  %v6181_v16 = vld [vmem:[%s9819_s10 + $0x2c4] sm:$0xf]  ;;  %v5147_v4 = vld [vmem:[%s9819_s10 + $0x3b0] sm:$0xf0] }
 0x264   :  { %v1490_v48 = vmax.f32 %v1482_v20, 0.0  ;;  %vm7992_vm10 = vcmp.eq.s32.totalorder %v1377_v47, 1  ;;  %v1378_v59 = vperm.slane %v7877_v30, 7  ;;  %v9849_v34 = vor.u32 %v7800_v25, %v7779_v15  ;;  %v4907_v15 = vld [vmem:[%s9819_s10 + $0x1d0] sm:$0xf0]  ;;  %3060 = vmatmul.bf16.vlgmr.msra.gmra.mxu3 %v7980_v0 }
 0x265   :  { %v5054_v27 = vor.u32 %v7945_v58, %v7950_v6  ;;  %v5182_v42 = vor.u32 %v7966_v38, %v5179_v14  ;;  %v1417_v25 = vld.sshfl [vmem:[#allocation1 + $0x20] sm:$0xff pattern:$0x73625140]  ;;  %v1418_v30 = vld.sshfl [vmem:[#allocation1 + $0x28] sm:$0xff pattern:$0x73625140]  ;;  %3047 = vmatmul.bf16.vlgmr.msra.gmra.mxu2 %v7978_v19  ;;  %v9852_v21 = vor.u32 %v7819_v57, %v7805_v51  ;;  %3073 = vmatmul.bf16.vlgmr.msrb.gmra.mxu0 %v7989_v41 }
 0x266   :  { %3136 = vmatpush.bf16.msra.mxu1 %v9849_v34  ;;  %v8003_v39 = vpack.c.bf16 %v1490_v48, %v1490_v48  ;;  %v1433_v18 = vsel %vm7952_vm8, %v7891_v23, %v1417_v25  ;;  %v1434_v28 = vsel %vm7982_vm9, %v7893_v54, %v1418_v30  ;;  %v1419_v33 = vld.sshfl [vmem:[#allocation1 + $0x30] sm:$0xff pattern:$0x73625140]  ;;  %v1444_v45 = vperm.slane %v7831_v3, 6  ;;  %v6213_v51 = vld [vmem:[%s9819_s10 + $0x3c4] sm:$0xf] }
 0x267   :  { %vm8032_vm11 = vcmp.eq.s32.totalorder %v1378_v59, 1  ;;  %3098 = vmatpush.bf16.msrb.mxu2 %v9852_v21  ;;  %v5035_v23 = vld [vmem:[%s9819_s10 + $0x2d0] sm:$0xf0]  ;;  %v1458_v11 = vmul.f32 %v1442_v61, %v1433_v18  ;;  %v1459_v58 = vmul.f32 %v1443_v24, %v1434_v28  ;;  %v1435_v54 = vsel %vm7992_vm10, %v7912_v56, %v1419_v33  ;;  %v1420_v6 = vld.sshfl [vmem:[#allocation1 + $0x38] sm:$0xff pattern:$0x73625140] }
 0x268   :  { %v1445_v13 = vperm.slane %v7831_v3, 7  ;;  %v9853_v7 = vor.u32 %v7829_v26, %v7824_v55  ;;  %3086 = vmatmul.bf16.vlgmr.msrb.gmra.mxu1 %v8003_v39  ;;  %v5163_v57 = vld [vmem:[%s9819_s10 + $0x3d0] sm:$0xf0]  ;;  %v1460_v10 = vmul.f32 %v1444_v45, %v1435_v54  ;;  %v1469_v56 = vperm.slane %v7881_v5, 6  ;;  %v6145_v62 = vld [vmem:[%s9819_s10 + $0x1a4] sm:$0xf] }
 0x269   :  { %v1436_v3 = vsel %vm8032_vm11, %v7917_v9, %v1420_v6  ;;  %v9854_v55 = vor.u32 %v7845_v40, %v7840_v43  ;;  %v9855_v26 = vor.u32 %v7875_v35, %v7867_v44  ;;  %v8067_v22 = vadd.f32 %v1467_v49, %v1458_v11  ;;  %v6113_v9 = vld [vmem:[%s9819_s10 + $0xa4] sm:$0xf]  ;;  %v4763_v44 = vld [vmem:[%s9819_s10 + $0xb0] sm:$0xf0] }
 0x26a   :  { %3111 = vmatpush.bf16.msrb.mxu3 %v9853_v7  ;;  %v8069_v1 = vadd.f32 %v1468_v53, %v1459_v58  ;;  %v1461_v20 = vmul.f32 %v1445_v13, %v1436_v3  ;;  %v1470_v38 = vperm.slane %v7881_v5, 7  ;;  %v4782_v43 = vor.u32 %v6117_v17, %v4779_v32  ;;  %v6177_v12 = vld [vmem:[%s9819_s10 + $0x2a4] sm:$0xf]  ;;  %v4747_v47 = vld [vmem:[%s9819_s10 + $0x90] sm:$0xf0] }
 0x26b   :  { %3124 = vmatpush.bf16.msra.mxu0 %v9854_v55  ;;  %3137 = vmatpush.bf16.msra.mxu1 %v9855_v26  ;;  %v4910_v40 = vor.u32 %v6149_v37, %v4907_v15  ;;  %v1485_v35 = vadd.f32 %v1469_v56, %v1460_v10  ;;  %v5038_v5 = vor.u32 %v6181_v16, %v5035_v23  ;;  %v6209_v61 = vld [vmem:[%s9819_s10 + $0x3a4] sm:$0xf]  ;;  %v4875_v50 = vld [vmem:[%s9819_s10 + $0x190] sm:$0xf0]  ;;  %v1491_v32 = vmax.f32 %v8067_v22, 0.0 }
 0x26c   :  { %3143 = vmatpush.bf16.msra.mxu2 %v4798_v8  ;;  %v5166_v29 = vor.u32 %v6213_v51, %v5163_v57  ;;  %v1486_v8 = vadd.f32 %v1470_v38, %v1461_v20  ;;  %v4766_v14 = vor.u32 %v6113_v9, %v4763_v44  ;;  %v4894_v49 = vor.u32 %v6145_v62, %v4891_v36  ;;  %v6109_v24 = vld [vmem:[%s9819_s10 + $0x84] sm:$0xf]  ;;  %v5003_v46 = vld [vmem:[%s9819_s10 + $0x290] sm:$0xf0] }
 0x26d   :  { %v5150_v48 = vor.u32 %v6209_v61, %v5147_v4  ;;  %v6141_v60 = vld [vmem:[%s9819_s10 + $0x184] sm:$0xf]  ;;  %v5131_v2 = vld [vmem:[%s9819_s10 + $0x390] sm:$0xf0]  ;;  %v1492_v37 = vmax.f32 %v8069_v1, 0.0  ;;  %v1493_v18 = vmax.f32 %v1485_v35, 0.0  ;;  %v8152_v58 = vpack.c.bf16 %v1491_v32, %v1491_v32 }
 0x26e   :  { %3156 = vmatpush.bf16.msra.mxu3 %v4926_v52  ;;  %v5019_v52 = vld [vmem:[%s9819_s10 + $0x2b0] sm:$0xf0]  ;;  %v6173_v53 = vld [vmem:[%s9819_s10 + $0x284] sm:$0xf]  ;;  %v4878_v17 = vor.u32 %v6141_v60, %v4875_v50  ;;  %v1494_v28 = vmax.f32 %v1486_v8, 0.0 }
 0x26f   :  { %3169 = vmatpush.bf16.msrb.mxu0 %v5054_v27  ;;  %3182 = vmatpush.bf16.msrb.mxu1 %v5182_v42  ;;  %v5022_v63 = vor.u32 %v6177_v12, %v5019_v52  ;;  %v6205_v59 = vld [vmem:[%s9819_s10 + $0x384] sm:$0xf]  ;;  %v4731_v27 = vld [vmem:[%s9819_s10 + $0x70] sm:$0xf0]  ;;  %v4750_v42 = vor.u32 %v6109_v24, %v4747_v47  ;;  %v5006_v30 = vor.u32 %v6173_v53, %v5003_v46 }
 0x270   :  { %3144 = vmatpush.bf16.msra.mxu2 %v4782_v43  ;;  %v6105_v34 = vld [vmem:[%s9819_s10 + $0x64] sm:$0xf]  ;;  %v4859_v25 = vld [vmem:[%s9819_s10 + $0x170] sm:$0xf0]  ;;  %v5134_v16 = vor.u32 %v6205_v59, %v5131_v2  ;;  %v8154_v54 = vpack.c.bf16 %v1492_v37, %v1492_v37  ;;  %v8162_v51 = vpack.c.bf16 %v1493_v18, %v1493_v18  ;;  %v8164_v57 = vpack.c.bf16 %v1494_v28, %v1494_v28 }
 0x271   :  { %v6137_v15 = vld [vmem:[%s9819_s10 + $0x164] sm:$0xf]  ;;  %v4987_v45 = vld [vmem:[%s9819_s10 + $0x270] sm:$0xf0]  ;;  %v4734_v23 = vor.u32 %v6105_v34, %v4731_v27 }
 0x272   :  { %3157 = vmatpush.bf16.msra.mxu3 %v4910_v40  ;;  %v6169_v33 = vld [vmem:[%s9819_s10 + $0x264] sm:$0xf]  ;;  %v5115_v21 = vld [vmem:[%s9819_s10 + $0x370] sm:$0xf0]  ;;  %v4862_v11 = vor.u32 %v6137_v15, %v4859_v25 }
 0x273   :  { %3170 = vmatpush.bf16.msrb.mxu0 %v5038_v5  ;;  %3183 = vmatpush.bf16.msrb.mxu1 %v5166_v29  ;;  %v6201_v31 = vld [vmem:[%s9819_s10 + $0x364] sm:$0xf]  ;;  %v4990_v6 = vor.u32 %v6169_v33, %v4987_v45  ;;  %v4715_v7 = vld [vmem:[%s9819_s10 + $0x50] sm:$0xf0] }
 0x274   :  { %3145 = vmatpush.bf16.msra.mxu2 %v4766_v14  ;;  %v6101_v13 = vld [vmem:[%s9819_s10 + $0x44] sm:$0xf]  ;;  %v5118_v10 = vor.u32 %v6201_v31, %v5115_v21  ;;  %v4843_v3 = vld [vmem:[%s9819_s10 + $0x150] sm:$0xf0]  ;;  %3112 = vmatmul.bf16.vlgmr.msrb.gmra.mxu3 %v8154_v54 }
 0x275   :  { %v6133_v56 = vld [vmem:[%s9819_s10 + $0x144] sm:$0xf]  ;;  %3099 = vmatmul.bf16.vlgmr.msrb.gmra.mxu2 %v8152_v58  ;;  %v4971_v26 = vld [vmem:[%s9819_s10 + $0x250] sm:$0xf0]  ;;  %3125 = vmatmul.bf16.vlgmr.msra.gmra.mxu0 %v8162_v51  ;;  %v4718_v20 = vor.u32 %v6101_v13, %v4715_v7 }
 0x276   :  { %3158 = vmatpush.bf16.msra.mxu3 %v4894_v49  ;;  %v6165_v55 = vld [vmem:[%s9819_s10 + $0x244] sm:$0xf]  ;;  %v5099_v1 = vld [vmem:[%s9819_s10 + $0x350] sm:$0xf0]  ;;  %v4846_v38 = vor.u32 %v6133_v56, %v4843_v3 }
 0x277   :  { %3171 = vmatpush.bf16.msrb.mxu0 %v5022_v63  ;;  %3184 = vmatpush.bf16.msrb.mxu1 %v5150_v48  ;;  %v6197_v22 = vld [vmem:[%s9819_s10 + $0x344] sm:$0xf]  ;;  %v4699_v40 = vld [vmem:[%s9819_s10 + $0x30] sm:$0xf0]  ;;  %v4974_v9 = vor.u32 %v6165_v55, %v4971_v26 }
 0x278   :  { %3146 = vmatpush.bf16.msra.mxu2 %v4750_v42  ;;  %3138 = vmatmul.bf16.vlgmr.msra.gmra.mxu1 %v8164_v57  ;;  %v6097_v43 = vld [vmem:[%s9819_s10 + $0x24] sm:$0xf]  ;;  %v5102_v44 = vor.u32 %v6197_v22, %v5099_v1  ;;  %v4827_v5 = vld [vmem:[%s9819_s10 + $0x130] sm:$0xf0] }
 0x279   :  { %v6129_v35 = vld [vmem:[%s9819_s10 + $0x124] sm:$0xf]  ;;  %v4955_v62 = vld [vmem:[%s9819_s10 + $0x230] sm:$0xf0]  ;;  %v4702_v52 = vor.u32 %v6097_v43, %v4699_v40 }
 0x27a   :  { %3159 = vmatpush.bf16.msra.mxu3 %v4878_v17  ;;  %v6161_v29 = vld [vmem:[%s9819_s10 + $0x224] sm:$0xf]  ;;  %v5083_v12 = vld [vmem:[%s9819_s10 + $0x330] sm:$0xf0]  ;;  %v4830_v61 = vor.u32 %v6129_v35, %v4827_v5 }
 0x27b   :  { %3172 = vmatpush.bf16.msrb.mxu0 %v5006_v30  ;;  %3185 = vmatpush.bf16.msrb.mxu1 %v5134_v16  ;;  %v6193_v36 = vld [vmem:[%s9819_s10 + $0x324] sm:$0xf]  ;;  %v4683_v4 = vld [vmem:[%s9819_s10 + $0x10] sm:$0xf0]  ;;  %v4958_v24 = vor.u32 %v6161_v29, %v4955_v62 }
 0x27c   :  { %3147 = vmatpush.bf16.msra.mxu2 %v4734_v23  ;;  %v6093_v8 = vld [vmem:[%s9819_s10 + $0x4] sm:$0xf]  ;;  %v4811_v49 = vld [vmem:[%s9819_s10 + $0x110] sm:$0xf0]  ;;  %v5086_v47 = vor.u32 %v6193_v36, %v5083_v12 }
 0x27d   :  { %v6125_v14 = vld [vmem:[%s9819_s10 + $0x104] sm:$0xf]  ;;  %v4939_v48 = vld [vmem:[%s9819_s10 + $0x210] sm:$0xf0]  ;;  %v4686_v27 = vor.u32 %v6093_v8, %v4683_v4 }
 0x27e   :  { %3160 = vmatpush.bf16.msra.mxu3 %v4862_v11  ;;  %v6157_v63 = vld [vmem:[%s9819_s10 + $0x204] sm:$0xf]  ;;  %v5067_v50 = vld [vmem:[%s9819_s10 + $0x310] sm:$0xf0]  ;;  %v4814_v42 = vor.u32 %v6125_v14, %v4811_v49 }
 0x27f   :  { %3173 = vmatpush.bf16.msrb.mxu0 %v4990_v6  ;;  %3186 = vmatpush.bf16.msrb.mxu1 %v5118_v10  ;;  %v6189_v60 = vld [vmem:[%s9819_s10 + $0x304] sm:$0xf]  ;;  %v5307_v46 = vld [vmem:[%s9819_s10 + $0x4f0] sm:$0xf0]  ;;  %v4942_v15 = vor.u32 %v6157_v63, %v4939_v48 }
 0x280   :  { %3148 = vmatpush.bf16.msra.mxu2 %v4718_v20  ;;  %v6249_v53 = vld [vmem:[%s9819_s10 + $0x4e4] sm:$0xf]  ;;  %v5435_v2 = vld [vmem:[%s9819_s10 + $0x5f0] sm:$0xf0]  ;;  %v5070_v25 = vor.u32 %v6189_v60, %v5067_v50 }
 0x281   :  { %v6281_v59 = vld [vmem:[%s9819_s10 + $0x5e4] sm:$0xf]  ;;  %v5563_v17 = vld [vmem:[%s9819_s10 + $0x6f0] sm:$0xf0]  ;;  %v5310_v30 = vor.u32 %v6249_v53, %v5307_v46 }
 0x282   :  { %3161 = vmatpush.bf16.msra.mxu3 %v4846_v38  ;;  %v6313_v34 = vld [vmem:[%s9819_s10 + $0x6e4] sm:$0xf]  ;;  %v5691_v37 = vld [vmem:[%s9819_s10 + $0x7f0] sm:$0xf0]  ;;  %v5438_v16 = vor.u32 %v6281_v59, %v5435_v2 }
 0x283   :  { %3174 = vmatpush.bf16.msrb.mxu0 %v4974_v9  ;;  %3187 = vmatpush.bf16.msrb.mxu1 %v5102_v44  ;;  %v6345_v32 = vld [vmem:[%s9819_s10 + $0x7e4] sm:$0xf]  ;;  %v5291_v28 = vld [vmem:[%s9819_s10 + $0x4d0] sm:$0xf0]  ;;  %v5566_v33 = vor.u32 %v6313_v34, %v5563_v17 }
 0x284   :  { %3149 = vmatpush.bf16.msra.mxu2 %v4702_v52  ;;  %v6245_v18 = vld [vmem:[%s9819_s10 + $0x4c4] sm:$0xf]  ;;  %v5694_v45 = vor.u32 %v6345_v32, %v5691_v37  ;;  %v5419_v21 = vld [vmem:[%s9819_s10 + $0x5d0] sm:$0xf0] }
 0x285   :  { %v6277_v31 = vld [vmem:[%s9819_s10 + $0x5c4] sm:$0xf]  ;;  %v5547_v11 = vld [vmem:[%s9819_s10 + $0x6d0] sm:$0xf0]  ;;  %v5294_v7 = vor.u32 %v6245_v18, %v5291_v28 }
 0x286   :  { %3162 = vmatpush.bf16.msra.mxu3 %v4830_v61  ;;  %v6309_v23 = vld [vmem:[%s9819_s10 + $0x6c4] sm:$0xf]  ;;  %v5675_v13 = vld [vmem:[%s9819_s10 + $0x7d0] sm:$0xf0]  ;;  %v5422_v10 = vor.u32 %v6277_v31, %v5419_v21 }
 0x287   :  { %3175 = vmatpush.bf16.msrb.mxu0 %v4958_v24  ;;  %3188 = vmatpush.bf16.msrb.mxu1 %v5086_v47  ;;  %v6341_v6 = vld [vmem:[%s9819_s10 + $0x7c4] sm:$0xf]  ;;  %v5275_v3 = vld [vmem:[%s9819_s10 + $0x4b0] sm:$0xf0]  ;;  %v5550_v55 = vor.u32 %v6309_v23, %v5547_v11 }
 0x288   :  { %3150 = vmatpush.bf16.msra.mxu2 %v4686_v27  ;;  %v6241_v56 = vld [vmem:[%s9819_s10 + $0x4a4] sm:$0xf]  ;;  %v5678_v26 = vor.u32 %v6341_v6, %v5675_v13  ;;  %v5403_v1 = vld [vmem:[%s9819_s10 + $0x5b0] sm:$0xf0] }
 0x289   :  { %v6273_v22 = vld [vmem:[%s9819_s10 + $0x5a4] sm:$0xf]  ;;  %v5531_v38 = vld [vmem:[%s9819_s10 + $0x6b0] sm:$0xf0]  ;;  %v5278_v9 = vor.u32 %v6241_v56, %v5275_v3 }
 0x28a   :  { %3163 = vmatpush.bf16.msra.mxu3 %v4814_v42  ;;  %v6305_v20 = vld [vmem:[%s9819_s10 + $0x6a4] sm:$0xf]  ;;  %v5659_v40 = vld [vmem:[%s9819_s10 + $0x7b0] sm:$0xf0]  ;;  %v5406_v44 = vor.u32 %v6273_v22, %v5403_v1 }
 0x28b   :  { %3176 = vmatpush.bf16.msrb.mxu0 %v4942_v15  ;;  %3189 = vmatpush.bf16.msrb.mxu1 %v5070_v25  ;;  %v6337_v43 = vld [vmem:[%s9819_s10 + $0x7a4] sm:$0xf]  ;;  %v5259_v5 = vld [vmem:[%s9819_s10 + $0x490] sm:$0xf0]  ;;  %v5534_v29 = vor.u32 %v6305_v20, %v5531_v38 }
 0x28c   :  { %3195 = vmatpush.bf16.msrb.mxu2 %v5310_v30  ;;  %v6237_v35 = vld [vmem:[%s9819_s10 + $0x484] sm:$0xf]  ;;  %v5662_v62 = vor.u32 %v6337_v43, %v5659_v40  ;;  %v5387_v12 = vld [vmem:[%s9819_s10 + $0x590] sm:$0xf0] }
 0x28d   :  { %3151 = vmatmul.bf16.vlgmr.msra.gmra.mxu2 %v7978_v19  ;;  %3164 = vmatmul.bf16.vlgmr.msra.gmra.mxu3 %v7980_v0  ;;  %v6269_v36 = vld [vmem:[%s9819_s10 + $0x584] sm:$0xf]  ;;  %v5515_v52 = vld [vmem:[%s9819_s10 + $0x690] sm:$0xf0]  ;;  %v5262_v14 = vor.u32 %v6237_v35, %v5259_v5 }
 0x28e   :  { %3208 = vmatpush.bf16.msrb.mxu3 %v5438_v16  ;;  %3177 = vmatmul.bf16.vlgmr.msrb.gmra.mxu0 %v7989_v41  ;;  %v6301_v8 = vld [vmem:[%s9819_s10 + $0x684] sm:$0xf]  ;;  %v5643_v4 = vld [vmem:[%s9819_s10 + $0x790] sm:$0xf0]  ;;  %v5390_v49 = vor.u32 %v6269_v36, %v5387_v12  ;;  %v4929_v36 = vld [vmem:[%s9819_s10 + $0x1e8] sm:$0xf] }
 0x28f   :  { %3221 = vmatpush.bf16.msra.mxu0 %v5566_v33  ;;  %3234 = vmatpush.bf16.msra.mxu1 %v5694_v45  ;;  %v6333_v61 = vld [vmem:[%s9819_s10 + $0x784] sm:$0xf]  ;;  %v5243_v47 = vld [vmem:[%s9819_s10 + $0x470] sm:$0xf0]  ;;  %v5518_v63 = vor.u32 %v6301_v8, %v5515_v52  ;;  %v6156_v12 = vld [vmem:[%s9819_s10 + $0x1f4] sm:$0xf0] }
 0x290   :  { %3190 = vmatmul.bf16.vlgmr.msrb.gmra.mxu1 %v8003_v39  ;;  %3196 = vmatpush.bf16.msrb.mxu2 %v5294_v7  ;;  %v6233_v24 = vld [vmem:[%s9819_s10 + $0x464] sm:$0xf]  ;;  %v5646_v48 = vor.u32 %v6333_v61, %v5643_v4  ;;  %v5371_v50 = vld [vmem:[%s9819_s10 + $0x570] sm:$0xf0]  ;;  %v5057_v8 = vld [vmem:[%s9819_s10 + $0x2e8] sm:$0xf] }
 0x291   :  { %v6265_v60 = vld [vmem:[%s9819_s10 + $0x564] sm:$0xf]  ;;  %v5499_v46 = vld [vmem:[%s9819_s10 + $0x670] sm:$0xf0]  ;;  %v5246_v34 = vor.u32 %v6233_v24, %v5243_v47  ;;  %v6188_v4 = vld [vmem:[%s9819_s10 + $0x2f4] sm:$0xf0] }
 0x292   :  { %3209 = vmatpush.bf16.msrb.mxu3 %v5422_v10  ;;  %v6297_v53 = vld [vmem:[%s9819_s10 + $0x664] sm:$0xf]  ;;  %v5627_v2 = vld [vmem:[%s9819_s10 + $0x770] sm:$0xf0]  ;;  %v5374_v27 = vor.u32 %v6265_v60, %v5371_v50  ;;  %v4785_v60 = vld [vmem:[%s9819_s10 + $0xc8] sm:$0xf] }
 0x293   :  { %3222 = vmatpush.bf16.msra.mxu0 %v5550_v55  ;;  %3235 = vmatpush.bf16.msra.mxu1 %v5678_v26  ;;  %v6329_v59 = vld [vmem:[%s9819_s10 + $0x764] sm:$0xf]  ;;  %v5227_v17 = vld [vmem:[%s9819_s10 + $0x450] sm:$0xf0]  ;;  %v5502_v32 = vor.u32 %v6297_v53, %v5499_v46  ;;  %v6120_v50 = vld [vmem:[%s9819_s10 + $0xd4] sm:$0xf0]  ;;  %v5058_v53 = vor.u32 %v6188_v4, %v5057_v8 }
 0x294   :  { %3197 = vmatpush.bf16.msrb.mxu2 %v5278_v9  ;;  %v6229_v42 = vld [vmem:[%s9819_s10 + $0x444] sm:$0xf]  ;;  %v5630_v37 = vor.u32 %v6329_v59, %v5627_v2  ;;  %v5355_v25 = vld [vmem:[%s9819_s10 + $0x550] sm:$0xf0]  ;;  %v4913_v59 = vld [vmem:[%s9819_s10 + $0x1c8] sm:$0xf] }
 0x295   :  { %v6261_v15 = vld [vmem:[%s9819_s10 + $0x544] sm:$0xf]  ;;  %v5483_v16 = vld [vmem:[%s9819_s10 + $0x650] sm:$0xf0]  ;;  %v5230_v33 = vor.u32 %v6229_v42, %v5227_v17  ;;  %v6152_v2 = vld [vmem:[%s9819_s10 + $0x1d4] sm:$0xf0] }
 0x296   :  { %3210 = vmatpush.bf16.msrb.mxu3 %v5406_v44  ;;  %v6293_v30 = vld [vmem:[%s9819_s10 + $0x644] sm:$0xf]  ;;  %v5611_v28 = vld [vmem:[%s9819_s10 + $0x750] sm:$0xf0]  ;;  %v5358_v45 = vor.u32 %v6261_v15, %v5355_v25  ;;  %v5169_v42 = vld [vmem:[%s9819_s10 + $0x3c8] sm:$0xf] }
 0x297   :  { %3223 = vmatpush.bf16.msra.mxu0 %v5534_v29  ;;  %3236 = vmatpush.bf16.msra.mxu1 %v5662_v62  ;;  %v6325_v18 = vld [vmem:[%s9819_s10 + $0x744] sm:$0xf]  ;;  %v5211_v21 = vld [vmem:[%s9819_s10 + $0x430] sm:$0xf0]  ;;  %v5486_v23 = vor.u32 %v6293_v30, %v5483_v16  ;;  %v4801_v29 = vld [vmem:[%s9819_s10 + $0xe8] sm:$0xf] }
 0x298   :  { %3198 = vmatpush.bf16.msrb.mxu2 %v5262_v14  ;;  %v6225_v31 = vld [vmem:[%s9819_s10 + $0x424] sm:$0xf]  ;;  %v5614_v11 = vor.u32 %v6325_v18, %v5611_v28  ;;  %v5339_v13 = vld [vmem:[%s9819_s10 + $0x530] sm:$0xf0]  ;;  %v6124_v62 = vld [vmem:[%s9819_s10 + $0xf4] sm:$0xf0] }
 0x299   :  { %v6257_v6 = vld [vmem:[%s9819_s10 + $0x524] sm:$0xf]  ;;  %v5467_v10 = vld [vmem:[%s9819_s10 + $0x630] sm:$0xf0]  ;;  %v5214_v26 = vor.u32 %v6225_v31, %v5211_v21  ;;  %v5185_v14 = vld [vmem:[%s9819_s10 + $0x3e8] sm:$0xf] }
 0x29a   :  { %3211 = vmatpush.bf16.msrb.mxu3 %v5390_v49  ;;  %v6289_v7 = vld [vmem:[%s9819_s10 + $0x624] sm:$0xf]  ;;  %v5595_v3 = vld [vmem:[%s9819_s10 + $0x730] sm:$0xf0]  ;;  %v5342_v22 = vor.u32 %v6257_v6, %v5339_v13  ;;  %v6220_v49 = vld [vmem:[%s9819_s10 + $0x3f4] sm:$0xf0] }
 0x29b   :  { %3224 = vmatpush.bf16.msra.mxu0 %v5518_v63  ;;  %3237 = vmatpush.bf16.msra.mxu1 %v5646_v48  ;;  %v6321_v56 = vld [vmem:[%s9819_s10 + $0x724] sm:$0xf]  ;;  %v5195_v1 = vld [vmem:[%s9819_s10 + $0x410] sm:$0xf0]  ;;  %v5470_v43 = vor.u32 %v6289_v7, %v5467_v10  ;;  %v4802_v63 = vor.u32 %v6124_v62, %v4801_v29  ;;  %v4930_v48 = vor.u32 %v6156_v12, %v4929_v36  ;;  %v6216_v17 = vld [vmem:[%s9819_s10 + $0x3d4] sm:$0xf0] }
 0x29c   :  { %3199 = vmatpush.bf16.msrb.mxu2 %v5246_v34  ;;  %v6221_v55 = vld [vmem:[%s9819_s10 + $0x404] sm:$0xf]  ;;  %v5323_v38 = vld [vmem:[%s9819_s10 + $0x510] sm:$0xf0]  ;;  %v5598_v40 = vor.u32 %v6321_v56, %v5595_v3  ;;  %v5186_v46 = vor.u32 %v6220_v49, %v5185_v14  ;;  %v5041_v34 = vld [vmem:[%s9819_s10 + $0x2c8] sm:$0xf]  ;;  %v5170_v16 = vor.u32 %v6216_v17, %v5169_v42 }
 0x29d   :  { %v6253_v20 = vld [vmem:[%s9819_s10 + $0x504] sm:$0xf]  ;;  %v5451_v44 = vld [vmem:[%s9819_s10 + $0x610] sm:$0xf0]  ;;  %v5198_v52 = vor.u32 %v6221_v55, %v5195_v1  ;;  %v4769_v15 = vld [vmem:[%s9819_s10 + $0xa8] sm:$0xf] }
 0x29e   :  { %3212 = vmatpush.bf16.msrb.mxu3 %v5374_v27  ;;  %v6285_v9 = vld [vmem:[%s9819_s10 + $0x604] sm:$0xf]  ;;  %v5579_v5 = vld [vmem:[%s9819_s10 + $0x710] sm:$0xf0]  ;;  %v5326_v61 = vor.u32 %v6253_v20, %v5323_v38  ;;  %v6184_v27 = vld [vmem:[%s9819_s10 + $0x2d4] sm:$0xf0] }
 0x29f   :  { %3225 = vmatpush.bf16.msra.mxu0 %v5502_v32  ;;  %3238 = vmatpush.bf16.msra.mxu1 %v5630_v37  ;;  %v6317_v35 = vld [vmem:[%s9819_s10 + $0x704] sm:$0xf]  ;;  %v5454_v24 = vor.u32 %v6285_v9, %v5451_v44  ;;  %v4786_v32 = vor.u32 %v6120_v50, %v4785_v60  ;;  %v4914_v37 = vor.u32 %v6152_v2, %v4913_v59  ;;  %v6116_v25 = vld [vmem:[%s9819_s10 + $0xb4] sm:$0xf0]  ;;  %v4897_v18 = vld [vmem:[%s9819_s10 + $0x1a8] sm:$0xf] }
 0x2a0   :  { %3200 = vmatpush.bf16.msrb.mxu2 %v5230_v33  ;;  %v5582_v47 = vor.u32 %v6317_v35, %v5579_v5  ;;  %v5042_v30 = vor.u32 %v6184_v27, %v5041_v34  ;;  %v6148_v28 = vld [vmem:[%s9819_s10 + $0x1b4] sm:$0xf0]  ;;  %v5025_v33 = vld [vmem:[%s9819_s10 + $0x2a8] sm:$0xf] }
 0x2a1   :  { %v5153_v31 = vld [vmem:[%s9819_s10 + $0x3a8] sm:$0xf]  ;;  %v6212_v21 = vld [vmem:[%s9819_s10 + $0x3b4] sm:$0xf0] }
 0x2a2   :  { %3213 = vmatpush.bf16.msrb.mxu3 %v5358_v45  ;;  %v6180_v45 = vld [vmem:[%s9819_s10 + $0x2b4] sm:$0xf0]  ;;  %v4753_v6 = vld [vmem:[%s9819_s10 + $0x88] sm:$0xf]  ;;  %v5154_v10 = vor.u32 %v6212_v21, %v5153_v31 }
 0x2a3   :  { %3226 = vmatpush.bf16.msra.mxu0 %v5486_v23  ;;  %3239 = vmatpush.bf16.msra.mxu1 %v5614_v11  ;;  %v4770_v23 = vor.u32 %v6116_v25, %v4769_v15  ;;  %v4898_v11 = vor.u32 %v6148_v28, %v4897_v18  ;;  %v6112_v13 = vld [vmem:[%s9819_s10 + $0x94] sm:$0xf0]  ;;  %v5026_v7 = vor.u32 %v6180_v45, %v5025_v33  ;;  %v4881_v56 = vld [vmem:[%s9819_s10 + $0x188] sm:$0xf] }
 0x2a4   :  { %3201 = vmatpush.bf16.msrb.mxu2 %v5214_v26  ;;  %v6144_v3 = vld [vmem:[%s9819_s10 + $0x194] sm:$0xf0]  ;;  %v5009_v55 = vld [vmem:[%s9819_s10 + $0x288] sm:$0xf]  ;;  %v4754_v20 = vor.u32 %v6112_v13, %v4753_v6 }
 0x2a5   :  { %v6176_v26 = vld [vmem:[%s9819_s10 + $0x294] sm:$0xf0]  ;;  %v4882_v38 = vor.u32 %v6144_v3, %v4881_v56  ;;  %v4865_v35 = vld [vmem:[%s9819_s10 + $0x168] sm:$0xf] }
 0x2a6   :  { %3214 = vmatpush.bf16.msrb.mxu3 %v5342_v22  ;;  %v5137_v22 = vld [vmem:[%s9819_s10 + $0x388] sm:$0xf]  ;;  %v6208_v1 = vld [vmem:[%s9819_s10 + $0x394] sm:$0xf0]  ;;  %v5010_v9 = vor.u32 %v6176_v26, %v5009_v55 }
 0x2a7   :  { %3227 = vmatpush.bf16.msra.mxu0 %v5470_v43  ;;  %3240 = vmatpush.bf16.msra.mxu1 %v5598_v40  ;;  %v4737_v43 = vld [vmem:[%s9819_s10 + $0x68] sm:$0xf]  ;;  %v6108_v40 = vld [vmem:[%s9819_s10 + $0x74] sm:$0xf0]  ;;  %v5138_v44 = vor.u32 %v6208_v1, %v5137_v22 }
 0x2a8   :  { %3202 = vmatpush.bf16.msrb.mxu2 %v5198_v52  ;;  %v6140_v5 = vld [vmem:[%s9819_s10 + $0x174] sm:$0xf0]  ;;  %v4993_v29 = vld [vmem:[%s9819_s10 + $0x268] sm:$0xf]  ;;  %v4738_v8 = vor.u32 %v6108_v40, %v4737_v43 }
 0x2a9   :  { %v6172_v62 = vld [vmem:[%s9819_s10 + $0x274] sm:$0xf0]  ;;  %v5121_v36 = vld [vmem:[%s9819_s10 + $0x368] sm:$0xf]  ;;  %v4866_v52 = vor.u32 %v6140_v5, %v4865_v35 }
 0x2aa   :  { %3215 = vmatpush.bf16.msrb.mxu3 %v5326_v61  ;;  %v6204_v12 = vld [vmem:[%s9819_s10 + $0x374] sm:$0xf0]  ;;  %v4721_v61 = vld [vmem:[%s9819_s10 + $0x48] sm:$0xf]  ;;  %v4994_v14 = vor.u32 %v6172_v62, %v4993_v29 }
 0x2ab   :  { %3228 = vmatpush.bf16.msra.mxu0 %v5454_v24  ;;  %3241 = vmatpush.bf16.msra.mxu1 %v5582_v47  ;;  %v6104_v4 = vld [vmem:[%s9819_s10 + $0x54] sm:$0xf0]  ;;  %v5122_v49 = vor.u32 %v6204_v12, %v5121_v36  ;;  %v4849_v24 = vld [vmem:[%s9819_s10 + $0x148] sm:$0xf] }
 0x2ac   :  { %3247 = vmatpush.bf16.msra.mxu2 %v4802_v63  ;;  %v6136_v47 = vld [vmem:[%s9819_s10 + $0x154] sm:$0xf0]  ;;  %v4977_v63 = vld [vmem:[%s9819_s10 + $0x248] sm:$0xf] }
 0x2ad   :  { %3203 = vmatmul.bf16.vlgmr.msrb.gmra.mxu2 %v8152_v58  ;;  %3216 = vmatmul.bf16.vlgmr.msrb.gmra.mxu3 %v8154_v54  ;;  %v5105_v60 = vld [vmem:[%s9819_s10 + $0x348] sm:$0xf]  ;;  %v6200_v50 = vld [vmem:[%s9819_s10 + $0x354] sm:$0xf0] }
 0x2ae   :  { %3260 = vmatpush.bf16.msra.mxu3 %v4930_v48  ;;  %3229 = vmatmul.bf16.vlgmr.msra.gmra.mxu0 %v8162_v51  ;;  %v6168_v48 = vld [vmem:[%s9819_s10 + $0x254] sm:$0xf0]  ;;  %v4705_v59 = vld [vmem:[%s9819_s10 + $0x28] sm:$0xf]  ;;  %v5106_v27 = vor.u32 %v6200_v50, %v5105_v60 }
 0x2af   :  { %3273 = vmatpush.bf16.msrb.mxu0 %v5058_v53  ;;  %3286 = vmatpush.bf16.msrb.mxu1 %v5186_v46  ;;  %v4722_v53 = vor.u32 %v6104_v4, %v4721_v61  ;;  %v4850_v46 = vor.u32 %v6136_v47, %v4849_v24  ;;  %v6100_v2 = vld [vmem:[%s9819_s10 + $0x34] sm:$0xf0]  ;;  %v4978_v34 = vor.u32 %v6168_v48, %v4977_v63  ;;  %v4833_v42 = vld [vmem:[%s9819_s10 + $0x128] sm:$0xf] }
 0x2b0   :  { %3242 = vmatmul.bf16.vlgmr.msra.gmra.mxu1 %v8164_v57  ;;  %3248 = vmatpush.bf16.msra.mxu2 %v4786_v32  ;;  %v6132_v17 = vld [vmem:[%s9819_s10 + $0x134] sm:$0xf0]  ;;  %v4961_v32 = vld [vmem:[%s9819_s10 + $0x228] sm:$0xf] }
 0x2b1   :  { %v5089_v15 = vld [vmem:[%s9819_s10 + $0x328] sm:$0xf]  ;;  %v6196_v25 = vld [vmem:[%s9819_s10 + $0x334] sm:$0xf0]  ;;  %v4834_v18 = vor.u32 %v6132_v17, %v4833_v42 }
 0x2b2   :  { %3261 = vmatpush.bf16.msra.mxu3 %v4914_v37  ;;  %v6164_v37 = vld [vmem:[%s9819_s10 + $0x234] sm:$0xf0]  ;;  %v4817_v33 = vld [vmem:[%s9819_s10 + $0x108] sm:$0xf]  ;;  %v5090_v21 = vor.u32 %v6196_v25, %v5089_v15 }
 0x2b3   :  { %3274 = vmatpush.bf16.msrb.mxu0 %v5042_v30  ;;  %3287 = vmatpush.bf16.msrb.mxu1 %v5170_v16  ;;  %v4689_v30 = vld [vmem:[%s9819_s10 + $0x8] sm:$0xf]  ;;  %v4706_v16 = vor.u32 %v6100_v2, %v4705_v59  ;;  %v6096_v28 = vld [vmem:[%s9819_s10 + $0x14] sm:$0xf0]  ;;  %v4962_v31 = vor.u32 %v6164_v37, %v4961_v32 }
 0x2b4   :  { %3249 = vmatpush.bf16.msra.mxu2 %v4770_v23  ;;  %v6128_v45 = vld [vmem:[%s9819_s10 + $0x114] sm:$0xf0]  ;;  %v4945_v23 = vld [vmem:[%s9819_s10 + $0x208] sm:$0xf]  ;;  %v4690_v26 = vor.u32 %v6096_v28, %v4689_v30 }
 0x2b5   :  { %v5073_v6 = vld [vmem:[%s9819_s10 + $0x308] sm:$0xf]  ;;  %v6192_v13 = vld [vmem:[%s9819_s10 + $0x314] sm:$0xf0]  ;;  %v4818_v22 = vor.u32 %v6128_v45, %v4817_v33 }
 0x2b6   :  { %3262 = vmatpush.bf16.msra.mxu3 %v4898_v11  ;;  %v6160_v11 = vld [vmem:[%s9819_s10 + $0x214] sm:$0xf0]  ;;  %v5441_v56 = vld [vmem:[%s9819_s10 + $0x5e8] sm:$0xf]  ;;  %v5074_v40 = vor.u32 %v6192_v13, %v5073_v6 }
 0x2b7   :  { %3275 = vmatpush.bf16.msrb.mxu0 %v5026_v7  ;;  %3288 = vmatpush.bf16.msrb.mxu1 %v5154_v10  ;;  %v5313_v7 = vld [vmem:[%s9819_s10 + $0x4e8] sm:$0xf]  ;;  %v6252_v10 = vld [vmem:[%s9819_s10 + $0x4f4] sm:$0xf0]  ;;  %v4946_v43 = vor.u32 %v6160_v11, %v4945_v23 }
 0x2b8   :  { %3250 = vmatpush.bf16.msra.mxu2 %v4754_v20  ;;  %v6284_v3 = vld [vmem:[%s9819_s10 + $0x5f4] sm:$0xf0]  ;;  %v5569_v55 = vld [vmem:[%s9819_s10 + $0x6e8] sm:$0xf] }
 0x2b9   :  { %v6316_v1 = vld [vmem:[%s9819_s10 + $0x6f4] sm:$0xf0]  ;;  %v5697_v20 = vld [vmem:[%s9819_s10 + $0x7e8] sm:$0xf] }
 0x2ba   :  { %3263 = vmatpush.bf16.msra.mxu3 %v4882_v38  ;;  %v6348_v38 = vld [vmem:[%s9819_s10 + $0x7f4] sm:$0xf0]  ;;  %v5297_v35 = vld [vmem:[%s9819_s10 + $0x4c8] sm:$0xf]  ;;  %v5570_v29 = vor.u32 %v6316_v1, %v5569_v55 }
 0x2bb   :  { %3276 = vmatpush.bf16.msrb.mxu0 %v5010_v9  ;;  %3289 = vmatpush.bf16.msrb.mxu1 %v5138_v44  ;;  %v5314_v9 = vor.u32 %v6252_v10, %v5313_v7  ;;  %v5442_v44 = vor.u32 %v6284_v3, %v5441_v56  ;;  %v6248_v5 = vld [vmem:[%s9819_s10 + $0x4d4] sm:$0xf0]  ;;  %v5698_v62 = vor.u32 %v6348_v38, %v5697_v20  ;;  %v5425_v36 = vld [vmem:[%s9819_s10 + $0x5c8] sm:$0xf] }
 0x2bc   :  { %3251 = vmatpush.bf16.msra.mxu2 %v4738_v8  ;;  %v6280_v12 = vld [vmem:[%s9819_s10 + $0x5d4] sm:$0xf0]  ;;  %v5553_v8 = vld [vmem:[%s9819_s10 + $0x6c8] sm:$0xf] }
 0x2bd   :  { %v5681_v61 = vld [vmem:[%s9819_s10 + $0x7c8] sm:$0xf]  ;;  %v6344_v4 = vld [vmem:[%s9819_s10 + $0x7d4] sm:$0xf0] }
 0x2be   :  { %3264 = vmatpush.bf16.msra.mxu3 %v4866_v52  ;;  %v6312_v52 = vld [vmem:[%s9819_s10 + $0x6d4] sm:$0xf0]  ;;  %v5281_v24 = vld [vmem:[%s9819_s10 + $0x4a8] sm:$0xf]  ;;  %v5682_v48 = vor.u32 %v6344_v4, %v5681_v61 }
 0x2bf   :  { %3277 = vmatpush.bf16.msrb.mxu0 %v4994_v14  ;;  %3290 = vmatpush.bf16.msrb.mxu1 %v5122_v49  ;;  %v5298_v14 = vor.u32 %v6248_v5, %v5297_v35  ;;  %v5426_v49 = vor.u32 %v6280_v12, %v5425_v36  ;;  %v6244_v47 = vld [vmem:[%s9819_s10 + $0x4b4] sm:$0xf0]  ;;  %v5554_v63 = vor.u32 %v6312_v52, %v5553_v8  ;;  %v5409_v60 = vld [vmem:[%s9819_s10 + $0x5a8] sm:$0xf] }
 0x2c0   :  { %3252 = vmatpush.bf16.msra.mxu2 %v4722_v53  ;;  %v6276_v50 = vld [vmem:[%s9819_s10 + $0x5b4] sm:$0xf0]  ;;  %v5537_v53 = vld [vmem:[%s9819_s10 + $0x6a8] sm:$0xf] }
 0x2c1   :  { %v5665_v59 = vld [vmem:[%s9819_s10 + $0x7a8] sm:$0xf]  ;;  %v6340_v2 = vld [vmem:[%s9819_s10 + $0x7b4] sm:$0xf0] }
 0x2c2   :  { %3265 = vmatpush.bf16.msra.mxu3 %v4850_v46  ;;  %v6308_v46 = vld [vmem:[%s9819_s10 + $0x6b4] sm:$0xf0]  ;;  %v5265_v42 = vld [vmem:[%s9819_s10 + $0x488] sm:$0xf]  ;;  %v5666_v37 = vor.u32 %v6340_v2, %v5665_v59 }
 0x2c3   :  { %3278 = vmatpush.bf16.msrb.mxu0 %v4978_v34  ;;  %3291 = vmatpush.bf16.msrb.mxu1 %v5106_v27  ;;  %v5282_v34 = vor.u32 %v6244_v47, %v5281_v24  ;;  %v5410_v27 = vor.u32 %v6276_v50, %v5409_v60  ;;  %v6240_v17 = vld [vmem:[%s9819_s10 + $0x494] sm:$0xf0]  ;;  %v5538_v32 = vor.u32 %v6308_v46, %v5537_v53  ;;  %v5393_v15 = vld [vmem:[%s9819_s10 + $0x588] sm:$0xf] }
 0x2c4   :  { %3253 = vmatpush.bf16.msra.mxu2 %v4706_v16  ;;  %v6272_v25 = vld [vmem:[%s9819_s10 + $0x594] sm:$0xf0]  ;;  %v5521_v30 = vld [vmem:[%s9819_s10 + $0x688] sm:$0xf]  ;;  %v5266_v33 = vor.u32 %v6240_v17, %v5265_v42 }
 0x2c5   :  { %v6304_v16 = vld [vmem:[%s9819_s10 + $0x694] sm:$0xf0]  ;;  %v5394_v45 = vor.u32 %v6272_v25, %v5393_v15  ;;  %v5377_v6 = vld [vmem:[%s9819_s10 + $0x568] sm:$0xf]  ;;  %v6154_v15 = vld [vmem:[%s9819_s10 + $0x1ec] sm:$0xf] }
 0x2c6   :  { %3266 = vmatpush.bf16.msra.mxu3 %v4834_v18  ;;  %v5649_v18 = vld [vmem:[%s9819_s10 + $0x788] sm:$0xf]  ;;  %v6336_v28 = vld [vmem:[%s9819_s10 + $0x794] sm:$0xf0]  ;;  %v5522_v23 = vor.u32 %v6304_v16, %v5521_v30  ;;  %v4931_v25 = vld [vmem:[%s9819_s10 + $0x1f8] sm:$0xf0] }
 0x2c7   :  { %3279 = vmatpush.bf16.msrb.mxu0 %v4962_v31  ;;  %3292 = vmatpush.bf16.msrb.mxu1 %v5090_v21  ;;  %v5249_v31 = vld [vmem:[%s9819_s10 + $0x468] sm:$0xf]  ;;  %v6236_v21 = vld [vmem:[%s9819_s10 + $0x474] sm:$0xf0]  ;;  %v5650_v11 = vor.u32 %v6336_v28, %v5649_v18  ;;  %v6186_v30 = vld [vmem:[%s9819_s10 + $0x2ec] sm:$0xf] }
 0x2c8   :  { %3254 = vmatpush.bf16.msra.mxu2 %v4690_v26  ;;  %v6268_v13 = vld [vmem:[%s9819_s10 + $0x574] sm:$0xf0]  ;;  %v5505_v7 = vld [vmem:[%s9819_s10 + $0x668] sm:$0xf]  ;;  %v5250_v55 = vor.u32 %v6236_v21, %v5249_v31  ;;  %v5059_v28 = vld [vmem:[%s9819_s10 + $0x2f8] sm:$0xf0] }
 0x2c9   :  { %v6300_v10 = vld [vmem:[%s9819_s10 + $0x674] sm:$0xf0]  ;;  %v5633_v56 = vld [vmem:[%s9819_s10 + $0x768] sm:$0xf]  ;;  %v5378_v26 = vor.u32 %v6268_v13, %v5377_v6  ;;  %v6118_v6 = vld [vmem:[%s9819_s10 + $0xcc] sm:$0xf] }
 0x2ca   :  { %3267 = vmatpush.bf16.msra.mxu3 %v4818_v22  ;;  %v6332_v3 = vld [vmem:[%s9819_s10 + $0x774] sm:$0xf0]  ;;  %v5233_v22 = vld [vmem:[%s9819_s10 + $0x448] sm:$0xf]  ;;  %v5506_v20 = vor.u32 %v6300_v10, %v5505_v7  ;;  %v4787_v13 = vld [vmem:[%s9819_s10 + $0xd8] sm:$0xf0]  ;;  %v5062_v7 = vor.u32 %v6186_v30, %v5059_v28 }
 0x2cb   :  { %3280 = vmatpush.bf16.msrb.mxu0 %v4946_v43  ;;  %3293 = vmatpush.bf16.msrb.mxu1 %v5074_v40  ;;  %v6232_v1 = vld [vmem:[%s9819_s10 + $0x454] sm:$0xf0]  ;;  %v5634_v38 = vor.u32 %v6332_v3, %v5633_v56  ;;  %v5361_v43 = vld [vmem:[%s9819_s10 + $0x548] sm:$0xf]  ;;  %v6150_v56 = vld [vmem:[%s9819_s10 + $0x1cc] sm:$0xf] }
 0x2cc   :  { %3299 = vmatpush.bf16.msrb.mxu2 %v5314_v9  ;;  %v6264_v40 = vld [vmem:[%s9819_s10 + $0x554] sm:$0xf0]  ;;  %v5489_v9 = vld [vmem:[%s9819_s10 + $0x648] sm:$0xf]  ;;  %v4915_v3 = vld [vmem:[%s9819_s10 + $0x1d8] sm:$0xf0] }
 0x2cd   :  { %3255 = vmatmul.bf16.vlgmr.msra.gmra.mxu2 %v7978_v19  ;;  %3268 = vmatmul.bf16.vlgmr.msra.gmra.mxu3 %v7980_v0  ;;  %v5617_v35 = vld [vmem:[%s9819_s10 + $0x748] sm:$0xf]  ;;  %v6328_v5 = vld [vmem:[%s9819_s10 + $0x754] sm:$0xf0]  ;;  %v4867_v30 = vld [vmem:[%s9819_s10 + $0x178] sm:$0xf0] }
 0x2ce   :  { %3312 = vmatpush.bf16.msrb.mxu3 %v5442_v44  ;;  %3281 = vmatmul.bf16.vlgmr.msrb.gmra.mxu0 %v7989_v41  ;;  %v6296_v44 = vld [vmem:[%s9819_s10 + $0x654] sm:$0xf0]  ;;  %v5217_v36 = vld [vmem:[%s9819_s10 + $0x428] sm:$0xf]  ;;  %v5618_v52 = vor.u32 %v6328_v5, %v5617_v35  ;;  %v6146_v35 = vld [vmem:[%s9819_s10 + $0x1ac] sm:$0xf] }
 0x2cf   :  { %3325 = vmatpush.bf16.msra.mxu0 %v5570_v29  ;;  %3338 = vmatpush.bf16.msra.mxu1 %v5698_v62  ;;  %v5234_v29 = vor.u32 %v6232_v1, %v5233_v22  ;;  %v5362_v62 = vor.u32 %v6264_v40, %v5361_v43  ;;  %v6228_v12 = vld [vmem:[%s9819_s10 + $0x434] sm:$0xf0]  ;;  %v5490_v8 = vor.u32 %v6296_v44, %v5489_v9  ;;  %v5345_v61 = vld [vmem:[%s9819_s10 + $0x528] sm:$0xf]  ;;  %v6214_v22 = vld [vmem:[%s9819_s10 + $0x3cc] sm:$0xf] }
 0x2d0   :  { %3294 = vmatmul.bf16.vlgmr.msrb.gmra.mxu1 %v8003_v39  ;;  %3300 = vmatpush.bf16.msrb.mxu2 %v5298_v14  ;;  %v6260_v4 = vld [vmem:[%s9819_s10 + $0x534] sm:$0xf0]  ;;  %v5473_v14 = vld [vmem:[%s9819_s10 + $0x628] sm:$0xf]  ;;  %v5171_v1 = vld [vmem:[%s9819_s10 + $0x3d8] sm:$0xf0] }
 0x2d1   :  { %v5601_v24 = vld [vmem:[%s9819_s10 + $0x728] sm:$0xf]  ;;  %v6324_v47 = vld [vmem:[%s9819_s10 + $0x734] sm:$0xf0]  ;;  %v5346_v60 = vor.u32 %v6260_v4, %v5345_v61  ;;  %v6114_v43 = vld [vmem:[%s9819_s10 + $0xac] sm:$0xf]  ;;  %v5174_v44 = vor.u32 %v6214_v22, %v5171_v1 }
 0x2d2   :  { %3313 = vmatpush.bf16.msrb.mxu3 %v5426_v49  ;;  %v6292_v49 = vld [vmem:[%s9819_s10 + $0x634] sm:$0xf0]  ;;  %v5329_v53 = vld [vmem:[%s9819_s10 + $0x508] sm:$0xf]  ;;  %v5602_v2 = vor.u32 %v6324_v47, %v5601_v24  ;;  %v4771_v40 = vld [vmem:[%s9819_s10 + $0xb8] sm:$0xf0] }
 0x2d3   :  { %3326 = vmatpush.bf16.msra.mxu0 %v5554_v63  ;;  %3339 = vmatpush.bf16.msra.mxu1 %v5682_v48  ;;  %v5201_v63 = vld [vmem:[%s9819_s10 + $0x408] sm:$0xf]  ;;  %v5218_v48 = vor.u32 %v6228_v12, %v5217_v36  ;;  %v6224_v50 = vld [vmem:[%s9819_s10 + $0x414] sm:$0xf0]  ;;  %v5474_v59 = vor.u32 %v6292_v49, %v5473_v14  ;;  %v4899_v5 = vld [vmem:[%s9819_s10 + $0x1b8] sm:$0xf0]  ;;  %v4774_v61 = vor.u32 %v6114_v43, %v4771_v40 }
 0x2d4   :  { %3301 = vmatpush.bf16.msrb.mxu2 %v5282_v34  ;;  %v6256_v46 = vld [vmem:[%s9819_s10 + $0x514] sm:$0xf0]  ;;  %v5457_v34 = vld [vmem:[%s9819_s10 + $0x608] sm:$0xf]  ;;  %v5202_v16 = vor.u32 %v6224_v50, %v5201_v63  ;;  %v6210_v36 = vld [vmem:[%s9819_s10 + $0x3ac] sm:$0xf]  ;;  %v4902_v4 = vor.u32 %v6146_v35, %v4899_v5 }
 0x2d5   :  { %v5585_v42 = vld [vmem:[%s9819_s10 + $0x708] sm:$0xf]  ;;  %v6320_v17 = vld [vmem:[%s9819_s10 + $0x714] sm:$0xf0]  ;;  %v5330_v18 = vor.u32 %v6256_v46, %v5329_v53  ;;  %v5155_v12 = vld [vmem:[%s9819_s10 + $0x3b8] sm:$0xf0] }
 0x2d6   :  { %3314 = vmatpush.bf16.msrb.mxu3 %v5410_v27  ;;  %v6288_v27 = vld [vmem:[%s9819_s10 + $0x614] sm:$0xf0]  ;;  %v5586_v21 = vor.u32 %v6320_v17, %v5585_v42  ;;  %v6110_v14 = vld [vmem:[%s9819_s10 + $0x8c] sm:$0xf]  ;;  %v4755_v49 = vld [vmem:[%s9819_s10 + $0x98] sm:$0xf0]  ;;  %v5158_v47 = vor.u32 %v6210_v36, %v5155_v12 }
 0x2d7   :  { %3327 = vmatpush.bf16.msra.mxu0 %v5538_v32  ;;  %3340 = vmatpush.bf16.msra.mxu1 %v5666_v37  ;;  %v6122_v32 = vld [vmem:[%s9819_s10 + $0xec] sm:$0xf]  ;;  %v4803_v37 = vld [vmem:[%s9819_s10 + $0xf8] sm:$0xf0]  ;;  %v5458_v31 = vor.u32 %v6288_v27, %v5457_v34  ;;  %v4758_v34 = vor.u32 %v6110_v14, %v4755_v49 }
 0x2d8   :  { %3302 = vmatpush.bf16.msrb.mxu2 %v5266_v33  ;;  %v6218_v33 = vld [vmem:[%s9819_s10 + $0x3ec] sm:$0xf]  ;;  %v5011_v50 = vld [vmem:[%s9819_s10 + $0x298] sm:$0xf0] }
 0x2d9   :  { %v6142_v63 = vld [vmem:[%s9819_s10 + $0x18c] sm:$0xf]  ;;  %v5139_v46 = vld [vmem:[%s9819_s10 + $0x398] sm:$0xf0] }
 0x2da   :  { %3315 = vmatpush.bf16.msrb.mxu3 %v5394_v45  ;;  %v5187_v45 = vld [vmem:[%s9819_s10 + $0x3f8] sm:$0xf0]  ;;  %v6206_v53 = vld [vmem:[%s9819_s10 + $0x38c] sm:$0xf] }
 0x2db   :  { %3328 = vmatpush.bf16.msra.mxu0 %v5522_v23  ;;  %3341 = vmatpush.bf16.msra.mxu1 %v5650_v11  ;;  %v4806_v23 = vor.u32 %v6122_v32, %v4803_v37  ;;  %v4934_v11 = vor.u32 %v6154_v15, %v4931_v25  ;;  %v5190_v10 = vor.u32 %v6218_v33, %v5187_v45  ;;  %v6106_v17 = vld [vmem:[%s9819_s10 + $0x6c] sm:$0xf]  ;;  %v4739_v32 = vld [vmem:[%s9819_s10 + $0x78] sm:$0xf0] }
 0x2dc   :  { %3303 = vmatpush.bf16.msrb.mxu2 %v5250_v55  ;;  %v6182_v55 = vld [vmem:[%s9819_s10 + $0x2cc] sm:$0xf]  ;;  %v5142_v15 = vor.u32 %v6206_v53, %v5139_v46  ;;  %v4995_v28 = vld [vmem:[%s9819_s10 + $0x278] sm:$0xf0] }
 0x2dd   :  { %v6138_v25 = vld [vmem:[%s9819_s10 + $0x16c] sm:$0xf]  ;;  %v5123_v45 = vld [vmem:[%s9819_s10 + $0x378] sm:$0xf0] }
 0x2de   :  { %3316 = vmatpush.bf16.msrb.mxu3 %v5378_v26  ;;  %v5043_v26 = vld [vmem:[%s9819_s10 + $0x2d8] sm:$0xf0]  ;;  %v6202_v33 = vld [vmem:[%s9819_s10 + $0x36c] sm:$0xf] }
 0x2df   :  { %3329 = vmatpush.bf16.msra.mxu0 %v5506_v20  ;;  %3342 = vmatpush.bf16.msra.mxu1 %v5634_v38  ;;  %v4790_v20 = vor.u32 %v6118_v6, %v4787_v13  ;;  %v4918_v38 = vor.u32 %v6150_v56, %v4915_v3  ;;  %v5046_v9 = vor.u32 %v6182_v55, %v5043_v26  ;;  %v6102_v6 = vld [vmem:[%s9819_s10 + $0x4c] sm:$0xf]  ;;  %v4723_v13 = vld [vmem:[%s9819_s10 + $0x58] sm:$0xf0] }
 0x2e0   :  { %3304 = vmatpush.bf16.msrb.mxu2 %v5234_v29  ;;  %v6178_v29 = vld [vmem:[%s9819_s10 + $0x2ac] sm:$0xf]  ;;  %v5126_v56 = vor.u32 %v6202_v33, %v5123_v45  ;;  %v4851_v55 = vld [vmem:[%s9819_s10 + $0x158] sm:$0xf0]  ;;  %v4726_v40 = vor.u32 %v6102_v6, %v4723_v13 }
 0x2e1   :  { %v6134_v3 = vld [vmem:[%s9819_s10 + $0x14c] sm:$0xf]  ;;  %v4979_v22 = vld [vmem:[%s9819_s10 + $0x258] sm:$0xf0] }
 0x2e2   :  { %3317 = vmatpush.bf16.msrb.mxu3 %v5362_v62  ;;  %v5027_v62 = vld [vmem:[%s9819_s10 + $0x2b8] sm:$0xf0]  ;;  %v6166_v26 = vld [vmem:[%s9819_s10 + $0x24c] sm:$0xf] }
 0x2e3   :  { %3330 = vmatpush.bf16.msra.mxu0 %v5490_v8  ;;  %3343 = vmatpush.bf16.msra.mxu1 %v5618_v52  ;;  %v3074_v8 = vpop.f32.mrf.mxu0  ;;  %v5030_v24 = vor.u32 %v6178_v29, %v5027_v62  ;;  %v6198_v1 = vld [vmem:[%s9819_s10 + $0x34c] sm:$0xf]  ;;  %v4707_v35 = vld [vmem:[%s9819_s10 + $0x38] sm:$0xf0]  ;;  %v4982_v5 = vor.u32 %v6166_v26, %v4979_v22 }
 0x2e4   :  { %3305 = vmatpush.bf16.msrb.mxu2 %v5218_v48  ;;  %v4883_v48 = vld [vmem:[%s9819_s10 + $0x198] sm:$0xf0]  ;;  %v6130_v62 = vld [vmem:[%s9819_s10 + $0x12c] sm:$0xf] }
 0x2e5   :  { %v3087_v52 = vpop.f32.mrf.mxu1  ;;  %v4886_v27 = vor.u32 %v6142_v63, %v4883_v48  ;;  %v4835_v36 = vld [vmem:[%s9819_s10 + $0x138] sm:$0xf0]  ;;  %v6162_v12 = vld [vmem:[%s9819_s10 + $0x22c] sm:$0xf] }
 0x2e6   :  { %3318 = vmatpush.bf16.msrb.mxu3 %v5346_v60  ;;  %v6174_v60 = vld [vmem:[%s9819_s10 + $0x28c] sm:$0xf]  ;;  %v4838_v49 = vor.u32 %v6130_v62, %v4835_v36  ;;  %v4691_v63 = vld [vmem:[%s9819_s10 + $0x18] sm:$0xf0] }
 0x2e7   :  { %3331 = vmatpush.bf16.msra.mxu0 %v5474_v59  ;;  %3344 = vmatpush.bf16.msra.mxu1 %v5602_v2  ;;  %v3061_v2 = vpop.f32.mrf.mxu3  ;;  %v5014_v37 = vor.u32 %v6174_v60, %v5011_v50  ;;  %v6126_v48 = vld [vmem:[%s9819_s10 + $0x10c] sm:$0xf]  ;;  %v4819_v60 = vld [vmem:[%s9819_s10 + $0x118] sm:$0xf0] }
 0x2e8   :  { %3306 = vmatpush.bf16.msrb.mxu2 %v5202_v16  ;;  %v3048_v59 = vpop.f32.mrf.mxu2  ;;  %v6170_v16 = vld [vmem:[%s9819_s10 + $0x26c] sm:$0xf]  ;;  %v5299_v13 = vld [vmem:[%s9819_s10 + $0x4d8] sm:$0xf0] }
 0x2e9   :  { %v3062_v42 = vadd.f32 %v3061_v2, %v3048_v59  ;;  %v6158_v46 = vld [vmem:[%s9819_s10 + $0x20c] sm:$0xf]  ;;  %v4947_v59 = vld [vmem:[%s9819_s10 + $0x218] sm:$0xf0] }
 0x2ea   :  { %3319 = vmatpush.bf16.msrb.mxu3 %v5330_v18  ;;  %v6190_v2 = vld [vmem:[%s9819_s10 + $0x30c] sm:$0xf] }
 0x2eb   :  { %3332 = vmatpush.bf16.msra.mxu0 %v5458_v31  ;;  %3345 = vmatpush.bf16.msra.mxu1 %v5586_v21  ;;  %v3075_v18 = vadd.f32 %v3074_v8, %v3062_v42  ;;  %v3076_v31 = vpop.f32.mrf.mxu0  ;;  %v4963_v8 = vld [vmem:[%s9819_s10 + $0x238] sm:$0xf0]  ;;  %v6246_v6 = vld [vmem:[%s9819_s10 + $0x4cc] sm:$0xf] }
 0x2ec   :  { %3351 = vmatpush.bf16.msra.mxu2 %v4806_v23  ;;  %v4742_v23 = vor.u32 %v6106_v17, %v4739_v32  ;;  %v4966_v50 = vor.u32 %v6162_v12, %v4963_v8  ;;  %v5315_v42 = vld [vmem:[%s9819_s10 + $0x4f8] sm:$0xf0]  ;;  %v6282_v17 = vld [vmem:[%s9819_s10 + $0x5ec] sm:$0xf] }
 0x2ed   :  { %3307 = vmatmul.bf16.vlgmr.msrb.gmra.mxu2 %v8152_v58  ;;  %3320 = vmatmul.bf16.vlgmr.msrb.gmra.mxu3 %v8154_v54  ;;  %v3089_v21 = vpop.f32.mrf.mxu1  ;;  %v5443_v32 = vld [vmem:[%s9819_s10 + $0x5f8] sm:$0xf0]  ;;  %v6274_v36 = vld [vmem:[%s9819_s10 + $0x5ac] sm:$0xf] }
 0x2ee   :  { %3364 = vmatpush.bf16.msra.mxu3 %v4934_v11  ;;  %3333 = vmatmul.bf16.vlgmr.msra.gmra.mxu0 %v8162_v51  ;;  %v4870_v11 = vor.u32 %v6138_v25, %v4867_v30  ;;  %v4822_v25 = vor.u32 %v6126_v48, %v4819_v60  ;;  %v5571_v30 = vld [vmem:[%s9819_s10 + $0x6f8] sm:$0xf0]  ;;  %v6306_v8 = vld [vmem:[%s9819_s10 + $0x6ac] sm:$0xf] }
 0x2ef   :  { %3377 = vmatpush.bf16.msrb.mxu0 %v5062_v7  ;;  %3390 = vmatpush.bf16.msrb.mxu1 %v5190_v10  ;;  %v8954_v7 = vadd.f32 %v3087_v52, %v3075_v18  ;;  %v4998_v10 = vor.u32 %v6170_v16, %v4995_v28  ;;  %v3063_v43 = vpop.f32.mrf.mxu3  ;;  %v6194_v52 = vld [vmem:[%s9819_s10 + $0x32c] sm:$0xf]  ;;  %v5699_v18 = vld [vmem:[%s9819_s10 + $0x7f8] sm:$0xf0]  ;;  %v4950_v28 = vor.u32 %v6158_v46, %v4947_v59 }
 0x2f0   :  { %3346 = vmatmul.bf16.vlgmr.msra.gmra.mxu1 %v8164_v57  ;;  %3352 = vmatpush.bf16.msra.mxu2 %v4790_v20  ;;  %v5107_v20 = vld [vmem:[%s9819_s10 + $0x358] sm:$0xf0]  ;;  %v6346_v16 = vld [vmem:[%s9819_s10 + $0x7ec] sm:$0xf] }
 0x2f1   :  { %v5110_v29 = vor.u32 %v6198_v1, %v5107_v20  ;;  %v5555_v20 = vld [vmem:[%s9819_s10 + $0x6d8] sm:$0xf0]  ;;  %v6334_v46 = vld [vmem:[%s9819_s10 + $0x78c] sm:$0xf] }
 0x2f2   :  { %3365 = vmatpush.bf16.msra.mxu3 %v4918_v38  ;;  %v3050_v38 = vpop.f32.mrf.mxu2  ;;  %v5683_v43 = vld [vmem:[%s9819_s10 + $0x7d8] sm:$0xf0] }
 0x2f3   :  { %3378 = vmatpush.bf16.msrb.mxu0 %v5046_v9  ;;  %3391 = vmatpush.bf16.msrb.mxu1 %v5174_v44  ;;  %v4854_v9 = vor.u32 %v6134_v3, %v4851_v55  ;;  %v6098_v44 = vld [vmem:[%s9819_s10 + $0x2c] sm:$0xf]  ;;  %v5427_v55 = vld [vmem:[%s9819_s10 + $0x5d8] sm:$0xf0] }
 0x2f4   :  { %3353 = vmatpush.bf16.msra.mxu2 %v4774_v61  ;;  %v5091_v61 = vld [vmem:[%s9819_s10 + $0x338] sm:$0xf0]  ;;  %v4710_v14 = vor.u32 %v6098_v44, %v4707_v35  ;;  %v6278_v3 = vld [vmem:[%s9819_s10 + $0x5cc] sm:$0xf] }
 0x2f5   :  { %v5094_v53 = vor.u32 %v6194_v52, %v5091_v61  ;;  %v6342_v38 = vld [vmem:[%s9819_s10 + $0x7cc] sm:$0xf]  ;;  %v5430_v44 = vor.u32 %v6278_v3, %v5427_v55  ;;  %v5411_v12 = vld [vmem:[%s9819_s10 + $0x5b8] sm:$0xf0] }
 0x2f6   :  { %3366 = vmatpush.bf16.msra.mxu3 %v4902_v4  ;;  %v6094_v4 = vld [vmem:[%s9819_s10 + $0xc] sm:$0xf]  ;;  %v5686_v62 = vor.u32 %v6342_v38, %v5683_v43  ;;  %v5539_v61 = vld [vmem:[%s9819_s10 + $0x6b8] sm:$0xf0] }
 0x2f7   :  { %3379 = vmatpush.bf16.msrb.mxu0 %v5030_v24  ;;  %3392 = vmatpush.bf16.msrb.mxu1 %v5158_v47  ;;  %v3126_v24 = vpop.f32.mrf.mxu0  ;;  %v9001_v47 = vpop.f32.mrf.mxu1  ;;  %v6242_v35 = vld [vmem:[%s9819_s10 + $0x4ac] sm:$0xf]  ;;  %v5395_v60 = vld [vmem:[%s9819_s10 + $0x598] sm:$0xf0] }
 0x2f8   :  { %3354 = vmatpush.bf16.msra.mxu2 %v4758_v34  ;;  %v5075_v34 = vld [vmem:[%s9819_s10 + $0x318] sm:$0xf0]  ;;  %v3113_v31 = vpop.f32.mrf.mxu3  ;;  %v6294_v55 = vld [vmem:[%s9819_s10 + $0x64c] sm:$0xf] }
 0x2f9   :  { %v5078_v33 = vor.u32 %v6190_v2, %v5075_v34  ;;  %v5651_v59 = vld [vmem:[%s9819_s10 + $0x798] sm:$0xf0] }
 0x2fa   :  { %3367 = vmatpush.bf16.msra.mxu3 %v4886_v27  ;;  %v6250_v27 = vld [vmem:[%s9819_s10 + $0x4ec] sm:$0xf]  ;;  %v3100_v45 = vpop.f32.mrf.mxu2  ;;  %v5363_v3 = vld [vmem:[%s9819_s10 + $0x558] sm:$0xf0] }
 0x2fb   :  { %3380 = vmatpush.bf16.msrb.mxu0 %v5014_v37  ;;  %3393 = vmatpush.bf16.msrb.mxu1 %v5142_v15  ;;  %v6314_v37 = vld [vmem:[%s9819_s10 + $0x6ec] sm:$0xf]  ;;  %v4694_v15 = vor.u32 %v6094_v4, %v4691_v63  ;;  %v5318_v21 = vor.u32 %v6250_v27, %v5315_v42  ;;  %v5542_v63 = vor.u32 %v6306_v8, %v5539_v61  ;;  %v5347_v8 = vld [vmem:[%s9819_s10 + $0x538] sm:$0xf0] }
 0x2fc   :  { %3355 = vmatpush.bf16.msra.mxu2 %v4742_v23  ;;  %v5446_v23 = vor.u32 %v6282_v17, %v5443_v32  ;;  %v6338_v4 = vld [vmem:[%s9819_s10 + $0x7ac] sm:$0xf]  ;;  %v5251_v32 = vld [vmem:[%s9819_s10 + $0x478] sm:$0xf0] }
 0x2fd   :  { %v6234_v17 = vld [vmem:[%s9819_s10 + $0x46c] sm:$0xf] }
 0x2fe   :  { %3368 = vmatpush.bf16.msra.mxu3 %v4870_v11  ;;  %v3101_v11 = vadd.f32 %v3100_v45, %v8954_v7  ;;  %v6310_v7 = vld [vmem:[%s9819_s10 + $0x6cc] sm:$0xf]  ;;  %v5254_v45 = vor.u32 %v6234_v17, %v5251_v32 }
 0x2ff   :  { %3381 = vmatpush.bf16.msrb.mxu0 %v4998_v10  ;;  %3394 = vmatpush.bf16.msrb.mxu1 %v5126_v56  ;;  %v5574_v10 = vor.u32 %v6314_v37, %v5571_v30  ;;  %v5702_v56 = vor.u32 %v6346_v16, %v5699_v18  ;;  %v3128_v22 = vpop.f32.mrf.mxu0  ;;  %v3141_v1 = vpop.f32.mrf.mxu1  ;;  %v5379_v30 = vld [vmem:[%s9819_s10 + $0x578] sm:$0xf0]  ;;  %v6298_v16 = vld [vmem:[%s9819_s10 + $0x66c] sm:$0xf] }
 0x300   :  { %3356 = vmatpush.bf16.msra.mxu2 %v4726_v40  ;;  %v3114_v26 = vadd.f32 %v3113_v31, %v3101_v11  ;;  %v5507_v18 = vld [vmem:[%s9819_s10 + $0x678] sm:$0xf0]  ;;  %v6326_v22 = vld [vmem:[%s9819_s10 + $0x74c] sm:$0xf] }
 0x301   :  { %v5510_v11 = vor.u32 %v6298_v16, %v5507_v18  ;;  %v5619_v1 = vld [vmem:[%s9819_s10 + $0x758] sm:$0xf0]  ;;  %v6290_v61 = vld [vmem:[%s9819_s10 + $0x62c] sm:$0xf] }
 0x302   :  { %3369 = vmatpush.bf16.msra.mxu3 %v4854_v9  ;;  %v3127_v40 = vadd.f32 %v3126_v24, %v3114_v26  ;;  %v5302_v9 = vor.u32 %v6246_v6, %v5299_v13  ;;  %v5414_v24 = vor.u32 %v6274_v36, %v5411_v12  ;;  %v5491_v26 = vld [vmem:[%s9819_s10 + $0x658] sm:$0xf0]  ;;  %v5622_v36 = vor.u32 %v6326_v22, %v5619_v1  ;;  %v6258_v12 = vld [vmem:[%s9819_s10 + $0x52c] sm:$0xf] }
 0x303   :  { %3382 = vmatpush.bf16.msrb.mxu0 %v4982_v5  ;;  %3395 = vmatpush.bf16.msrb.mxu1 %v5110_v29  ;;  %v5283_v5 = vld [vmem:[%s9819_s10 + $0x4b8] sm:$0xf0]  ;;  %v5558_v29 = vor.u32 %v6310_v7, %v5555_v20 }
 0x304   :  { %3357 = vmatpush.bf16.msra.mxu2 %v4710_v14  ;;  %v9089_v52 = vadd.f32 %v9001_v47, %v3127_v40  ;;  %v5667_v14 = vld [vmem:[%s9819_s10 + $0x7b8] sm:$0xf0]  ;;  %v6238_v47 = vld [vmem:[%s9819_s10 + $0x48c] sm:$0xf] }
 0x305   :  { %v5670_v48 = vor.u32 %v6338_v4, %v5667_v14  ;;  %v5475_v4 = vld [vmem:[%s9819_s10 + $0x638] sm:$0xf0]  ;;  %v6322_v14 = vld [vmem:[%s9819_s10 + $0x72c] sm:$0xf] }
 0x306   :  { %3370 = vmatpush.bf16.msra.mxu3 %v4838_v49  ;;  %v3102_v49 = vpop.f32.mrf.mxu2  ;;  %v3489_v20 = vmul.f32 %v9089_v52, %v9089_v52  ;;  %v3457_v38 = vsel %vm92_vm0, %v9089_v52, 0.0 }
 0x307   :  { %3383 = vmatpush.bf16.msrb.mxu0 %v4966_v50  ;;  %3396 = vmatpush.bf16.msrb.mxu1 %v5094_v53  ;;  %v6302_v50 = vld [vmem:[%s9819_s10 + $0x68c] sm:$0xf]  ;;  %v5523_v53 = vld [vmem:[%s9819_s10 + $0x698] sm:$0xf0] }
 0x308   :  { %3358 = vmatpush.bf16.msra.mxu2 %v4694_v15  ;;  %v5526_v37 = vor.u32 %v6302_v50, %v5523_v53  ;;  %v5654_v15 = vor.u32 %v6334_v46, %v5651_v59  ;;  %v5603_v49 = vld [vmem:[%s9819_s10 + $0x738] sm:$0xf0]  ;;  %v6254_v46 = vld [vmem:[%s9819_s10 + $0x50c] sm:$0xf] }
 0x309   :  { %v5331_v59 = vld [vmem:[%s9819_s10 + $0x518] sm:$0xf0] }
 0x30a   :  { %3371 = vmatpush.bf16.msra.mxu3 %v4822_v25  ;;  %v6266_v25 = vld [vmem:[%s9819_s10 + $0x56c] sm:$0xf]  ;;  %v5334_v32 = vor.u32 %v6254_v46, %v5331_v59 }
 0x30b   :  { %3384 = vmatpush.bf16.msrb.mxu0 %v4950_v28  ;;  %3397 = vmatpush.bf16.msrb.mxu1 %v5078_v33  ;;  %v3178_v2 = vpop.f32.mrf.mxu0  ;;  %v6330_v28 = vld [vmem:[%s9819_s10 + $0x76c] sm:$0xf]  ;;  %v5635_v33 = vld [vmem:[%s9819_s10 + $0x778] sm:$0xf0]  ;;  %v5382_v31 = vor.u32 %v6266_v25, %v5379_v30 }
 0x30c   :  { %3403 = vmatpush.bf16.msrb.mxu2 %v5318_v21  ;;  %v6230_v21 = vld [vmem:[%s9819_s10 + $0x44c] sm:$0xf]  ;;  %v5638_v6 = vor.u32 %v6330_v28, %v5635_v33 }
 0x30d   :  { %3359 = vmatmul.bf16.vlgmr.msra.gmra.mxu2 %v7978_v19  ;;  %3372 = vmatmul.bf16.vlgmr.msra.gmra.mxu3 %v7980_v0  ;;  %v3115_v19 = vpop.f32.mrf.mxu3  ;;  %v5286_v0 = vor.u32 %v6242_v35, %v5283_v5  ;;  %v3191_v34 = vpop.f32.mrf.mxu1  ;;  %v6226_v5 = vld [vmem:[%s9819_s10 + $0x42c] sm:$0xf] }
 0x30e   :  { %3416 = vmatpush.bf16.msrb.mxu3 %v5446_v23  ;;  %3385 = vmatmul.bf16.vlgmr.msrb.gmra.mxu0 %v7989_v41  ;;  %v5267_v41 = vld [vmem:[%s9819_s10 + $0x498] sm:$0xf0] }
 0x30f   :  { %3429 = vmatpush.bf16.msra.mxu0 %v5574_v10  ;;  %3442 = vmatpush.bf16.msra.mxu1 %v5702_v56  ;;  %v5270_v27 = vor.u32 %v6238_v47, %v5267_v41  ;;  %v5235_v23 = vld [vmem:[%s9819_s10 + $0x458] sm:$0xf0]  ;;  %v6262_v56 = vld [vmem:[%s9819_s10 + $0x54c] sm:$0xf] }
 0x310   :  { %3398 = vmatmul.bf16.vlgmr.msrb.gmra.mxu1 %v8003_v39  ;;  %3404 = vmatpush.bf16.msrb.mxu2 %v5302_v9  ;;  %v6270_v39 = vld [vmem:[%s9819_s10 + $0x58c] sm:$0xf]  ;;  %v3152_v13 = vpop.f32.mrf.mxu2  ;;  %v5366_v35 = vor.u32 %v6262_v56, %v5363_v3  ;;  %v5203_v41 = vld [vmem:[%s9819_s10 + $0x418] sm:$0xf0] }
 0x311   :  { %v5398_v42 = vor.u32 %v6270_v39, %v5395_v60  ;;  %v5478_v39 = vor.u32 %v6290_v61, %v5475_v4  ;;  %v5606_v60 = vor.u32 %v6322_v14, %v5603_v49 }
 0x312   :  { %3417 = vmatpush.bf16.msrb.mxu3 %v5430_v44  ;;  %v5238_v44 = vor.u32 %v6230_v21, %v5235_v23 }
 0x313   :  { %3430 = vmatpush.bf16.msra.mxu0 %v5558_v29  ;;  %3443 = vmatpush.bf16.msra.mxu1 %v5686_v62  ;;  %v3180_v40 = vpop.f32.mrf.mxu0  ;;  %v5219_v29 = vld [vmem:[%s9819_s10 + $0x438] sm:$0xf0]  ;;  %v5494_v62 = vor.u32 %v6294_v55, %v5491_v26 }
 0x314   :  { %3405 = vmatpush.bf16.msrb.mxu2 %v5286_v0  ;;  %v3458_v0 = vrot.slane %v3457_v38, 4  ;;  %v5222_v47 = vor.u32 %v6226_v5, %v5219_v29 }
 0x315   :  { %v3165_v10 = vpop.f32.mrf.mxu3  ;;  %v3193_v9 = vpop.f32.mrf.mxu1 }
 0x316   :  { %3418 = vmatpush.bf16.msrb.mxu3 %v5414_v24  ;;  %v3166_v7 = vadd.f32 %v3165_v10, %v3152_v13  ;;  %v3493_v24 = vsel %vm92_vm0, %v3489_v20, 0.0 }
 0x317   :  { %3431 = vmatpush.bf16.msra.mxu0 %v5542_v63  ;;  %3444 = vmatpush.bf16.msra.mxu1 %v5670_v48  ;;  %v5350_v63 = vor.u32 %v6258_v12, %v5347_v8  ;;  %v6222_v48 = vld [vmem:[%s9819_s10 + $0x40c] sm:$0xf] }
 0x318   :  { %3406 = vmatpush.bf16.msrb.mxu2 %v5270_v27  ;;  %v3179_v43 = vadd.f32 %v3178_v2, %v3166_v7  ;;  %v3154_v50 = vpop.f32.mrf.mxu2  ;;  %v6286_v2 = vld [vmem:[%s9819_s10 + $0x60c] sm:$0xf]  ;;  %v5206_v17 = vor.u32 %v6222_v48, %v5203_v41 }
 0x319   :  { %v6318_v27 = vld [vmem:[%s9819_s10 + $0x70c] sm:$0xf] }
 0x31a   :  { %3419 = vmatpush.bf16.msrb.mxu3 %v5398_v42  ;;  %v3192_v19 = vadd.f32 %v3191_v34, %v3179_v43  ;;  %v5459_v34 = vld [vmem:[%s9819_s10 + $0x618] sm:$0xf0] }
 0x31b   :  { %3432 = vmatpush.bf16.msra.mxu0 %v5526_v37  ;;  %3445 = vmatpush.bf16.msra.mxu1 %v5654_v15  ;;  %v5587_v42 = vld [vmem:[%s9819_s10 + $0x718] sm:$0xf0]  ;;  %v3459_v37 = vadd.f32 %v3458_v0, %v3457_v38  ;;  %v3494_v15 = vrot.slane %v3493_v24, 4  ;;  %v5462_v25 = vor.u32 %v6286_v2, %v5459_v34 }
 0x31c   :  { %3407 = vmatpush.bf16.msrb.mxu2 %v5254_v45  ;;  %v5590_v30 = vor.u32 %v6318_v27, %v5587_v42 }
 0x31d   :  { %v3167_v53 = vpop.f32.mrf.mxu3  ;;  %v3460_v16 = vrot.slane %v3459_v37, 2  ;;  %v3495_v18 = vadd.f32 %v3494_v15, %v3493_v24 }
 0x31e   :  { %3420 = vmatpush.bf16.msrb.mxu3 %v5382_v31 }
 0x31f   :  { %3433 = vmatpush.bf16.msra.mxu0 %v5510_v11  ;;  %3446 = vmatpush.bf16.msra.mxu1 %v5638_v6  ;;  %v3461_v28 = vadd.f32 %v3460_v16, %v3459_v37  ;;  %v3496_v33 = vrot.slane %v3495_v18, 2 }
 0x320   :  { %3408 = vmatpush.bf16.msrb.mxu2 %v5238_v44 }
 0x321   :  { %v3462_v45 = vrot.slane %v3461_v28, 1  ;;  %v3497_v31 = vadd.f32 %v3496_v33, %v3495_v18 }
 0x322   :  { %3421 = vmatpush.bf16.msrb.mxu3 %v5366_v35 }
 0x323   :  { %3434 = vmatpush.bf16.msra.mxu0 %v5494_v62  ;;  %3447 = vmatpush.bf16.msra.mxu1 %v5622_v36  ;;  %v3463_v11 = vadd.f32 %v3462_v45, %v3461_v28  ;;  %v3498_v6 = vrot.slane %v3497_v31, 1 }
 0x324   :  { %3409 = vmatpush.bf16.msrb.mxu2 %v5222_v47 }
 0x325   :  { %v9233_v3 = vmul.f32 0.5, %v3463_v11 }
 0x326   :  { %3422 = vmatpush.bf16.msrb.mxu3 %v5350_v63 }
 0x327   :  { %3435 = vmatpush.bf16.msra.mxu0 %v5478_v39  ;;  %3448 = vmatpush.bf16.msra.mxu1 %v5606_v60 }
 0x328   :  { %3410 = vmatpush.bf16.msrb.mxu2 %v5206_v17 }
 0x32a   :  { %3423 = vmatpush.bf16.msrb.mxu3 %v5334_v32 }
 0x32b   :  { %3436 = vmatpush.bf16.msra.mxu0 %v5462_v25  ;;  %3449 = vmatpush.bf16.msra.mxu1 %v5590_v30  ;;  %v3230_v21 = vpop.f32.mrf.mxu0 }
 0x32c   :  { %3411 = vmatmul.bf16.vlgmr.msrb.gmra.mxu2 %v8152_v58  ;;  %v3499_v58 = vadd.f32 %v3498_v6, %v3497_v31 }
 0x32d   :  { %3424 = vmatmul.bf16.vlgmr.msrb.gmra.mxu3 %v8154_v54  ;;  %v3243_v23 = vpop.f32.mrf.mxu1 }
 0x32e   :  { %3437 = vmatmul.bf16.vlgmr.msra.gmra.mxu0 %v8162_v51  ;;  %3450 = vmatmul.bf16.vlgmr.msra.gmra.mxu1 %v8164_v57  ;;  %v3521_v26 = vmul.f32 0.5, %v3499_v58  ;;  %v3525_v57 = vmul.f32 %v9233_v3, %v9233_v3 }
 0x330   :  { %v3204_v13 = vpop.f32.mrf.mxu2  ;;  %v3217_v10 = vpop.f32.mrf.mxu3  ;;  %v3529_v40 = vsub.f32 %v3521_v26, %v3525_v57 }
 0x331   :  { %v3205_v56 = vadd.f32 %v3204_v13, %v3192_v19 }
 0x332   :  { %v3533_v29 = vmax.f32 %v3529_v40, 0.0 }
 0x333   :  { %v3218_v55 = vadd.f32 %v3217_v10, %v3205_v56  ;;  %v3232_v54 = vpop.f32.mrf.mxu0 }
 0x334   :  { %v3537_v61 = vadd.f32 1e-05, %v3533_v29 }
 0x335   :  { %v3245_v7 = vpop.f32.mrf.mxu1  ;;  %v3231_v51 = vadd.f32 %v3230_v21, %v3218_v55 }
 0x336   :  { %6437 = vrsqrt.f32 %v3537_v61  ;;  %vm3547_vm1 = vweird.f32 %v3537_v61 }
 0x337   :  { %v9237_v22 = vadd.f32 %v3243_v23, %v3231_v51 }
 0x338   :  { %v3206_v1 = vpop.f32.mrf.mxu2  ;;  %v3219_v20 = vpop.f32.mrf.mxu3 }
 0x339   :  { %v3464_v38 = vsel %vm92_vm0, %v9237_v22, 0.0  ;;  %v3490_v43 = vmul.f32 %v9237_v22, %v9237_v22 }
 0x33a   :  { %v3465_v9 = vrot.slane %v3464_v38, 4 }
 0x33b   :  { %v3500_v44 = vsel %vm92_vm0, %v3490_v43, 0.0 }
 0x33c   :  { %v3466_v35 = vadd.f32 %v3465_v9, %v3464_v38  ;;  %v3501_v5 = vrot.slane %v3500_v44, 4  ;;  %v6438_v60 = vpop.eup %6437 }
 0x33d   :  { %v3542_v2 = vmul.f32 %v6438_v60, %v3537_v61  ;;  %vm3548_vm13 = vweird.f32 %v6438_v60 }
 0x33e   :  { %v3467_v62 = vrot.slane %v3466_v35, 2  ;;  %v3502_v36 = vadd.f32 %v3501_v5, %v3500_v44  ;;  %vm3549_vm2 = vmor %vm3547_vm1, %vm3548_vm13 }
 0x33f   :  { %v3543_v32 = vmul.f32 %v6438_v60, %v3542_v2 }
 0x340   :  { %v3468_v12 = vadd.f32 %v3467_v62, %v3466_v35  ;;  %v3503_v8 = vrot.slane %v3502_v36, 2 }
 0x341   :  { %v3544_v16 = vmul.f32 0.5, %v3543_v32 }
 0x342   :  { %v3469_v4 = vrot.slane %v3468_v12, 1  ;;  %v3504_v14 = vadd.f32 %v3503_v8, %v3502_v36 }
 0x343   :  { %v3545_v33 = vsub.f32 1.5, %v3544_v16 }
 0x344   :  { %v3470_v49 = vadd.f32 %v3469_v4, %v3468_v12  ;;  %v3505_v19 = vrot.slane %v3504_v14, 1 }
 0x345   :  { %v3546_v23 = vmul.f32 %v6438_v60, %v3545_v33 }
 0x346   :  { %v9244_v0 = vmul.f32 0.5, %v3470_v49  ;;  %v3506_v24 = vadd.f32 %v3505_v19, %v3504_v14 }
 0x347   :  { %v3550_v13 = vsel %vm3549_vm2, %v6438_v60, %v3546_v23 }
 0x348   :  { %v3522_v47 = vmul.f32 0.5, %v3506_v24  ;;  %v3526_v63 = vmul.f32 %v9244_v0, %v9244_v0 }
 0x34a   :  { %v3530_v39 = vsub.f32 %v3522_v47, %v3526_v63 }
 0x34b   :  { %v3282_v48 = vpop.f32.mrf.mxu0 }
 0x34c   :  { %v3534_v50 = vmax.f32 %v3530_v39, 0.0 }
 0x34d   :  { %v3295_v41 = vpop.f32.mrf.mxu1 }
 0x34e   :  { %v3538_v53 = vadd.f32 1e-05, %v3534_v50 }
 0x350   :  { %v3256_v46 = vpop.f32.mrf.mxu2  ;;  %v3269_v59 = vpop.f32.mrf.mxu3  ;;  %6439 = vrsqrt.f32 %v3538_v53  ;;  %vm3557_vm14 = vweird.f32 %v3538_v53 }
 0x351   :  { %v3270_v34 = vadd.f32 %v3269_v59, %v3256_v46 }
 0x353   :  { %v3283_v27 = vadd.f32 %v3282_v48, %v3270_v34  ;;  %v3284_v42 = vpop.f32.mrf.mxu0 }
 0x355   :  { %v3297_v17 = vpop.f32.mrf.mxu1  ;;  %v3296_v37 = vadd.f32 %v3295_v41, %v3283_v27 }
 0x356   :  { %v6440_v15 = vpop.eup %6439 }
 0x357   :  { %v3552_v18 = vmul.f32 %v6440_v15, %v3538_v53  ;;  %vm3558_vm12 = vweird.f32 %v6440_v15 }
 0x358   :  { %v3258_v25 = vpop.f32.mrf.mxu2  ;;  %v3271_v30 = vpop.f32.mrf.mxu3  ;;  %vm3559_vm15 = vmor %vm3557_vm14, %vm3558_vm12 }
 0x359   :  { %v3553_v28 = vmul.f32 %v6440_v15, %v3552_v18 }
 0x35b   :  { %v3554_v45 = vmul.f32 0.5, %v3553_v28 }
 0x35d   :  { %v3555_v31 = vsub.f32 1.5, %v3554_v45 }
 0x35f   :  { %v3556_v21 = vmul.f32 %v6440_v15, %v3555_v31 }
 0x361   :  { %v3560_v11 = vsel %vm3559_vm15, %v6440_v15, %v3556_v21 }
 0x362   :  { %v3585_v6 = vrot.slane %v3560_v11, 7 }
 0x364   :  { %v9249_v10 = vsel %vm841_vm6, %v3550_v13, %v3585_v6 }
 0x36b   :  { %v3334_v56 = vpop.f32.mrf.mxu0 }
 0x36d   :  { %v3347_v58 = vpop.f32.mrf.mxu1 }
 0x370   :  { %v3308_v55 = vpop.f32.mrf.mxu2  ;;  %v3321_v54 = vpop.f32.mrf.mxu3 }
 0x371   :  { %v3309_v7 = vadd.f32 %v3308_v55, %v3296_v37 }
 0x373   :  { %v3322_v51 = vadd.f32 %v3321_v54, %v3309_v7  ;;  %v3336_v26 = vpop.f32.mrf.mxu0 }
 0x375   :  { %v3349_v57 = vpop.f32.mrf.mxu1  ;;  %v3335_v1 = vadd.f32 %v3334_v56, %v3322_v51 }
 0x377   :  { %v9251_v20 = vadd.f32 %v3347_v58, %v3335_v1 }
 0x378   :  { %v3310_v38 = vpop.f32.mrf.mxu2  ;;  %v3323_v43 = vpop.f32.mrf.mxu3 }
 0x379   :  { %v3471_v44 = vsel %vm92_vm0, %v9251_v20, 0.0  ;;  %v3491_v35 = vmul.f32 %v9251_v20, %v9251_v20 }
 0x37a   :  { %v3472_v62 = vrot.slane %v3471_v44, 4 }
 0x37b   :  { %v3507_v36 = vsel %vm92_vm0, %v3491_v35, 0.0  ;;  %v5761_v35 = vld [vmem:[%s9822_s13 + $0x70] sm:$0xf] }
 0x37c   :  { %v3473_v61 = vadd.f32 %v3472_v62, %v3471_v44  ;;  %v3508_v4 = vrot.slane %v3507_v36, 4  ;;  %v5825_v62 = vld [vmem:[%s9822_s13 + $0xf0] sm:$0xf] }
 0x37e   :  { %v3474_v19 = vrot.slane %v3473_v61, 2  ;;  %v3509_v24 = vadd.f32 %v3508_v4, %v3507_v36  ;;  %v6380_v36 = vld [vmem:[%s9822_s13 + $0xf4] sm:$0xf0] }
 0x37f   :  { %v5826_v4 = vor.u32 %v6380_v36, %v5825_v62 }
 0x380   :  { %v3475_v47 = vadd.f32 %v3474_v19, %v3473_v61  ;;  %v3510_v63 = vrot.slane %v3509_v24, 2 }
 0x381   :  { %4040 = vmatpush.bf16.msra.mxu3 %v5826_v4 }
 0x382   :  { %v3476_v48 = vrot.slane %v3475_v47, 1  ;;  %v3511_v41 = vadd.f32 %v3510_v63, %v3509_v24 }
 0x384   :  { %v3477_v60 = vadd.f32 %v3476_v48, %v3475_v47  ;;  %v3512_v50 = vrot.slane %v3511_v41, 1  ;;  %v6412_v47 = vld [vmem:[%s9822_s13 + $0x1f4] sm:$0xf0] }
 0x386   :  { %v9258_v2 = vmul.f32 0.5, %v3477_v60  ;;  %v3513_v34 = vadd.f32 %v3512_v50, %v3511_v41  ;;  %v5753_v41 = vld [vmem:[%s9822_s13 + $0x60] sm:$0xf] }
 0x387   :  { %v5817_v60 = vld [vmem:[%s9822_s13 + $0xe0] sm:$0xf] }
 0x388   :  { %v3523_v42 = vmul.f32 0.5, %v3513_v34  ;;  %v3527_v17 = vmul.f32 %v9258_v2, %v9258_v2 }
 0x38a   :  { %v3531_v18 = vsub.f32 %v3523_v42, %v3527_v17  ;;  %v5945_v17 = vld [vmem:[%s9822_s13 + $0x1e0] sm:$0xf] }
 0x38b   :  { %v3386_v40 = vpop.f32.mrf.mxu0 }
 0x38c   :  { %v3535_v45 = vmax.f32 %v3531_v18, 0.0 }
 0x38d   :  { %v3399_v9 = vpop.f32.mrf.mxu1 }
 0x38e   :  { %v9269_v56 = vadd.f32 1e-05, %v3535_v45  ;;  %v6376_v45 = vld [vmem:[%s9822_s13 + $0xd4] sm:$0xf0] }
 0x390   :  { %v3360_v5 = vpop.f32.mrf.mxu2  ;;  %v3373_v29 = vpop.f32.mrf.mxu3  ;;  %6441 = vrsqrt.f32 %v9269_v56  ;;  %vm3567_vm4 = vweird.f32 %v9269_v56 }
 0x391   :  { %v3374_v39 = vadd.f32 %v3373_v29, %v3360_v5  ;;  %v6364_v5 = vld [vmem:[%s9822_s13 + $0x74] sm:$0xf0] }
 0x392   :  { %v5762_v29 = vor.u32 %v6364_v5, %v5761_v35  ;;  %v5929_v35 = vld [vmem:[%s9822_s13 + $0x1c0] sm:$0xf]  ;;  %v6406_v5 = vld [vmem:[%s9822_s13 + $0x1c4] sm:$0xf0] }
 0x393   :  { %v3388_v12 = vpop.f32.mrf.mxu0  ;;  %v3387_v53 = vadd.f32 %v3386_v40, %v3374_v39  ;;  %v6362_v39 = vld [vmem:[%s9822_s13 + $0x64] sm:$0xf0]  ;;  %v5930_v62 = vor.u32 %v6406_v5, %v5929_v35  ;;  %v3455_v5 = vld [vmem:[%s9823_s11] sm:$0xf] }
 0x394   :  { %v5889_v12 = vld [vmem:[%s9822_s13 + $0x170] sm:$0xf]  ;;  %4027 = vmatpush.bf16.msra.mxu2 %v5762_v29  ;;  %v5754_v50 = vor.u32 %v6362_v39, %v5753_v41  ;;  %v6404_v41 = vld [vmem:[%s9822_s13 + $0x1b4] sm:$0xf0]  ;;  %v6382_v35 = vld [vmem:[%s9822_s13 + $0x104] sm:$0xf0] }
 0x395   :  { %v3401_v8 = vpop.f32.mrf.mxu1  ;;  %v3400_v27 = vadd.f32 %v3399_v9, %v3387_v53  ;;  %v6378_v53 = vld [vmem:[%s9822_s13 + $0xe4] sm:$0xf0] }
 0x396   :  { %v9272_v40 = vpop.eup %6441 }
 0x397   :  { %v3562_v19 = vmul.f32 %v9272_v40, %v9269_v56  ;;  %vm3568_vm3 = vweird.f32 %v9272_v40  ;;  %v6377_v56 = vld [vmem:[%s9822_s13 + $0xe4] sm:$0xf] }
 0x398   :  { %v3362_v14 = vpop.f32.mrf.mxu2  ;;  %v3375_v49 = vpop.f32.mrf.mxu3  ;;  %4028 = vmatpush.bf16.msra.mxu2 %v5754_v50  ;;  %v5721_v50 = vld [vmem:[%s9822_s13 + $0x20] sm:$0xf]  ;;  %vm9433_vm8 = vmor %vm3567_vm4, %vm3568_vm3 }
 0x399   :  { %v6396_v14 = vld [vmem:[%s9822_s13 + $0x174] sm:$0xf0]  ;;  %v5953_v49 = vld [vmem:[%s9822_s13 + $0x1f0] sm:$0xf] }
 0x39a   :  { %v5890_v24 = vor.u32 %v6396_v14, %v5889_v12  ;;  %v5954_v48 = vor.u32 %v6412_v47, %v5953_v49  ;;  %v5729_v12 = vld [vmem:[%s9822_s13 + $0x30] sm:$0xf]  ;;  %v6372_v49 = vld [vmem:[%s9822_s13 + $0xb4] sm:$0xf0] }
 0x39c   :  { %4053 = vmatpush.bf16.msrb.mxu0 %v5890_v24  ;;  %4066 = vmatpush.bf16.msrb.mxu1 %v5954_v48  ;;  %v6388_v24 = vld [vmem:[%s9822_s13 + $0x134] sm:$0xf0]  ;;  %v5921_v48 = vld [vmem:[%s9822_s13 + $0x1b0] sm:$0xf] }
 0x3ab   :  { %v3438_v46 = vpop.f32.mrf.mxu0  ;;  %v3451_v59 = vpop.f32.mrf.mxu1 }
 0x3af   :  { %v3412_v32 = vpop.f32.mrf.mxu2 }
 0x3b0   :  { %v3425_v37 = vpop.f32.mrf.mxu3  ;;  %v3413_v15 = vadd.f32 %v3412_v32, %v3400_v27  ;;  %v5818_v27 = vor.u32 %v6378_v53, %v5817_v60  ;;  %v6410_v32 = vld [vmem:[%s9822_s13 + $0x1e4] sm:$0xf0]  ;;  %v5922_v60 = vor.u32 %v6404_v41, %v5921_v48  ;;  %v6395_v48 = vld [vmem:[%s9822_s13 + $0x174] sm:$0xf]  ;;  %v5891_v41 = vld [vmem:[%s9822_s13 + $0x178] sm:$0xf0] }
 0x3b1   :  { %v6354_v53 = vld [vmem:[%s9822_s13 + $0x24] sm:$0xf0] }
 0x3b2   :  { %v3426_v25 = vadd.f32 %v3425_v37, %v3413_v15  ;;  %v3563_v37 = vmul.f32 %v9272_v40, %v3562_v19  ;;  %v5946_v15 = vor.u32 %v6410_v32, %v5945_v17  ;;  %4041 = vmatpush.bf16.msra.mxu3 %v5818_v27  ;;  %v5857_v19 = vld [vmem:[%s9822_s13 + $0x130] sm:$0xf]  ;;  %v5849_v27 = vld [vmem:[%s9822_s13 + $0x120] sm:$0xf] }
 0x3b3   :  { %v3440_v30 = vpop.f32.mrf.mxu0  ;;  %v3453_v16 = vpop.f32.mrf.mxu1 }
 0x3b4   :  { %v3439_v28 = vadd.f32 %v3438_v46, %v3426_v25  ;;  %v5881_v46 = vld [vmem:[%s9822_s13 + $0x160] sm:$0xf]  ;;  %v5745_v30 = vld [vmem:[%s9822_s13 + $0x50] sm:$0xf]  ;;  %v6360_v16 = vld [vmem:[%s9822_s13 + $0x54] sm:$0xf0]  ;;  %4067 = vmatpush.bf16.msrb.mxu1 %v5946_v15 }
 0x3b5   :  { %v5746_v18 = vor.u32 %v6360_v16, %v5745_v30  ;;  %v5913_v30 = vld [vmem:[%s9822_s13 + $0x1a0] sm:$0xf]  ;;  %v6402_v16 = vld [vmem:[%s9822_s13 + $0x1a4] sm:$0xf0] }
 0x3b6   :  { %v9262_v33 = vadd.f32 %v3451_v59, %v3439_v28  ;;  %v6394_v59 = vld [vmem:[%s9822_s13 + $0x164] sm:$0xf0]  ;;  %v5809_v28 = vld [vmem:[%s9822_s13 + $0xd0] sm:$0xf] }
 0x3b7   :  { %v3414_v31 = vpop.f32.mrf.mxu2  ;;  %v5882_v42 = vor.u32 %v6394_v59, %v5881_v46  ;;  %4029 = vmatpush.bf16.msra.mxu2 %v5746_v18  ;;  %v5785_v46 = vld [vmem:[%s9822_s13 + $0xa0] sm:$0xf]  ;;  %v5722_v59 = vor.u32 %v6354_v53, %v5721_v50  ;;  %v5914_v18 = vor.u32 %v6402_v16, %v5913_v30  ;;  %v5894_v53 = vor.u32 %v6395_v48, %v5891_v41  ;;  %v5883_v30 = vld [vmem:[%s9822_s13 + $0x168] sm:$0xf0]  ;;  %v6409_v16 = vld [vmem:[%s9822_s13 + $0x1e4] sm:$0xf] }
 0x3b8   :  { %v3427_v21 = vpop.f32.mrf.mxu3  ;;  %v3478_v23 = vsel %vm92_vm0, %v9262_v33, 0.0  ;;  %v3492_v11 = vmul.f32 %v9262_v33, %v9262_v33  ;;  %v5873_v31 = vld [vmem:[%s9822_s13 + $0x150] sm:$0xf]  ;;  %v5931_v48 = vld [vmem:[%s9822_s13 + $0x1c8] sm:$0xf0] }
 0x3b9   :  { %v3479_v6 = vrot.slane %v3478_v23, 4  ;;  %4054 = vmatpush.bf16.msrb.mxu0 %v5882_v42  ;;  %v5810_v21 = vor.u32 %v6376_v45, %v5809_v28  ;;  %v6386_v42 = vld [vmem:[%s9822_s13 + $0x124] sm:$0xf0]  ;;  %v5713_v28 = vld [vmem:[%s9822_s13 + $0x10] sm:$0xf] }
 0x3ba   :  { %v3514_v13 = vsel %vm92_vm0, %v3492_v11, 0.0  ;;  %v5937_v11 = vld [vmem:[%s9822_s13 + $0x1d0] sm:$0xf]  ;;  %v5850_v15 = vor.u32 %v6386_v42, %v5849_v27  ;;  %v6352_v45 = vld [vmem:[%s9822_s13 + $0x14] sm:$0xf0] }
 0x3bb   :  { %v3480_v58 = vadd.f32 %v3479_v6, %v3478_v23  ;;  %v3515_v55 = vrot.slane %v3514_v13, 4  ;;  %v6392_v23 = vld [vmem:[%s9822_s13 + $0x154] sm:$0xf0]  ;;  %4042 = vmatpush.bf16.msra.mxu3 %v5810_v21  ;;  %v6355_v41 = vld [vmem:[%s9822_s13 + $0x34] sm:$0xf] }
 0x3bc   :  { %v6408_v6 = vld [vmem:[%s9822_s13 + $0x1d4] sm:$0xf0] }
 0x3bd   :  { %v3481_v54 = vrot.slane %v3480_v58, 2  ;;  %v3516_v7 = vadd.f32 %v3515_v55, %v3514_v13  ;;  %v3564_v13 = vmul.f32 0.5, %v3563_v37  ;;  %v5938_v55 = vor.u32 %v6408_v6, %v5937_v11  ;;  %v6368_v11 = vld [vmem:[%s9822_s13 + $0x94] sm:$0xf0]  ;;  %v5841_v6 = vld [vmem:[%s9822_s13 + $0x110] sm:$0xf] }
 0x3bf   :  { %v3482_v51 = vadd.f32 %v3481_v54, %v3480_v58  ;;  %v3517_v26 = vrot.slane %v3516_v7, 2  ;;  %v5874_v58 = vor.u32 %v6392_v23, %v5873_v31  ;;  %v5737_v54 = vld [vmem:[%s9822_s13 + $0x40] sm:$0xf]  ;;  %4068 = vmatpush.bf16.msrb.mxu1 %v5938_v55  ;;  %v3565_v29 = vsub.f32 1.5, %v3564_v13  ;;  %v5777_v31 = vld [vmem:[%s9822_s13 + $0x90] sm:$0xf] }
 0x3c0   :  { %v5778_v13 = vor.u32 %v6368_v11, %v5777_v31  ;;  %v5905_v55 = vld [vmem:[%s9822_s13 + $0x190] sm:$0xf]  ;;  %v6359_v31 = vld [vmem:[%s9822_s13 + $0x54] sm:$0xf] }
 0x3c1   :  { %v3483_v57 = vrot.slane %v3482_v51, 1  ;;  %v3518_v1 = vadd.f32 %v3517_v26, %v3516_v7  ;;  %v6358_v7 = vld [vmem:[%s9822_s13 + $0x44] sm:$0xf0]  ;;  %4055 = vmatpush.bf16.msrb.mxu0 %v5874_v58  ;;  %v3566_v17 = vmul.f32 %v9272_v40, %v3565_v29  ;;  %v6384_v58 = vld [vmem:[%s9822_s13 + $0x114] sm:$0xf0] }
 0x3c2   :  { %v5738_v26 = vor.u32 %v6358_v7, %v5737_v54  ;;  %v6400_v54 = vld [vmem:[%s9822_s13 + $0x194] sm:$0xf0] }
 0x3c3   :  { %v3484_v38 = vadd.f32 %v3483_v57, %v3482_v51  ;;  %v3519_v43 = vrot.slane %v3518_v1, 1  ;;  %v5801_v51 = vld [vmem:[%s9822_s13 + $0xc0] sm:$0xf]  ;;  %v6374_v57 = vld [vmem:[%s9822_s13 + $0xc4] sm:$0xf0]  ;;  %4069 = vmatpush.bf16.msrb.mxu1 %v5930_v62  ;;  %v3570_v7 = vsel %vm9433_vm8, %v9272_v40, %v3566_v17 }
 0x3c4   :  { %4030 = vmatpush.bf16.msra.mxu2 %v5738_v26  ;;  %v5842_v26 = vor.u32 %v6384_v58, %v5841_v6  ;;  %v6366_v40 = vld [vmem:[%s9822_s13 + $0x84] sm:$0xf0]  ;;  %v5755_v17 = vld [vmem:[%s9822_s13 + $0x68] sm:$0xf0] }
 0x3c5   :  { %v9274_v9 = vmul.f32 0.5, %v3484_v38  ;;  %v3520_v44 = vadd.f32 %v3519_v43, %v3518_v1  ;;  %v5865_v1 = vld [vmem:[%s9822_s13 + $0x140] sm:$0xf]  ;;  %v6390_v38 = vld [vmem:[%s9822_s13 + $0x144] sm:$0xf0]  ;;  %v5802_v43 = vor.u32 %v6374_v57, %v5801_v51 }
 0x3c6   :  { %v5705_v57 = vld [vmem:[%s9822_s13] sm:$0xf] }
 0x3c7   :  { %v3524_v8 = vmul.f32 0.5, %v3520_v44  ;;  %v3528_v61 = vmul.f32 %v9274_v9, %v9274_v9  ;;  %v5866_v44 = vor.u32 %v6390_v38, %v5865_v1  ;;  %4043 = vmatpush.bf16.msra.mxu3 %v5802_v43  ;;  %4070 = vmatpush.bf16.msrb.mxu1 %v5922_v60  ;;  %v6350_v1 = vld [vmem:[%s9822_s13 + $0x4] sm:$0xf0]  ;;  %v5769_v38 = vld [vmem:[%s9822_s13 + $0x80] sm:$0xf]  ;;  %v5906_v43 = vor.u32 %v6400_v54, %v5905_v55 }
 0x3c8   :  { %v5706_v62 = vor.u32 %v6350_v1, %v5705_v57  ;;  %v5811_v54 = vld [vmem:[%s9822_s13 + $0xd8] sm:$0xf0] }
 0x3c9   :  { %v3532_v63 = vsub.f32 %v3524_v8, %v3528_v61  ;;  %v6356_v8 = vld [vmem:[%s9822_s13 + $0x34] sm:$0xf0]  ;;  %v5793_v61 = vld [vmem:[%s9822_s13 + $0xb0] sm:$0xf]  ;;  %4056 = vmatpush.bf16.msrb.mxu0 %v5866_v44  ;;  %v5833_v44 = vld [vmem:[%s9822_s13 + $0x100] sm:$0xf] }
 0x3ca   :  { %v5730_v14 = vor.u32 %v6356_v8, %v5729_v12  ;;  %v5794_v47 = vor.u32 %v6372_v49, %v5793_v61  ;;  %v5897_v12 = vld [vmem:[%s9822_s13 + $0x180] sm:$0xf]  ;;  %v6398_v8 = vld [vmem:[%s9822_s13 + $0x184] sm:$0xf0]  ;;  %v6363_v61 = vld [vmem:[%s9822_s13 + $0x74] sm:$0xf]  ;;  %v5770_v49 = vor.u32 %v6366_v40, %v5769_v38 }
 0x3cb   :  { %v3536_v34 = vmax.f32 %v3532_v63, 0.0  ;;  %v5858_v63 = vor.u32 %v6388_v24, %v5857_v19  ;;  %4071 = vmatpush.bf16.msrb.mxu1 %v5914_v18  ;;  %v6379_v19 = vld [vmem:[%s9822_s13 + $0xf4] sm:$0xf]  ;;  %v5834_v24 = vor.u32 %v6382_v35, %v5833_v44  ;;  %v5898_v60 = vor.u32 %v6398_v8, %v5897_v12  ;;  %v5939_v40 = vld [vmem:[%s9822_s13 + $0x1d8] sm:$0xf0] }
 0x3cc   :  { %4031 = vmatpush.bf16.msra.mxu2 %v5730_v14  ;;  %4044 = vmatpush.bf16.msra.mxu3 %v5794_v47  ;;  %v3456_v44 = vld [vmem:[%s9824_s12] sm:$0xf]  ;;  %v5803_v12 = vld [vmem:[%s9822_s13 + $0xc8] sm:$0xf0] }
 0x3cd   :  { %v9329_v25 = vadd.f32 1e-05, %v3536_v34  ;;  %v6370_v34 = vld [vmem:[%s9822_s13 + $0xa4] sm:$0xf0]  ;;  %4057 = vmatpush.bf16.msrb.mxu0 %v5858_v63  ;;  %v5827_v63 = vld [vmem:[%s9822_s13 + $0xf8] sm:$0xf0] }
 0x3ce   :  { %v5786_v37 = vor.u32 %v6370_v34, %v5785_v46  ;;  %v5830_v50 = vor.u32 %v6379_v19, %v5827_v63  ;;  %v6411_v46 = vld [vmem:[%s9822_s13 + $0x1f4] sm:$0xf]  ;;  %v6361_v34 = vld [vmem:[%s9822_s13 + $0x64] sm:$0xf] }
 0x3cf   :  { %6443 = vrsqrt.f32 %v9329_v25  ;;  %vm3577_vm9 = vweird.f32 %v9329_v25  ;;  %4072 = vmatpush.bf16.msrb.mxu1 %v5906_v43  ;;  %v6407_v43 = vld [vmem:[%s9822_s13 + $0x1d4] sm:$0xf] }
 0x3d0   :  { %4032 = vmatpush.bf16.msra.mxu2 %v5722_v59  ;;  %4045 = vmatpush.bf16.msra.mxu3 %v5786_v37  ;;  %v5955_v59 = vld [vmem:[%s9822_s13 + $0x1f8] sm:$0xf0]  ;;  %v5942_v8 = vor.u32 %v6407_v43, %v5939_v40 }
 0x3d1   :  { %4058 = vmatpush.bf16.msrb.mxu0 %v5850_v15  ;;  %v5958_v42 = vor.u32 %v6411_v46, %v5955_v59  ;;  %v5758_v15 = vor.u32 %v6361_v34, %v5755_v17  ;;  %v6387_v46 = vld [vmem:[%s9822_s13 + $0x134] sm:$0xf]  ;;  %v5859_v59 = vld [vmem:[%s9822_s13 + $0x138] sm:$0xf0] }
 0x3d2   :  { %v6403_v17 = vld [vmem:[%s9822_s13 + $0x1b4] sm:$0xf] }
 0x3d3   :  { %4073 = vmatpush.bf16.msrb.mxu1 %v5898_v60 }
 0x3d4   :  { %4046 = vmatpush.bf16.msra.mxu3 %v5778_v13  ;;  %v6375_v13 = vld [vmem:[%s9822_s13 + $0xd4] sm:$0xf] }
 0x3d5   :  { %v9380_v36 = vpop.eup %6443  ;;  %4059 = vmatpush.bf16.msrb.mxu0 %v5842_v26 }
 0x3d6   :  { %v3572_v4 = vmul.f32 %v9380_v36, %v9329_v25  ;;  %vm3578_vm7 = vweird.f32 %v9380_v36  ;;  %v5714_v25 = vor.u32 %v6352_v45, %v5713_v28  ;;  %v5947_v45 = vld [vmem:[%s9822_s13 + $0x1e8] sm:$0xf0] }
 0x3d7   :  { %vm9455_vm10 = vmor %vm3577_vm9, %vm3578_vm7  ;;  %4118 = vmatpush.bf16.msra.mxu1 %v5958_v42  ;;  %v5950_v58 = vor.u32 %v6409_v16, %v5947_v45  ;;  %v5862_v16 = vor.u32 %v6387_v46, %v5859_v59 }
 0x3d8   :  { %v3573_v39 = vmul.f32 %v9380_v36, %v3572_v4  ;;  %4033 = vmatpush.bf16.msra.mxu2 %v5714_v25  ;;  %v3586_v4 = vrot.slane %v3570_v7, 6  ;;  %4047 = vmatpush.bf16.msra.mxu3 %v5770_v49  ;;  %v6391_v7 = vld [vmem:[%s9822_s13 + $0x154] sm:$0xf] }
 0x3d9   :  { %4060 = vmatpush.bf16.msrb.mxu0 %v5834_v24 }
 0x3da   :  { %v3574_v32 = vmul.f32 0.5, %v3573_v39 }
 0x3db   :  { %4119 = vmatpush.bf16.msra.mxu1 %v5950_v58  ;;  %v6401_v58 = vld [vmem:[%s9822_s13 + $0x1a4] sm:$0xf] }
 0x3dc   :  { %v3575_v21 = vsub.f32 1.5, %v3574_v32  ;;  %4034 = vmatpush.bf16.msra.mxu2 %v5706_v62  ;;  %v5819_v32 = vld [vmem:[%s9822_s13 + $0xe8] sm:$0xf0]  ;;  %4092 = vmatpush.bf16.msrb.mxu3 %v5830_v50 }
 0x3dd   :  { %v5822_v18 = vor.u32 %v6377_v56, %v5819_v32  ;;  %4105 = vmatpush.bf16.msra.mxu0 %v5894_v53  ;;  %v5795_v53 = vld [vmem:[%s9822_s13 + $0xb8] sm:$0xf0] }
 0x3de   :  { %v3576_v51 = vmul.f32 %v9380_v36, %v3575_v21  ;;  %v5747_v21 = vld [vmem:[%s9822_s13 + $0x58] sm:$0xf0] }
 0x3df   :  { %v5750_v55 = vor.u32 %v6359_v31, %v5747_v21  ;;  %4120 = vmatpush.bf16.msra.mxu1 %v5942_v8  ;;  %v5723_v21 = vld [vmem:[%s9822_s13 + $0x28] sm:$0xf0]  ;;  %v5907_v8 = vld [vmem:[%s9822_s13 + $0x198] sm:$0xf0] }
 0x3e0   :  { %v3580_v29 = vsel %vm9455_vm10, %v9380_v36, %v3576_v51  ;;  %v5763_v36 = vld [vmem:[%s9822_s13 + $0x78] sm:$0xf0]  ;;  %4093 = vmatpush.bf16.msrb.mxu3 %v5822_v18 }
 0x3e1   :  { %v3587_v14 = vrot.slane %v3580_v29, 5  ;;  %v5766_v47 = vor.u32 %v6363_v61, %v5763_v36  ;;  %v5875_v51 = vld [vmem:[%s9822_s13 + $0x158] sm:$0xf0]  ;;  %v6389_v61 = vld [vmem:[%s9822_s13 + $0x144] sm:$0xf] }
 0x3e2   :  { %v5878_v62 = vor.u32 %v6391_v7, %v5875_v51 }
 0x3e3   :  { %v3589_v39 = vsel %vm843_vm5, %v3586_v4, %v3587_v14  ;;  %4079 = vmatpush.bf16.msrb.mxu2 %v5766_v47  ;;  %v5867_v4 = vld [vmem:[%s9822_s13 + $0x148] sm:$0xf0]  ;;  %v6405_v14 = vld [vmem:[%s9822_s13 + $0x1c4] sm:$0xf] }
 0x3e4   :  { %v3590_v27 = vsel %vm92_vm0, %v9249_v10, %v3589_v39  ;;  %v6393_v10 = vld [vmem:[%s9822_s13 + $0x164] sm:$0xf]  ;;  %v6371_v39 = vld [vmem:[%s9822_s13 + $0xb4] sm:$0xf]  ;;  %v5870_v50 = vor.u32 %v6389_v61, %v5867_v4 }
 0x3e5   :  { %v9547_v37 = vmul.f32 %v3590_v27, %v3455_v5  ;;  %v5886_v28 = vor.u32 %v6393_v10, %v5883_v30  ;;  %v5934_v27 = vor.u32 %v6405_v14, %v5931_v48  ;;  %v5923_v10 = vld [vmem:[%s9822_s13 + $0x1b8] sm:$0xf0]  ;;  %v5798_v30 = vor.u32 %v6371_v39, %v5795_v53  ;;  %v6349_v14 = vld [vmem:[%s9822_s13 + $0x4] sm:$0xf]  ;;  %v5835_v48 = vld [vmem:[%s9822_s13 + $0x108] sm:$0xf0] }
 0x3e7   :  { %v3594_v23 = vperm.slane %v9547_v37, 0  ;;  %v3595_v25 = vperm.slane %v9547_v37, 1  ;;  %v3596_v11 = vperm.slane %v9547_v37, 2  ;;  %v3597_v6 = vperm.slane %v9547_v37, 3  ;;  %4080 = vmatpush.bf16.msrb.mxu2 %v5758_v15  ;;  %4106 = vmatpush.bf16.msra.mxu0 %v5886_v28 }
 0x3e8   :  { %4121 = vmatpush.bf16.msra.mxu1 %v5934_v27 }
 0x3e9   :  { %v3602_v26 = vmul.f32 %v3594_v23, %v9233_v3  ;;  %v3603_v57 = vmul.f32 %v3595_v25, %v9244_v0  ;;  %v3604_v1 = vmul.f32 %v3596_v11, %v9258_v2  ;;  %v3605_v38 = vmul.f32 %v3597_v6, %v9274_v9  ;;  %v6357_v0 = vld [vmem:[%s9822_s13 + $0x44] sm:$0xf]  ;;  %v5739_v2 = vld [vmem:[%s9822_s13 + $0x48] sm:$0xf0] }
 0x3ea   :  { %v5814_v3 = vor.u32 %v6375_v13, %v5811_v54  ;;  %v6373_v9 = vld [vmem:[%s9822_s13 + $0xc4] sm:$0xf]  ;;  %v3618_v49 = vmul.f32 %v3594_v23, %v9089_v52  ;;  %v3619_v36 = vmul.f32 %v3595_v25, %v9237_v22  ;;  %v3620_v19 = vmul.f32 %v3596_v11, %v9251_v20  ;;  %v5731_v52 = vld [vmem:[%s9822_s13 + $0x38] sm:$0xf0]  ;;  %v5787_v25 = vld [vmem:[%s9822_s13 + $0xa8] sm:$0xf0] }
 0x3eb   :  { %v3610_v35 = vrot.slane %v3603_v57, 7  ;;  %v3611_v5 = vrot.slane %v3604_v1, 6  ;;  %v3612_v29 = vrot.slane %v3605_v38, 5  ;;  %4081 = vmatpush.bf16.msrb.mxu2 %v5750_v55  ;;  %v5742_v63 = vor.u32 %v6357_v0, %v5739_v2  ;;  %4107 = vmatpush.bf16.msra.mxu0 %v5878_v62  ;;  %v6369_v23 = vld [vmem:[%s9822_s13 + $0xa4] sm:$0xf] }
 0x3ec   :  { %4094 = vmatpush.bf16.msrb.mxu3 %v5814_v3  ;;  %v5806_v20 = vor.u32 %v6373_v9, %v5803_v12  ;;  %v3621_v34 = vmul.f32 %v3597_v6, %v9262_v33  ;;  %v5734_v42 = vor.u32 %v6355_v41, %v5731_v52  ;;  %v6353_v33 = vld [vmem:[%s9822_s13 + $0x24] sm:$0xf]  ;;  %v5926_v11 = vor.u32 %v6403_v17, %v5923_v10  ;;  %v5851_v13 = vld [vmem:[%s9822_s13 + $0x128] sm:$0xf0]  ;;  %v6351_v3 = vld [vmem:[%s9822_s13 + $0x14] sm:$0xf] }
 0x3ed   :  { %v3613_v24 = vsel %vm841_vm6, %v3602_v26, %v3610_v35  ;;  %v3614_v47 = vsel %vm843_vm5, %v3611_v5, %v3612_v29  ;;  %v6385_v6 = vld [vmem:[%s9822_s13 + $0x124] sm:$0xf]  ;;  %v5915_v26 = vld [vmem:[%s9822_s13 + $0x1a8] sm:$0xf0]  ;;  %v5726_v57 = vor.u32 %v6353_v33, %v5723_v21  ;;  %v5790_v1 = vor.u32 %v6369_v23, %v5787_v25  ;;  %v5715_v0 = vld [vmem:[%s9822_s13 + $0x18] sm:$0xf0] }
 0x3ee   :  { %v3615_v22 = vsel %vm92_vm0, %v3613_v24, %v3614_v47  ;;  %4122 = vmatpush.bf16.msra.mxu1 %v5926_v11  ;;  %v5854_v2 = vor.u32 %v6385_v6, %v5851_v13  ;;  %v5918_v9 = vor.u32 %v6401_v58, %v5915_v26  ;;  %v6367_v35 = vld [vmem:[%s9822_s13 + $0x94] sm:$0xf]  ;;  %v5779_v5 = vld [vmem:[%s9822_s13 + $0x98] sm:$0xf0]  ;;  %v5718_v61 = vor.u32 %v6351_v3, %v5715_v0  ;;  %v6365_v24 = vld [vmem:[%s9822_s13 + $0x84] sm:$0xf] }
 0x3ef   :  { %v3617_v60 = vsub.f32 %v3456_v44, %v3615_v22  ;;  %4082 = vmatpush.bf16.msrb.mxu2 %v5742_v63  ;;  %4108 = vmatpush.bf16.msra.mxu0 %v5870_v50  ;;  %v6383_v29 = vld [vmem:[%s9822_s13 + $0x114] sm:$0xf]  ;;  %v5843_v62 = vld [vmem:[%s9822_s13 + $0x118] sm:$0xf0]  ;;  %v5782_v4 = vor.u32 %v6367_v35, %v5779_v5  ;;  %v5771_v47 = vld [vmem:[%s9822_s13 + $0x88] sm:$0xf0] }
 0x3f0   :  { %4095 = vmatpush.bf16.msrb.mxu3 %v5806_v20  ;;  %v6399_v12 = vld [vmem:[%s9822_s13 + $0x194] sm:$0xf]  ;;  %v6381_v63 = vld [vmem:[%s9822_s13 + $0x104] sm:$0xf]  ;;  %v5899_v52 = vld [vmem:[%s9822_s13 + $0x188] sm:$0xf0]  ;;  %v5774_v20 = vor.u32 %v6365_v24, %v5771_v47 }
 0x3f1   :  { %v3626_v56 = vperm.slane %v3617_v60, 3  ;;  %v3623_v32 = vperm.slane %v3617_v60, 0  ;;  %v3624_v37 = vperm.slane %v3617_v60, 1  ;;  %v3625_v15 = vperm.slane %v3617_v60, 2  ;;  %v6397_v41 = vld [vmem:[%s9822_s13 + $0x184] sm:$0xf] }
 0x3f2   :  { %4123 = vmatpush.bf16.msra.mxu1 %v5918_v9  ;;  %v5838_v39 = vor.u32 %v6381_v63, %v5835_v48  ;;  %v5902_v60 = vor.u32 %v6397_v41, %v5899_v52 }
 0x3f3   :  { %v3634_v18 = vadd.f32 %v3626_v56, %v3621_v34  ;;  %v3631_v28 = vadd.f32 %v3623_v32, %v3618_v49  ;;  %v3632_v45 = vadd.f32 %v3624_v37, %v3619_v36  ;;  %v3633_v31 = vadd.f32 %v3625_v15, %v3620_v19  ;;  %4083 = vmatpush.bf16.msrb.mxu2 %v5734_v42  ;;  %v5707_v49 = vld [vmem:[%s9822_s13 + $0x8] sm:$0xf0] }
 0x3f4   :  { %4096 = vmatpush.bf16.msrb.mxu3 %v5798_v30  ;;  %4109 = vmatpush.bf16.msra.mxu0 %v5862_v16  ;;  %v5846_v36 = vor.u32 %v6383_v29, %v5843_v62  ;;  %v5910_v19 = vor.u32 %v6399_v12, %v5907_v8  ;;  %v5710_v22 = vor.u32 %v6349_v14, %v5707_v49 }
 0x3f5   :  { %v3638_v55 = vmax.f32 %v3634_v18, 0.0  ;;  %v3635_v54 = vmax.f32 %v3631_v28, 0.0  ;;  %v3636_v7 = vmax.f32 %v3632_v45, 0.0  ;;  %v3637_v51 = vmax.f32 %v3633_v31, 0.0 }
 0x3f6   :  { %4124 = vmatpush.bf16.msra.mxu1 %v5910_v19 }
 0x3f7   :  { %v3639_v38 = vpack.c.bf16 %v3635_v54, %v3635_v54  ;;  %v3640_v43 = vpack.c.bf16 %v3636_v7, %v3636_v7  ;;  %v3641_v40 = vpack.c.bf16 %v3637_v51, %v3637_v51  ;;  %v3642_v44 = vpack.c.bf16 %v3638_v55, %v3638_v55  ;;  %4084 = vmatpush.bf16.msrb.mxu2 %v5726_v57 }
 0x3f8   :  { %4097 = vmatpush.bf16.msrb.mxu3 %v5790_v1  ;;  %4110 = vmatpush.bf16.msra.mxu0 %v5854_v2 }
 0x3f9   :  { %4035 = vmatmul.bf16.vlgmr.msra.gmra.mxu2 %v3639_v38  ;;  %4048 = vmatmul.bf16.vlgmr.msra.gmra.mxu3 %v3640_v43 }
 0x3fa   :  { %4061 = vmatmul.bf16.vlgmr.msrb.gmra.mxu0 %v3641_v40  ;;  %4074 = vmatmul.bf16.vlgmr.msrb.gmra.mxu1 %v3642_v44 }
 0x3fb   :  { %4085 = vmatpush.bf16.msrb.mxu2 %v5718_v61  ;;  %4125 = vmatpush.bf16.msra.mxu1 %v5902_v60 }
 0x3fc   :  { %4098 = vmatpush.bf16.msrb.mxu3 %v5782_v4  ;;  %4111 = vmatpush.bf16.msra.mxu0 %v5846_v36 }
 0x3ff   :  { %4086 = vmatpush.bf16.msrb.mxu2 %v5710_v22 }
 0x400   :  { %4099 = vmatpush.bf16.msrb.mxu3 %v5774_v20  ;;  %4112 = vmatpush.bf16.msra.mxu0 %v5838_v39 }
 0x409   :  { %4087 = vmatmul.bf16.vlgmr.msrb.gmra.mxu2 %v3639_v38  ;;  %4100 = vmatmul.bf16.vlgmr.msrb.gmra.mxu3 %v3640_v43 }
 0x40a   :  { %4113 = vmatmul.bf16.vlgmr.msra.gmra.mxu0 %v3641_v40  ;;  %4126 = vmatmul.bf16.vlgmr.msra.gmra.mxu1 %v3642_v44 }
 0x477   :  { %v4062_v50 = vpop.f32.mrf.mxu0  ;;  %v4075_v53 = vpop.f32.mrf.mxu1 }
 0x47c   :  { %v4036_v46 = vpop.f32.mrf.mxu2  ;;  %v4049_v59 = vpop.f32.mrf.mxu3 }
 0x47d   :  { %v4050_v34 = vadd.f32 %v4049_v59, %v4036_v46  ;;  %v6420_v46 = vld [vmem:[%s9826_s16 + $0x38] sm:$0xff] }
 0x47e   :  { %v6428_v59 = vld [vmem:[%s9826_s16 + $0x78] sm:$0xff]  ;;  %4359 = vmatpush.bf16.msra.mxu2 %v6420_v46 }
 0x47f   :  { %v4063_v27 = vadd.f32 %v4062_v50, %v4050_v34  ;;  %v4064_v42 = vpop.f32.mrf.mxu0  ;;  %v4077_v17 = vpop.f32.mrf.mxu1  ;;  %4372 = vmatpush.bf16.msra.mxu3 %v6428_v59 }
 0x480   :  { %v6427_v42 = vld [vmem:[%s9826_s16 + $0x70] sm:$0xff] }
 0x481   :  { %v9723_v56 = vadd.f32 %v4075_v53, %v4063_v27  ;;  %v6419_v27 = vld [vmem:[%s9826_s16 + $0x30] sm:$0xff] }
 0x482   :  { %4360 = vmatpush.bf16.msra.mxu2 %v6419_v27 }
 0x483   :  { %v4133_v32 = vsel %vm92_vm0, %v9723_v56, 0.0  ;;  %v4149_v37 = vmul.f32 %v9723_v56, %v9723_v56  ;;  %4373 = vmatpush.bf16.msra.mxu3 %v6427_v42 }
 0x484   :  { %v4134_v15 = vrot.slane %v4133_v32, 4  ;;  %v4038_v10 = vpop.f32.mrf.mxu2  ;;  %v4051_v30 = vpop.f32.mrf.mxu3 }
 0x485   :  { %v4151_v16 = vsel %vm92_vm0, %v4149_v37, 0.0  ;;  %v6426_v10 = vld [vmem:[%s9826_s16 + $0x68] sm:$0xff] }
 0x486   :  { %v4135_v33 = vadd.f32 %v4134_v15, %v4133_v32  ;;  %v4152_v18 = vrot.slane %v4151_v16, 4  ;;  %v6418_v15 = vld [vmem:[%s9826_s16 + $0x28] sm:$0xff] }
 0x487   :  { %v4114_v28 = vpop.f32.mrf.mxu0  ;;  %v4127_v45 = vpop.f32.mrf.mxu1  ;;  %4361 = vmatpush.bf16.msra.mxu2 %v6418_v15  ;;  %4374 = vmatpush.bf16.msra.mxu3 %v6426_v10 }
 0x488   :  { %v4136_v31 = vrot.slane %v4135_v33, 2  ;;  %v4153_v21 = vadd.f32 %v4152_v18, %v4151_v16  ;;  %v6417_v18 = vld [vmem:[%s9826_s16 + $0x20] sm:$0xff] }
 0x48a   :  { %v4137_v23 = vadd.f32 %v4136_v31, %v4135_v33  ;;  %v4154_v25 = vrot.slane %v4153_v21, 2 }
 0x48b   :  { %4362 = vmatpush.bf16.msra.mxu2 %v6417_v18 }
 0x48c   :  { %v4138_v11 = vrot.slane %v4137_v23, 1  ;;  %v4155_v6 = vadd.f32 %v4154_v25, %v4153_v21  ;;  %v4088_v13 = vpop.f32.mrf.mxu2  ;;  %v4101_v58 = vpop.f32.mrf.mxu3  ;;  %v6424_v25 = vld [vmem:[%s9826_s16 + $0x58] sm:$0xff] }
 0x48d   :  { %v4102_v55 = vadd.f32 %v4101_v58, %v4088_v13 }
 0x48e   :  { %v4139_v54 = vadd.f32 %v4138_v11, %v4137_v23  ;;  %v4156_v7 = vrot.slane %v4155_v6, 1  ;;  %v6416_v23 = vld [vmem:[%s9826_s16 + $0x18] sm:$0xff] }
 0x48f   :  { %v4115_v51 = vadd.f32 %v4114_v28, %v4102_v55  ;;  %v4116_v26 = vpop.f32.mrf.mxu0  ;;  %v4129_v57 = vpop.f32.mrf.mxu1  ;;  %v6425_v28 = vld [vmem:[%s9826_s16 + $0x60] sm:$0xff]  ;;  %4363 = vmatpush.bf16.msra.mxu2 %v6416_v23 }
 0x490   :  { %v9730_v1 = vmul.f32 0.5, %v4139_v54  ;;  %v4157_v38 = vadd.f32 %v4156_v7, %v4155_v6  ;;  %4375 = vmatpush.bf16.msra.mxu3 %v6425_v28  ;;  %v4131_v6 = vld [vmem:[%s9827_s14] sm:$0x3]  ;;  %v6415_v54 = vld [vmem:[%s9826_s16 + $0x10] sm:$0xff] }
 0x491   :  { %v9732_v43 = vadd.f32 %v4127_v45, %v4115_v51  ;;  %v6423_v7 = vld [vmem:[%s9826_s16 + $0x50] sm:$0xff] }
 0x492   :  { %v4165_v40 = vmul.f32 0.5, %v4157_v38  ;;  %v4167_v44 = vmul.f32 %v9730_v1, %v9730_v1  ;;  %v6414_v38 = vld [vmem:[%s9826_s16 + $0x8] sm:$0xff] }
 0x493   :  { %v4140_v3 = vsel %vm92_vm0, %v9732_v43, 0.0  ;;  %v4150_v0 = vmul.f32 %v9732_v43, %v9732_v43  ;;  %4364 = vmatpush.bf16.msra.mxu2 %v6415_v54 }
 0x494   :  { %v4169_v2 = vsub.f32 %v4165_v40, %v4167_v44  ;;  %v4141_v9 = vrot.slane %v4140_v3, 4  ;;  %v4090_v35 = vpop.f32.mrf.mxu2  ;;  %v4103_v5 = vpop.f32.mrf.mxu3  ;;  %4376 = vmatpush.bf16.msra.mxu3 %v6424_v25  ;;  %v6422_v40 = vld [vmem:[%s9826_s16 + $0x48] sm:$0xff] }
 0x495   :  { %v4158_v29 = vsel %vm92_vm0, %v4150_v0, 0.0  ;;  %v6421_v35 = vld [vmem:[%s9826_s16 + $0x40] sm:$0xff] }
 0x496   :  { %v4142_v62 = vadd.f32 %v4141_v9, %v4140_v3  ;;  %v4159_v12 = vrot.slane %v4158_v29, 4  ;;  %v4171_v8 = vmax.f32 %v4169_v2, 0.0  ;;  %v4132_v3 = vld [vmem:[%s9828_s15] sm:$0x3] }
 0x497   :  { %4365 = vmatpush.bf16.msra.mxu2 %v6414_v38  ;;  %v6413_v9 = vld [vmem:[%s9826_s16] sm:$0xff] }
 0x498   :  { %v4143_v61 = vrot.slane %v4142_v62, 2  ;;  %v4160_v4 = vadd.f32 %v4159_v12, %v4158_v29  ;;  %v4173_v36 = vadd.f32 1e-05, %v4171_v8  ;;  %4377 = vmatpush.bf16.msra.mxu3 %v6423_v7 }
 0x49a   :  { %v4144_v14 = vadd.f32 %v4143_v61, %v4142_v62  ;;  %v4161_v49 = vrot.slane %v4160_v4, 2  ;;  %6445 = vrsqrt.f32 %v4173_v36  ;;  %vm4181_vm13 = vweird.f32 %v4173_v36 }
 0x49b   :  { %4366 = vmatpush.bf16.msra.mxu2 %v6413_v9 }
 0x49c   :  { %v4145_v19 = vrot.slane %v4144_v14, 1  ;;  %v4162_v24 = vadd.f32 %v4161_v49, %v4160_v4  ;;  %4378 = vmatpush.bf16.msra.mxu3 %v6422_v40 }
 0x49e   :  { %v4146_v47 = vadd.f32 %v4145_v19, %v4144_v14  ;;  %v4163_v63 = vrot.slane %v4162_v24, 1 }
 0x4a0   :  { %v9741_v48 = vmul.f32 0.5, %v4146_v47  ;;  %v4164_v41 = vadd.f32 %v4163_v63, %v4162_v24  ;;  %v6446_v39 = vpop.eup %6445  ;;  %4379 = vmatpush.bf16.msra.mxu3 %v6421_v35  ;;  %v6434_v24 = vld [vmem:[%s9825_s17] ss:$0 sm:$0xff] }
 0x4a1   :  { %v4176_v53 = vmul.f32 %v6446_v39, %v4173_v36  ;;  %vm4182_vm5 = vweird.f32 %v6446_v39 }
 0x4a2   :  { %v4166_v52 = vmul.f32 0.5, %v4164_v41  ;;  %v4168_v22 = vmul.f32 %v9741_v48, %v9741_v48  ;;  %vm4183_vm14 = vmor %vm4181_vm13, %vm4182_vm5 }
 0x4a3   :  { %v4177_v34 = vmul.f32 %v6446_v39, %v4176_v53 }
 0x4a4   :  { %v4170_v20 = vsub.f32 %v4166_v52, %v4168_v22 }
 0x4a5   :  { %v4178_v32 = vmul.f32 0.5, %v4177_v34 }
 0x4a6   :  { %v4172_v60 = vmax.f32 %v4170_v20, 0.0 }
 0x4a7   :  { %v4179_v16 = vsub.f32 1.5, %v4178_v32 }
 0x4a8   :  { %v4174_v50 = vadd.f32 1e-05, %v4172_v60 }
 0x4a9   :  { %v4180_v31 = vmul.f32 %v6446_v39, %v4179_v16 }
 0x4aa   :  { %6447 = vrsqrt.f32 %v4174_v50  ;;  %vm4191_vm11 = vweird.f32 %v4174_v50 }
 0x4ab   :  { %v4184_v58 = vsel %vm4183_vm14, %v6446_v39, %v4180_v31 }
 0x4b0   :  { %v6448_v17 = vpop.eup %6447 }
 0x4b1   :  { %v4186_v37 = vmul.f32 %v6448_v17, %v4174_v50  ;;  %vm4192_vm0 = vweird.f32 %v6448_v17 }
 0x4b2   :  { %vm4193_vm12 = vmor %vm4191_vm11, %vm4192_vm0 }
 0x4b3   :  { %v4187_v30 = vmul.f32 %v6448_v17, %v4186_v37 }
 0x4b5   :  { %v4188_v33 = vmul.f32 0.5, %v4187_v30 }
 0x4b7   :  { %v4189_v45 = vsub.f32 1.5, %v4188_v33 }
 0x4b9   :  { %v4190_v21 = vmul.f32 %v6448_v17, %v4189_v45 }
 0x4bb   :  { %v4194_v11 = vsel %vm4193_vm12, %v6448_v17, %v4190_v21 }
 0x4bc   :  { %v4197_v13 = vrot.slane %v4194_v11, 7 }
 0x4be   :  { %v4198_v55 = vsel %vm841_vm6, %v4184_v58, %v4197_v13 }
 0x4bf   :  { %v4200_v51 = vmul.f32 %v4198_v55, %v4131_v6 }
 0x4c1   :  { %v4202_v26 = vperm.slane %v4200_v51, 0  ;;  %v4203_v57 = vperm.slane %v4200_v51, 1 }
 0x4c3   :  { %v4207_v44 = vmul.f32 %v4203_v57, %v9741_v48  ;;  %v4206_v0 = vmul.f32 %v4202_v26, %v9730_v1  ;;  %v4215_v62 = vmul.f32 %v4203_v57, %v9732_v43  ;;  %v4214_v1 = vmul.f32 %v4202_v26, %v9723_v56 }
 0x4c5   :  { %v4210_v2 = vrot.slane %v4207_v44, 7 }
 0x4c7   :  { %v4211_v5 = vsel %vm841_vm6, %v4206_v0, %v4210_v2  ;;  %vm4385_vm6 = vcmask 123904  }
 0x4c8   :  { %v4213_v29 = vsub.f32 %v4132_v3, %v4211_v5 }
 0x4ca   :  { %v4218_v12 = vperm.slane %v4213_v29, 1  ;;  %v4217_v8 = vperm.slane %v4213_v29, 0 }
 0x4cc   :  { %v4222_v61 = vadd.f32 %v4218_v12, %v4215_v62  ;;  %v4221_v4 = vadd.f32 %v4217_v8, %v4214_v1 }
 0x4ce   :  { %v4224_v14 = vmax.f32 %v4222_v61, 0.0  ;;  %v4223_v49 = vmax.f32 %v4221_v4, 0.0 }
 0x4d0   :  { %v4225_v36 = vpack.c.bf16 %v4223_v49, %v4223_v49  ;;  %v4226_v19 = vpack.c.bf16 %v4224_v14, %v4224_v14 }
 0x4d2   :  { %4367 = vmatmul.bf16.vlgmr.msra.gmra.mxu2 %v4225_v36  ;;  %4380 = vmatmul.bf16.vlgmr.msra.gmra.mxu3 %v4226_v19 }
 0x555   :  { %v4368_v47 = vpop.f32.mrf.mxu2  ;;  %v4381_v43 = vpop.f32.mrf.mxu3 }
 0x556   :  { %v4369_v63 = vadd.f32 %v6434_v24, %v4368_v47 }
 0x558   :  { %v4382_v48 = vadd.f32 %v4381_v43, %v4369_v63 }
 0x55a   :  { %4386 = vst.msk [vmem:[%s9829_s18] sm:$0x3] %vm4385_vm6, %v4382_v48 }
 0x55d   :  { %v4370_v56 = vpop.f32.mrf.mxu2  ;;  %v4383_v41 = vpop.f32.mrf.mxu3 }

</bundles_post_ra>
